<compile_context>
chip_gen: v5e
topology: v5e:2x2
jax: 0.10.0
libtpu: 0.0.40
codegen_flags: <defaults>
</compile_context>

<pallas_src>
import functools

import numpy as np
import jax
import jax.numpy as jnp
from jax.experimental import pallas as pl
from jax.experimental.pallas import tpu as pltpu


def _round_up(x, m):
    return (x + m - 1) // m * m


def _rep_spec(shape):
    nd = len(shape)
    return pl.BlockSpec(shape, lambda g, _nd=nd: (0,) * _nd)


# ------------------------------ fused model kernel ----------------------------
def _fused_convnet_kernel(*refs, n_conv, K, layer_dims, l0ps, B):
    x_ref = refs[0]
    w_refs = refs[1:1 + n_conv]                     # packed conv weights (Cin, K*K*Cout) bf16
    b_refs = refs[1 + n_conv:1 + 2 * n_conv]        # conv biases (1, Cout) f32
    sel_refs = refs[1 + 2 * n_conv:1 + 3 * n_conv]  # pool/scatter selection matrices bf16
    i0 = 1 + 3 * n_conv
    w1_ref, b1_ref, w2_ref, b2_ref, w3_ref, b3_ref = refs[i0:i0 + 6]
    o_ref = refs[i0 + 6]
    slab_scrs = refs[i0 + 7:]                       # bf16 flat padded slabs, layers 1..L

    pad = K // 2
    feats = []

    for l, (H, W, Cin, Cout) in enumerate(layer_dims):
        Wp = W + 2 * pad
        L0p = l0ps[l]
        Ho, Wo = H // 2, W // 2
        dmax = (K - 1) * Wp + (K - 1)               # largest tap row offset
        Lpf = (H - 1) * Wp                          # pooled-source row span
        last = (l + 1 == n_conv)

        wpk = w_refs[l][...]                        # hoisted weight / bias / selector loads
        bias = b_refs[l][...]
        sel = sel_refs[l][...]
        src = x_ref if l == 0 else slab_scrs[l - 1]
        if not last:
            dst = slab_scrs[l]
            L0pn = l0ps[l + 1]

        # group images so each dot has M >= ~256 rows (review: retune M chunk).
        grp = max(1, min(B, 256 // L0p))
        for b0 in range(0, B, grp):
            nb = min(grp, B - b0)
            rows = nb * L0p

            # ONE fused-tap dot per chunk: (rows, Cin) x (Cin, K*K*Cout), f32 accumulate.
            yy = jnp.dot(src[b0 * L0p:b0 * L0p + rows, :], wpk,
                         preferred_element_type=jnp.float32)
            m_out = rows - dmax
            acc = None
            for kh in range(K):
                for kw in range(K):
                    t = kh * K + kw
                    d = kh * Wp + kw
                    piece = yy[d:d + m_out, t * Cout:(t + 1) * Cout]
                    acc = piece if acc is None else acc + piece
            conv = jnp.maximum(acc + bias, 0.0)     # bias + ReLU (f32)

            # 2x2 max-pool + scatter into the next (zero-padded, bf16) slab,
            # one store per image; padding zeros come from the selector's zero rows.
            for bi in range(nb):
                base = bi * L0p
                p00 = conv[base:base + Lpf, :]
                p01 = conv[base + 1:base + 1 + Lpf, :]
                p10 = conv[base + Wp:base + Wp + Lpf, :]
                p11 = conv[base + Wp + 1:base + Wp + 1 + Lpf, :]
                pooled = jnp.maximum(jnp.maximum(p00, p01),
                                     jnp.maximum(p10, p11)).astype(jnp.bfloat16)
                picked = jnp.dot(sel, pooled, preferred_element_type=jnp.float32)
                if not last:
                    b = b0 + bi
                    dst[b * L0pn:(b + 1) * L0pn, :] = picked.astype(jnp.bfloat16)
                else:
                    # dense (Hf*Wf, Cf) features -> lane-concat to (1, Hf*Wf*Cf)
                    npos = picked.shape[0]
                    pieces = [picked[p:p + 1, :] for p in range(npos)]
                    feat = pieces[0] if npos == 1 else jnp.concatenate(pieces, axis=-1)
                    feats.append(feat)

        # TODO(synk): batch_norm / residual (disabled in net_params) and dropout /
        # in_feat_dropout (p=0.0) are identity here and emit no ops.

    # ----- MLPReadout: in -> in/2 -> in/4 -> n_classes (single contraction per layer)
    hfeat = feats[0] if len(feats) == 1 else jnp.concatenate(feats, axis=0)   # (B, F)
    z = jnp.dot(hfeat.astype(jnp.bfloat16), w1_ref[...],
                preferred_element_type=jnp.float32) + b1_ref[...]
    z = jnp.maximum(z, 0.0)
    z = jnp.dot(z.astype(jnp.bfloat16), w2_ref[...],
                preferred_element_type=jnp.float32) + b2_ref[...]
    z = jnp.maximum(z, 0.0)
    z = jnp.dot(z.astype(jnp.bfloat16), w3_ref[...],
                preferred_element_type=jnp.float32) + b3_ref[...]
    o_ref[0] = z


# ------------------------------ wrapper / glue ---------------------------------
def convnett_forward(x_nchw, params):
    conv_params, mlp_params = params
    N, Cin, H, W = x_nchw.shape
    K = conv_params[0][0].shape[0]
    assert K % 2 == 1, "same-padding conv requires odd kernel_size"
    pad = K // 2
    n_classes = mlp_params[-1].shape[-1]
    n_conv = len(conv_params)

    # Per-layer (H, W, Cin, Cout) and flat padded-slab row counts (multiple of 32,
    # with >=1 extra row so the shifted pooling slices always stay in-bounds).
    layer_dims = []
    h, w = H, W
    for (wt, _) in conv_params:
        assert h % 2 == 0 and w % 2 == 0, "2x2 max-pool needs even H, W"
        layer_dims.append((h, w, wt.shape[2], wt.shape[3]))
        h, w = h // 2, w // 2
    layer_dims = tuple(layer_dims)
    l0ps = tuple(_round_up((hl + 2 * pad) * (wl + 2 * pad) + 2 * pad + 1, 32)
                 for (hl, wl, _, _) in layer_dims)

    # Batch blocking: fold up to 16 images into the matmul M dimension per grid step,
    # but keep >=2 grid steps when N>=2 so both v7x TensorCores get work.
    B_blk = max(1, min(16, N // 2))
    G = (N + B_blk - 1) // B_blk
    N_pad = G * B_blk

    # h.clone().detach().float() -> f32, NCHW -> NHWC, spatial zero-pad, flatten,
    # tail-pad to the slab length, bf16 for the MXU.
    Hp, Wp0 = H + 2 * pad, W + 2 * pad
    L0p0 = l0ps[0]
    x = jnp.transpose(x_nchw.astype(jnp.float32), (0, 2, 3, 1))
    xp = jnp.pad(x, ((0, N_pad - N), (pad, pad), (pad, pad), (0, 0)))
    xf = jnp.pad(xp.reshape(N_pad, Hp * Wp0, Cin),
                 ((0, 0), (0, L0p0 - Hp * Wp0), (0, 0)))
    xf = xf.astype(jnp.bfloat16).reshape(N_pad * L0p0, Cin)

    inputs = [xf]
    in_specs = [pl.BlockSpec((B_blk * L0p0, Cin), lambda g: (g, 0))]

    # Conv weights packed for tap fusion along the MXU N dim: (K,K,Cin,Cout)->(Cin,K*K*Cout)
    for (wt, _) in conv_params:
        _k, _k2, ci, co = wt.shape
        wpk = jnp.transpose(wt, (2, 0, 1, 3)).reshape(ci, K * K * co).astype(jnp.bfloat16)
        inputs.append(wpk)
        in_specs.append(_rep_spec(wpk.shape))
    for (_, b) in conv_params:
        b = b.astype(jnp.float32)
        inputs.append(b)
        in_specs.append(_rep_spec(b.shape))

    # 0/1 selection matrices: gather the stride-2 pool positions and scatter them into
    # the next layer's zero-padded flat slab (last layer: into a dense feature block).
    for l, (hl, wl, _, _) in enumerate(layer_dims):
        Wp_l = wl + 2 * pad
        Ho_l, Wo_l = hl // 2, wl // 2
        Lpf_l = (hl - 1) * Wp_l
        if l + 1 < n_conv:
            Wpn = Wo_l + 2 * pad
            lead = pad * Wpn + pad
            n_rows = l0ps[l + 1]
        else:
            Wpn, lead, n_rows = Wo_l, 0, Ho_l * Wo_l
        sel = np.zeros((n_rows, Lpf_l), np.float32)
        for ii in range(Ho_l):
            for jj in range(Wo_l):
                sel[lead + ii * Wpn + jj, 2 * ii * Wp_l + 2 * jj] = 1.0
        sel = jnp.asarray(sel, jnp.bfloat16)
        inputs.append(sel)
        in_specs.append(_rep_spec(sel.shape))

    for arr in mlp_params:
        inputs.append(arr)
        in_specs.append(_rep_spec(arr.shape))

    # Inter-layer bf16 activation slabs (padding zeros are rewritten every step by the
    # selection matmul's zero rows, so no separate zero-fill pass is needed).
    scratch = [pltpu.VMEM((B_blk * l0ps[l], layer_dims[l][2]), jnp.bfloat16)
               for l in range(1, n_conv)]

    kernel = functools.partial(_fused_convnet_kernel, n_conv=n_conv, K=K,
                               layer_dims=layer_dims, l0ps=l0ps, B=B_blk)
    out = pl.pallas_call(
        kernel,
        out_shape=jax.ShapeDtypeStruct((G, B_blk, n_classes), jnp.float32),
        grid=(G,),
        in_specs=in_specs,
        out_specs=pl.BlockSpec((1, B_blk, n_classes), lambda g: (g, 0, 0)),
        scratch_shapes=scratch,
        compiler_params=pltpu.CompilerParams(
            dimension_semantics=("parallel",)),   # batch blocks are independent
    )(*inputs)
    return out.reshape(N_pad, n_classes)[:N]


# ------------------------------ param init ------------------------------------
def init_params(key, net_params):
    in_dim = net_params['in_dim']
    hidden = net_params['hidden_dim']
    L = net_params['L']
    K = net_params['kernel_size']
    n_classes = net_params['n_classes']
    size = net_params['size']
    assert net_params['pool'] == 'max' and net_params['pool_ratio'] == 2
    # TODO(synk): 'avg' pooling variant of ConvLayer is not implemented.

    keys = iter(jax.random.split(key, 4 * (L + 1) + 8))

    # feat_extraction: in_dim -> hidden ; layer i: hidden*2^i -> hidden*2^(i+1)
    conv_dims = [in_dim, hidden] + [hidden * 2 ** (i + 1) for i in range(L)]
    conv_params = []
    for cin, cout in zip(conv_dims[:-1], conv_dims[1:]):
        fan_in = cin * K * K
        wt = jax.random.normal(next(keys), (K, K, cin, cout), jnp.float32) / jnp.sqrt(fan_in)
        b = jax.random.normal(next(keys), (1, cout), jnp.float32) * 0.01
        conv_params.append((wt, b))

    # MLPReadout(input_dim, n_classes): two halving hidden layers + final projection
    Hf = size[0] // 2 ** (L + 1)
    Wf = size[1] // 2 ** (L + 1)
    Cf = hidden * 2 ** L
    mlp_in = Hf * Wf * Cf
    assert mlp_in == int(size[0] * size[1] * hidden / 2 ** (L + 2))
    d1, d2 = mlp_in // 2, mlp_in // 4

    w1 = jax.random.normal(next(keys), (mlp_in, d1), jnp.float32) / jnp.sqrt(mlp_in)
    # torch flattens NCHW while the kernel produces (h, w, c)-ordered features:
    # fold the row permutation into w1 once at init.
    w1 = jnp.transpose(w1.reshape(Cf, Hf, Wf, d1), (1, 2, 0, 3)).reshape(mlp_in, d1)
    w1 = w1.astype(jnp.bfloat16)
    b1 = jax.random.normal(next(keys), (1, d1), jnp.float32) * 0.01
    w2 = (jax.random.normal(next(keys), (d1, d2), jnp.float32) / jnp.sqrt(d1)).astype(jnp.bfloat16)
    b2 = jax.random.normal(next(keys), (1, d2), jnp.float32) * 0.01
    w3 = (jax.random.normal(next(keys), (d2, n_classes), jnp.float32) / jnp.sqrt(d2)).astype(jnp.bfloat16)
    b3 = jax.random.normal(next(keys), (1, n_classes), jnp.float32) * 0.01
    return conv_params, (w1, b1, w2, b2, w3, b3)


# ------------------------------------ main ------------------------------------
if __name__ == "__main__":
    net_params = dict(in_dim=3, hidden_dim=4, n_classes=10, size=(16, 16),
                      pool_ratio=2, pool='max', kernel_size=3,
                      in_feat_dropout=0.0, dropout=0.0, L=2,
                      batch_norm=False, residual=False, device='tpu')

    key = jax.random.PRNGKey(0)
    kx, kp = jax.random.split(key)
    x = jax.random.normal(
        kx, (2, net_params['in_dim'],
             net_params['size'][0], net_params['size'][1]), jnp.float32)

    params = init_params(kp, net_params)

    out = jax.jit(convnett_forward)(x, params)
    out = jax.block_until_ready(out)

    assert out.shape == (2, net_params['n_classes'])
    assert out.dtype == jnp.float32
    assert bool(jnp.all(jnp.isfinite(out)))
    print("KERNEL_OK")
</pallas_src>

<mosaic_0001>
module attributes {stable_mosaic.version = 11 : i64} {
  func.func @_fused_convnet_kernel(%arg0: i32, %arg1: memref<352x3xbf16, #tpu.memory_space<vmem>>, %arg2: memref<3x36xbf16, #tpu.memory_space<vmem>>, %arg3: memref<4x72xbf16, #tpu.memory_space<vmem>>, %arg4: memref<8x144xbf16, #tpu.memory_space<vmem>>, %arg5: memref<1x4xf32, #tpu.memory_space<vmem>>, %arg6: memref<1x8xf32, #tpu.memory_space<vmem>>, %arg7: memref<1x16xf32, #tpu.memory_space<vmem>>, %arg8: memref<128x270xbf16, #tpu.memory_space<vmem>>, %arg9: memref<64x70xbf16, #tpu.memory_space<vmem>>, %arg10: memref<4x18xbf16, #tpu.memory_space<vmem>>, %arg11: memref<64x32xbf16, #tpu.memory_space<vmem>>, %arg12: memref<1x32xf32, #tpu.memory_space<vmem>>, %arg13: memref<32x16xbf16, #tpu.memory_space<vmem>>, %arg14: memref<1x16xf32, #tpu.memory_space<vmem>>, %arg15: memref<16x10xbf16, #tpu.memory_space<vmem>>, %arg16: memref<1x10xf32, #tpu.memory_space<vmem>>, %arg17: memref<1x1x10xf32, #tpu.memory_space<vmem>>, %arg18: memref<128x4xbf16, #tpu.memory_space<vmem>>, %arg19: memref<64x8xbf16, #tpu.memory_space<vmem>>) attributes {dimension_semantics = [#tpu.dimension_semantics<parallel>], iteration_bounds = array<i64: 2>, scalar_prefetch = 0 : i64, scratch_operands = 2 : i64, tpu.core_type = #tpu.core_type<tc>, window_params = [{transform_indices = @transform_0, window_bounds = array<i64: 352, 3>}, {pipeline_mode = #tpu.pipeline_mode<synchronous>, transform_indices = @transform_1, window_bounds = array<i64: 3, 36>}, {pipeline_mode = #tpu.pipeline_mode<synchronous>, transform_indices = @transform_2, window_bounds = array<i64: 4, 72>}, {pipeline_mode = #tpu.pipeline_mode<synchronous>, transform_indices = @transform_3, window_bounds = array<i64: 8, 144>}, {pipeline_mode = #tpu.pipeline_mode<synchronous>, transform_indices = @transform_4, window_bounds = array<i64: 1, 4>}, {pipeline_mode = #tpu.pipeline_mode<synchronous>, transform_indices = @transform_5, window_bounds = array<i64: 1, 8>}, {pipeline_mode = #tpu.pipeline_mode<synchronous>, transform_indices = @transform_6, window_bounds = array<i64: 1, 16>}, {pipeline_mode = #tpu.pipeline_mode<synchronous>, transform_indices = @transform_7, window_bounds = array<i64: 128, 270>}, {pipeline_mode = #tpu.pipeline_mode<synchronous>, transform_indices = @transform_8, window_bounds = array<i64: 64, 70>}, {pipeline_mode = #tpu.pipeline_mode<synchronous>, transform_indices = @transform_9, window_bounds = array<i64: 4, 18>}, {pipeline_mode = #tpu.pipeline_mode<synchronous>, transform_indices = @transform_10, window_bounds = array<i64: 64, 32>}, {pipeline_mode = #tpu.pipeline_mode<synchronous>, transform_indices = @transform_11, window_bounds = array<i64: 1, 32>}, {pipeline_mode = #tpu.pipeline_mode<synchronous>, transform_indices = @transform_12, window_bounds = array<i64: 32, 16>}, {pipeline_mode = #tpu.pipeline_mode<synchronous>, transform_indices = @transform_13, window_bounds = array<i64: 1, 16>}, {pipeline_mode = #tpu.pipeline_mode<synchronous>, transform_indices = @transform_14, window_bounds = array<i64: 16, 10>}, {pipeline_mode = #tpu.pipeline_mode<synchronous>, transform_indices = @transform_15, window_bounds = array<i64: 1, 10>}, {transform_indices = @transform_16, window_bounds = array<i64: 1, 1, 10>}]} {
    %c0 = arith.constant 0 : index
    %c0_0 = arith.constant 0 : index
    %0 = vector.load %arg2[%c0, %c0_0] : memref<3x36xbf16, #tpu.memory_space<vmem>>, vector<3x36xbf16>
    %c0_1 = arith.constant 0 : index
    %c0_2 = arith.constant 0 : index
    %1 = vector.load %arg5[%c0_1, %c0_2] : memref<1x4xf32, #tpu.memory_space<vmem>>, vector<1x4xf32>
    %c0_3 = arith.constant 0 : index
    %c0_4 = arith.constant 0 : index
    %2 = vector.load %arg8[%c0_3, %c0_4] : memref<128x270xbf16, #tpu.memory_space<vmem>>, vector<128x270xbf16>
    %c0_5 = arith.constant 0 : index
    %c0_6 = arith.constant 0 : index
    %3 = vector.load %arg1[%c0_5, %c0_6] : memref<352x3xbf16, #tpu.memory_space<vmem>>, vector<352x3xbf16>
    %cst = arith.constant dense<0.000000e+00> : vector<352x36xf32>
    %4 = tpu.matmul %3, %0, %cst {dimension_numbers = #tpu.dot_dimension_numbers<[1], [0], [0], [1], [0, 0, 1, 1], [], []>} : vector<352x3xbf16>, vector<3x36xbf16>, vector<352x36xf32> -> vector<352x36xf32>
    %5 = vector.extract_strided_slice %4 {offsets = [0, 0], sizes = [314, 4], strides = [1, 1]} : vector<352x36xf32> to vector<314x4xf32>
    %6 = vector.extract_strided_slice %4 {offsets = [1, 4], sizes = [314, 4], strides = [1, 1]} : vector<352x36xf32> to vector<314x4xf32>
    %7 = arith.addf %5, %6 : vector<314x4xf32>
    %8 = vector.extract_strided_slice %4 {offsets = [2, 8], sizes = [314, 4], strides = [1, 1]} : vector<352x36xf32> to vector<314x4xf32>
    %9 = arith.addf %7, %8 : vector<314x4xf32>
    %10 = vector.extract_strided_slice %4 {offsets = [18, 12], sizes = [314, 4], strides = [1, 1]} : vector<352x36xf32> to vector<314x4xf32>
    %11 = arith.addf %9, %10 : vector<314x4xf32>
    %12 = vector.extract_strided_slice %4 {offsets = [19, 16], sizes = [314, 4], strides = [1, 1]} : vector<352x36xf32> to vector<314x4xf32>
    %13 = arith.addf %11, %12 : vector<314x4xf32>
    %14 = vector.extract_strided_slice %4 {offsets = [20, 20], sizes = [314, 4], strides = [1, 1]} : vector<352x36xf32> to vector<314x4xf32>
    %15 = arith.addf %13, %14 : vector<314x4xf32>
    %16 = vector.extract_strided_slice %4 {offsets = [36, 24], sizes = [314, 4], strides = [1, 1]} : vector<352x36xf32> to vector<314x4xf32>
    %17 = arith.addf %15, %16 : vector<314x4xf32>
    %18 = vector.extract_strided_slice %4 {offsets = [37, 28], sizes = [314, 4], strides = [1, 1]} : vector<352x36xf32> to vector<314x4xf32>
    %19 = arith.addf %17, %18 : vector<314x4xf32>
    %20 = vector.extract_strided_slice %4 {offsets = [38, 32], sizes = [314, 4], strides = [1, 1]} : vector<352x36xf32> to vector<314x4xf32>
    %21 = arith.addf %19, %20 : vector<314x4xf32>
    %22 = vector.broadcast %1 : vector<1x4xf32> to vector<314x4xf32>
    %23 = arith.addf %21, %22 : vector<314x4xf32>
    %cst_7 = arith.constant 0.000000e+00 : f32
    %24 = vector.broadcast %cst_7 : f32 to vector<314x4xf32>
    %25 = arith.maximumf %23, %24 : vector<314x4xf32>
    %26 = vector.extract_strided_slice %25 {offsets = [0, 0], sizes = [270, 4], strides = [1, 1]} : vector<314x4xf32> to vector<270x4xf32>
    %27 = vector.extract_strided_slice %25 {offsets = [1, 0], sizes = [270, 4], strides = [1, 1]} : vector<314x4xf32> to vector<270x4xf32>
    %28 = vector.extract_strided_slice %25 {offsets = [18, 0], sizes = [270, 4], strides = [1, 1]} : vector<314x4xf32> to vector<270x4xf32>
    %29 = vector.extract_strided_slice %25 {offsets = [19, 0], sizes = [270, 4], strides = [1, 1]} : vector<314x4xf32> to vector<270x4xf32>
    %30 = arith.maximumf %26, %27 : vector<270x4xf32>
    %31 = arith.maximumf %28, %29 : vector<270x4xf32>
    %32 = arith.maximumf %30, %31 : vector<270x4xf32>
    %33 = arith.truncf %32 : vector<270x4xf32> to vector<270x4xbf16>
    %cst_8 = arith.constant dense<0.000000e+00> : vector<128x4xf32>
    %34 = tpu.matmul %2, %33, %cst_8 {dimension_numbers = #tpu.dot_dimension_numbers<[1], [0], [0], [1], [0, 0, 1, 1], [], []>} : vector<128x270xbf16>, vector<270x4xbf16>, vector<128x4xf32> -> vector<128x4xf32>
    %35 = arith.truncf %34 : vector<128x4xf32> to vector<128x4xbf16>
    %c0_9 = arith.constant 0 : index
    %c0_10 = arith.constant 0 : index
    %36 = vector.load %arg18[%c0_9, %c0_10] : memref<128x4xbf16, #tpu.memory_space<vmem>>, vector<128x4xbf16>
    tpu.vector_store %arg18[%c0_9, %c0_10], %35 {strides = array<i32>} : memref<128x4xbf16, #tpu.memory_space<vmem>>, vector<128x4xbf16>,
    %c0_11 = arith.constant 0 : index
    %c0_12 = arith.constant 0 : index
    %37 = vector.load %arg3[%c0_11, %c0_12] : memref<4x72xbf16, #tpu.memory_space<vmem>>, vector<4x72xbf16>
    %c0_13 = arith.constant 0 : index
    %c0_14 = arith.constant 0 : index
    %38 = vector.load %arg6[%c0_13, %c0_14] : memref<1x8xf32, #tpu.memory_space<vmem>>, vector<1x8xf32>
    %c0_15 = arith.constant 0 : index
    %c0_16 = arith.constant 0 : index
    %39 = vector.load %arg9[%c0_15, %c0_16] : memref<64x70xbf16, #tpu.memory_space<vmem>>, vector<64x70xbf16>
    %c0_17 = arith.constant 0 : index
    %c0_18 = arith.constant 0 : index
    %40 = vector.load %arg18[%c0_17, %c0_18] : memref<128x4xbf16, #tpu.memory_space<vmem>>, vector<128x4xbf16>
    %cst_19 = arith.constant dense<0.000000e+00> : vector<128x72xf32>
    %41 = tpu.matmul %40, %37, %cst_19 {dimension_numbers = #tpu.dot_dimension_numbers<[1], [0], [0], [1], [0, 0, 1, 1], [], []>} : vector<128x4xbf16>, vector<4x72xbf16>, vector<128x72xf32> -> vector<128x72xf32>
    %42 = vector.extract_strided_slice %41 {offsets = [0, 0], sizes = [106, 8], strides = [1, 1]} : vector<128x72xf32> to vector<106x8xf32>
    %43 = vector.extract_strided_slice %41 {offsets = [1, 8], sizes = [106, 8], strides = [1, 1]} : vector<128x72xf32> to vector<106x8xf32>
    %44 = arith.addf %42, %43 : vector<106x8xf32>
    %45 = vector.extract_strided_slice %41 {offsets = [2, 16], sizes = [106, 8], strides = [1, 1]} : vector<128x72xf32> to vector<106x8xf32>
    %46 = arith.addf %44, %45 : vector<106x8xf32>
    %47 = vector.extract_strided_slice %41 {offsets = [10, 24], sizes = [106, 8], strides = [1, 1]} : vector<128x72xf32> to vector<106x8xf32>
    %48 = arith.addf %46, %47 : vector<106x8xf32>
    %49 = vector.extract_strided_slice %41 {offsets = [11, 32], sizes = [106, 8], strides = [1, 1]} : vector<128x72xf32> to vector<106x8xf32>
    %50 = arith.addf %48, %49 : vector<106x8xf32>
    %51 = vector.extract_strided_slice %41 {offsets = [12, 40], sizes = [106, 8], strides = [1, 1]} : vector<128x72xf32> to vector<106x8xf32>
    %52 = arith.addf %50, %51 : vector<106x8xf32>
    %53 = vector.extract_strided_slice %41 {offsets = [20, 48], sizes = [106, 8], strides = [1, 1]} : vector<128x72xf32> to vector<106x8xf32>
    %54 = arith.addf %52, %53 : vector<106x8xf32>
    %55 = vector.extract_strided_slice %41 {offsets = [21, 56], sizes = [106, 8], strides = [1, 1]} : vector<128x72xf32> to vector<106x8xf32>
    %56 = arith.addf %54, %55 : vector<106x8xf32>
    %57 = vector.extract_strided_slice %41 {offsets = [22, 64], sizes = [106, 8], strides = [1, 1]} : vector<128x72xf32> to vector<106x8xf32>
    %58 = arith.addf %56, %57 : vector<106x8xf32>
    %59 = vector.broadcast %38 : vector<1x8xf32> to vector<106x8xf32>
    %60 = arith.addf %58, %59 : vector<106x8xf32>
    %cst_20 = arith.constant 0.000000e+00 : f32
    %61 = vector.broadcast %cst_20 : f32 to vector<106x8xf32>
    %62 = arith.maximumf %60, %61 : vector<106x8xf32>
    %63 = vector.extract_strided_slice %62 {offsets = [0, 0], sizes = [70, 8], strides = [1, 1]} : vector<106x8xf32> to vector<70x8xf32>
    %64 = vector.extract_strided_slice %62 {offsets = [1, 0], sizes = [70, 8], strides = [1, 1]} : vector<106x8xf32> to vector<70x8xf32>
    %65 = vector.extract_strided_slice %62 {offsets = [10, 0], sizes = [70, 8], strides = [1, 1]} : vector<106x8xf32> to vector<70x8xf32>
    %66 = vector.extract_strided_slice %62 {offsets = [11, 0], sizes = [70, 8], strides = [1, 1]} : vector<106x8xf32> to vector<70x8xf32>
    %67 = arith.maximumf %63, %64 : vector<70x8xf32>
    %68 = arith.maximumf %65, %66 : vector<70x8xf32>
    %69 = arith.maximumf %67, %68 : vector<70x8xf32>
    %70 = arith.truncf %69 : vector<70x8xf32> to vector<70x8xbf16>
    %cst_21 = arith.constant dense<0.000000e+00> : vector<64x8xf32>
    %71 = tpu.matmul %39, %70, %cst_21 {dimension_numbers = #tpu.dot_dimension_numbers<[1], [0], [0], [1], [0, 0, 1, 1], [], []>} : vector<64x70xbf16>, vector<70x8xbf16>, vector<64x8xf32> -> vector<64x8xf32>
    %72 = arith.truncf %71 : vector<64x8xf32> to vector<64x8xbf16>
    %c0_22 = arith.constant 0 : index
    %c0_23 = arith.constant 0 : index
    %73 = vector.load %arg19[%c0_22, %c0_23] : memref<64x8xbf16, #tpu.memory_space<vmem>>, vector<64x8xbf16>
    tpu.vector_store %arg19[%c0_22, %c0_23], %72 {strides = array<i32>} : memref<64x8xbf16, #tpu.memory_space<vmem>>, vector<64x8xbf16>,
    %c0_24 = arith.constant 0 : index
    %c0_25 = arith.constant 0 : index
    %74 = vector.load %arg4[%c0_24, %c0_25] : memref<8x144xbf16, #tpu.memory_space<vmem>>, vector<8x144xbf16>
    %c0_26 = arith.constant 0 : index
    %c0_27 = arith.constant 0 : index
    %75 = vector.load %arg7[%c0_26, %c0_27] : memref<1x16xf32, #tpu.memory_space<vmem>>, vector<1x16xf32>
    %c0_28 = arith.constant 0 : index
    %c0_29 = arith.constant 0 : index
    %76 = vector.load %arg10[%c0_28, %c0_29] : memref<4x18xbf16, #tpu.memory_space<vmem>>, vector<4x18xbf16>
    %c0_30 = arith.constant 0 : index
    %c0_31 = arith.constant 0 : index
    %77 = vector.load %arg19[%c0_30, %c0_31] : memref<64x8xbf16, #tpu.memory_space<vmem>>, vector<64x8xbf16>
    %cst_32 = arith.constant dense<0.000000e+00> : vector<64x144xf32>
    %78 = tpu.matmul %77, %74, %cst_32 {dimension_numbers = #tpu.dot_dimension_numbers<[1], [0], [0], [1], [0, 0, 1, 1], [], []>} : vector<64x8xbf16>, vector<8x144xbf16>, vector<64x144xf32> -> vector<64x144xf32>
    %79 = vector.extract_strided_slice %78 {offsets = [0, 0], sizes = [50, 16], strides = [1, 1]} : vector<64x144xf32> to vector<50x16xf32>
    %80 = vector.extract_strided_slice %78 {offsets = [1, 16], sizes = [50, 16], strides = [1, 1]} : vector<64x144xf32> to vector<50x16xf32>
    %81 = arith.addf %79, %80 : vector<50x16xf32>
    %82 = vector.extract_strided_slice %78 {offsets = [2, 32], sizes = [50, 16], strides = [1, 1]} : vector<64x144xf32> to vector<50x16xf32>
    %83 = arith.addf %81, %82 : vector<50x16xf32>
    %84 = vector.extract_strided_slice %78 {offsets = [6, 48], sizes = [50, 16], strides = [1, 1]} : vector<64x144xf32> to vector<50x16xf32>
    %85 = arith.addf %83, %84 : vector<50x16xf32>
    %86 = vector.extract_strided_slice %78 {offsets = [7, 64], sizes = [50, 16], strides = [1, 1]} : vector<64x144xf32> to vector<50x16xf32>
    %87 = arith.addf %85, %86 : vector<50x16xf32>
    %88 = vector.extract_strided_slice %78 {offsets = [8, 80], sizes = [50, 16], strides = [1, 1]} : vector<64x144xf32> to vector<50x16xf32>
    %89 = arith.addf %87, %88 : vector<50x16xf32>
    %90 = vector.extract_strided_slice %78 {offsets = [12, 96], sizes = [50, 16], strides = [1, 1]} : vector<64x144xf32> to vector<50x16xf32>
    %91 = arith.addf %89, %90 : vector<50x16xf32>
    %92 = vector.extract_strided_slice %78 {offsets = [13, 112], sizes = [50, 16], strides = [1, 1]} : vector<64x144xf32> to vector<50x16xf32>
    %93 = arith.addf %91, %92 : vector<50x16xf32>
    %94 = vector.extract_strided_slice %78 {offsets = [14, 128], sizes = [50, 16], strides = [1, 1]} : vector<64x144xf32> to vector<50x16xf32>
    %95 = arith.addf %93, %94 : vector<50x16xf32>
    %96 = vector.broadcast %75 : vector<1x16xf32> to vector<50x16xf32>
    %97 = arith.addf %95, %96 : vector<50x16xf32>
    %cst_33 = arith.constant 0.000000e+00 : f32
    %98 = vector.broadcast %cst_33 : f32 to vector<50x16xf32>
    %99 = arith.maximumf %97, %98 : vector<50x16xf32>
    %100 = vector.extract_strided_slice %99 {offsets = [0, 0], sizes = [18, 16], strides = [1, 1]} : vector<50x16xf32> to vector<18x16xf32>
    %101 = vector.extract_strided_slice %99 {offsets = [1, 0], sizes = [18, 16], strides = [1, 1]} : vector<50x16xf32> to vector<18x16xf32>
    %102 = vector.extract_strided_slice %99 {offsets = [6, 0], sizes = [18, 16], strides = [1, 1]} : vector<50x16xf32> to vector<18x16xf32>
    %103 = vector.extract_strided_slice %99 {offsets = [7, 0], sizes = [18, 16], strides = [1, 1]} : vector<50x16xf32> to vector<18x16xf32>
    %104 = arith.maximumf %100, %101 : vector<18x16xf32>
    %105 = arith.maximumf %102, %103 : vector<18x16xf32>
    %106 = arith.maximumf %104, %105 : vector<18x16xf32>
    %107 = arith.truncf %106 : vector<18x16xf32> to vector<18x16xbf16>
    %cst_34 = arith.constant dense<0.000000e+00> : vector<4x16xf32>
    %108 = tpu.matmul %76, %107, %cst_34 {dimension_numbers = #tpu.dot_dimension_numbers<[1], [0], [0], [1], [0, 0, 1, 1], [], []>} : vector<4x18xbf16>, vector<18x16xbf16>, vector<4x16xf32> -> vector<4x16xf32>
    %109 = vector.extract_strided_slice %108 {offsets = [0, 0], sizes = [1, 16], strides = [1, 1]} : vector<4x16xf32> to vector<1x16xf32>
    %110 = vector.extract_strided_slice %108 {offsets = [1, 0], sizes = [1, 16], strides = [1, 1]} : vector<4x16xf32> to vector<1x16xf32>
    %111 = vector.extract_strided_slice %108 {offsets = [2, 0], sizes = [1, 16], strides = [1, 1]} : vector<4x16xf32> to vector<1x16xf32>
    %112 = vector.extract_strided_slice %108 {offsets = [3, 0], sizes = [1, 16], strides = [1, 1]} : vector<4x16xf32> to vector<1x16xf32>
    %113 = tpu.concatenate %109, %110, %111, %112 in 1 : vector<1x16xf32>, vector<1x16xf32>, vector<1x16xf32>, vector<1x16xf32> -> vector<1x64xf32>
    %114 = arith.truncf %113 : vector<1x64xf32> to vector<1x64xbf16>
    %c0_35 = arith.constant 0 : index
    %c0_36 = arith.constant 0 : index
    %115 = vector.load %arg11[%c0_35, %c0_36] : memref<64x32xbf16, #tpu.memory_space<vmem>>, vector<64x32xbf16>
    %cst_37 = arith.constant dense<0.000000e+00> : vector<1x32xf32>
    %116 = tpu.matmul %114, %115, %cst_37 {dimension_numbers = #tpu.dot_dimension_numbers<[1], [0], [0], [1], [0, 0, 1, 1], [], []>} : vector<1x64xbf16>, vector<64x32xbf16>, vector<1x32xf32> -> vector<1x32xf32>
    %c0_38 = arith.constant 0 : index
    %c0_39 = arith.constant 0 : index
    %117 = vector.load %arg12[%c0_38, %c0_39] : memref<1x32xf32, #tpu.memory_space<vmem>>, vector<1x32xf32>
    %118 = arith.addf %116, %117 : vector<1x32xf32>
    %cst_40 = arith.constant 0.000000e+00 : f32
    %119 = vector.broadcast %cst_40 : f32 to vector<1x32xf32>
    %120 = arith.maximumf %118, %119 : vector<1x32xf32>
    %121 = arith.truncf %120 : vector<1x32xf32> to vector<1x32xbf16>
    %c0_41 = arith.constant 0 : index
    %c0_42 = arith.constant 0 : index
    %122 = vector.load %arg13[%c0_41, %c0_42] : memref<32x16xbf16, #tpu.memory_space<vmem>>, vector<32x16xbf16>
    %cst_43 = arith.constant dense<0.000000e+00> : vector<1x16xf32>
    %123 = tpu.matmul %121, %122, %cst_43 {dimension_numbers = #tpu.dot_dimension_numbers<[1], [0], [0], [1], [0, 0, 1, 1], [], []>} : vector<1x32xbf16>, vector<32x16xbf16>, vector<1x16xf32> -> vector<1x16xf32>
    %c0_44 = arith.constant 0 : index
    %c0_45 = arith.constant 0 : index
    %124 = vector.load %arg14[%c0_44, %c0_45] : memref<1x16xf32, #tpu.memory_space<vmem>>, vector<1x16xf32>
    %125 = arith.addf %123, %124 : vector<1x16xf32>
    %cst_46 = arith.constant 0.000000e+00 : f32
    %126 = vector.broadcast %cst_46 : f32 to vector<1x16xf32>
    %127 = arith.maximumf %125, %126 : vector<1x16xf32>
    %128 = arith.truncf %127 : vector<1x16xf32> to vector<1x16xbf16>
    %c0_47 = arith.constant 0 : index
    %c0_48 = arith.constant 0 : index
    %129 = vector.load %arg15[%c0_47, %c0_48] : memref<16x10xbf16, #tpu.memory_space<vmem>>, vector<16x10xbf16>
    %cst_49 = arith.constant dense<0.000000e+00> : vector<1x10xf32>
    %130 = tpu.matmul %128, %129, %cst_49 {dimension_numbers = #tpu.dot_dimension_numbers<[1], [0], [0], [1], [0, 0, 1, 1], [], []>} : vector<1x16xbf16>, vector<16x10xbf16>, vector<1x10xf32> -> vector<1x10xf32>
    %c0_50 = arith.constant 0 : index
    %c0_51 = arith.constant 0 : index
    %131 = vector.load %arg16[%c0_50, %c0_51] : memref<1x10xf32, #tpu.memory_space<vmem>>, vector<1x10xf32>
    %132 = arith.addf %130, %131 : vector<1x10xf32>
    %c0_52 = arith.constant 0 : index
    %c0_53 = arith.constant 0 : index
    %c0_54 = arith.constant 0 : index
    %133 = vector.load %arg17[%c0_52, %c0_53, %c0_54] : memref<1x1x10xf32, #tpu.memory_space<vmem>>, vector<1x1x10xf32>
    %134 = vector.shape_cast %133 : vector<1x1x10xf32> to vector<1x10xf32>
    %135 = vector.shape_cast %132 : vector<1x10xf32> to vector<1x1x10xf32>
    tpu.vector_store %arg17[%c0_52, %c0_53, %c0_54], %135 {strides = array<i32>} : memref<1x1x10xf32, #tpu.memory_space<vmem>>, vector<1x1x10xf32>,
    return
  }
  func.func @transform_0(%arg0: i32) -> (i32, i32) {
    %c0_i32 = arith.constant 0 : i32
    %c0_i32_0 = arith.constant 0 : i32
    return %arg0, %c0_i32 : i32, i32
  }
  func.func @transform_1(%arg0: i32) -> (i32, i32) {
    %c0_i32 = arith.constant 0 : i32
    %c0_i32_0 = arith.constant 0 : i32
    %c0_i32_1 = arith.constant 0 : i32
    return %c0_i32, %c0_i32_0 : i32, i32
  }
  func.func @transform_2(%arg0: i32) -> (i32, i32) {
    %c0_i32 = arith.constant 0 : i32
    %c0_i32_0 = arith.constant 0 : i32
    %c0_i32_1 = arith.constant 0 : i32
    return %c0_i32, %c0_i32_0 : i32, i32
  }
  func.func @transform_3(%arg0: i32) -> (i32, i32) {
    %c0_i32 = arith.constant 0 : i32
    %c0_i32_0 = arith.constant 0 : i32
    %c0_i32_1 = arith.constant 0 : i32
    return %c0_i32, %c0_i32_0 : i32, i32
  }
  func.func @transform_4(%arg0: i32) -> (i32, i32) {
    %c0_i32 = arith.constant 0 : i32
    %c0_i32_0 = arith.constant 0 : i32
    %c0_i32_1 = arith.constant 0 : i32
    return %c0_i32, %c0_i32_0 : i32, i32
  }
  func.func @transform_5(%arg0: i32) -> (i32, i32) {
    %c0_i32 = arith.constant 0 : i32
    %c0_i32_0 = arith.constant 0 : i32
    %c0_i32_1 = arith.constant 0 : i32
    return %c0_i32, %c0_i32_0 : i32, i32
  }
  func.func @transform_6(%arg0: i32) -> (i32, i32) {
    %c0_i32 = arith.constant 0 : i32
    %c0_i32_0 = arith.constant 0 : i32
    %c0_i32_1 = arith.constant 0 : i32
    return %c0_i32, %c0_i32_0 : i32, i32
  }
  func.func @transform_7(%arg0: i32) -> (i32, i32) {
    %c0_i32 = arith.constant 0 : i32
    %c0_i32_0 = arith.constant 0 : i32
    %c0_i32_1 = arith.constant 0 : i32
    return %c0_i32, %c0_i32_0 : i32, i32
  }
  func.func @transform_8(%arg0: i32) -> (i32, i32) {
    %c0_i32 = arith.constant 0 : i32
    %c0_i32_0 = arith.constant 0 : i32
    %c0_i32_1 = arith.constant 0 : i32
    return %c0_i32, %c0_i32_0 : i32, i32
  }
  func.func @transform_9(%arg0: i32) -> (i32, i32) {
    %c0_i32 = arith.constant 0 : i32
    %c0_i32_0 = arith.constant 0 : i32
    %c0_i32_1 = arith.constant 0 : i32
    return %c0_i32, %c0_i32_0 : i32, i32
  }
  func.func @transform_10(%arg0: i32) -> (i32, i32) {
    %c0_i32 = arith.constant 0 : i32
    %c0_i32_0 = arith.constant 0 : i32
    %c0_i32_1 = arith.constant 0 : i32
    return %c0_i32, %c0_i32_0 : i32, i32
  }
  func.func @transform_11(%arg0: i32) -> (i32, i32) {
    %c0_i32 = arith.constant 0 : i32
    %c0_i32_0 = arith.constant 0 : i32
    %c0_i32_1 = arith.constant 0 : i32
    return %c0_i32, %c0_i32_0 : i32, i32
  }
  func.func @transform_12(%arg0: i32) -> (i32, i32) {
    %c0_i32 = arith.constant 0 : i32
    %c0_i32_0 = arith.constant 0 : i32
    %c0_i32_1 = arith.constant 0 : i32
    return %c0_i32, %c0_i32_0 : i32, i32
  }
  func.func @transform_13(%arg0: i32) -> (i32, i32) {
    %c0_i32 = arith.constant 0 : i32
    %c0_i32_0 = arith.constant 0 : i32
    %c0_i32_1 = arith.constant 0 : i32
    return %c0_i32, %c0_i32_0 : i32, i32
  }
  func.func @transform_14(%arg0: i32) -> (i32, i32) {
    %c0_i32 = arith.constant 0 : i32
    %c0_i32_0 = arith.constant 0 : i32
    %c0_i32_1 = arith.constant 0 : i32
    return %c0_i32, %c0_i32_0 : i32, i32
  }
  func.func @transform_15(%arg0: i32) -> (i32, i32) {
    %c0_i32 = arith.constant 0 : i32
    %c0_i32_0 = arith.constant 0 : i32
    %c0_i32_1 = arith.constant 0 : i32
    return %c0_i32, %c0_i32_0 : i32, i32
  }
  func.func @transform_16(%arg0: i32) -> (i32, i32, i32) {
    %c0_i32 = arith.constant 0 : i32
    %c0_i32_0 = arith.constant 0 : i32
    %c0_i32_1 = arith.constant 0 : i32
    return %arg0, %c0_i32, %c0_i32_0 : i32, i32, i32
  }
}

</mosaic_0001>

<bundles_post_ra>
// kernel: convnett_forward.1
= control target key start
LH: loop header
LB: loop body
LE: loop exit
PB: predicated region body
PF: predicated region fallthrough
CT: control target
= control target key end

     0   :  { %s8944_s0 = inlined_call_operand.vmem [shape: bf16[704,3], index: 0, kind: input, shape index: {}]   ;;  %s8945_s1 = inlined_call_operand.vmem [shape: bf16[3,36], index: 1, kind: input, shape index: {}]   ;;  %s8946_s2 = inlined_call_operand.vmem [shape: bf16[4,72], index: 2, kind: input, shape index: {}]   ;;  %s8947_s3 = inlined_call_operand.vmem [shape: bf16[8,144], index: 3, kind: input, shape index: {}]   ;;  %s8948_s4 = inlined_call_operand.vmem [shape: f32[1,4], index: 4, kind: input, shape index: {}]   ;;  %s8949_s5 = inlined_call_operand.vmem [shape: f32[1,8], index: 5, kind: input, shape index: {}]   ;;  %s8950_s6 = inlined_call_operand.vmem [shape: f32[1,16], index: 6, kind: input, shape index: {}]   ;;  %s8951_s7 = inlined_call_operand.vmem [shape: bf16[128,270], index: 7, kind: input, shape index: {}]   ;;  %s8952_s8 = inlined_call_operand.vmem [shape: bf16[64,70], index: 8, kind: input, shape index: {}]   ;;  %s8953_s9 = inlined_call_operand.vmem [shape: bf16[4,18], index: 9, kind: input, shape index: {}]   ;;  %s8954_s10 = inlined_call_operand.vmem [shape: bf16[64,32], index: 10, kind: input, shape index: {}]   ;;  %s8955_s11 = inlined_call_operand.vmem [shape: f32[1,32], index: 11, kind: input, shape index: {}]   ;;  %s8956_s12 = inlined_call_operand.vmem [shape: bf16[32,16], index: 12, kind: input, shape index: {}]   ;;  %s8957_s13 = inlined_call_operand.vmem [shape: f32[1,16], index: 13, kind: input, shape index: {}]   ;;  %s8958_s14 = inlined_call_operand.vmem [shape: bf16[16,10], index: 14, kind: input, shape index: {}]   ;;  %s8959_s15 = inlined_call_operand.vmem [shape: f32[1,10], index: 15, kind: input, shape index: {}]   ;;  %s8960_s16 = inlined_call_operand.hbm [shape: f32[2,1,10], index: 16, kind: output, shape index: {}]  }
   0x1   :  { %9173 = sst [smem:[#allocation175_spill]] %s8944_s0 }
   0x2   :  { %9174 = sst [smem:[#allocation176_spill]] %s8945_s1 }
   0x3   :  { %9175 = sst [smem:[#allocation177_spill]] %s8948_s4 }
   0x4   :  { %21 = vsyncpa [#allocation5], 0 }
   0x5   :  { %23 = vsyncpa [#allocation5 + $0x1], 0  ;;  %s5426_s21 = smov 0   ;;  %s5428_s22 = smov 0  }
   0x6   :  { %s5430_s23 = smov 0   ;;  %s5432_s24 = smov 0  }
   0x7 LB: > { %9176 = sst [smem:[#allocation7_spill]] %s5311_s21  ;;  %s5447_s25 = sadd.s32 4294967295, %s5323_s24   ;;  %s5323_s24 = sphi %s5432_s24, %s9748_s24   ;;  %s5319_s23 = sphi %s5430_s23, %s9750_s23   ;;  %s5315_s22 = sphi %s5428_s22, %s9752_s22   ;;  %s5311_s21 = sphi %s5426_s21, %s9751_s21  }
   0x8   : > { %9177 = sst [smem:[#allocation8_spill]] %s5319_s23  ;;  %s4794_s26 = sadd.s32 4294967294, %s5323_s24  }
   0x9   : > { %9178 = sst [smem:[#allocation9_spill]] %s5323_s24  ;;  %s5451_s27 = sadd.s32 1, %s5323_s24  }
   0xa   : > { %9179 = sst [smem:[#allocation10_spill]] %s5451_s27  ;;  %s377_s28 = sadd.s32 1, %s5319_s23 }
   0xb   : > { %s374_s29 = ssub.s32 %s5323_s24, %s5451_s27  ;;  %p387_p0 = scmp.ne.s32.totalorder %s5319_s23, %s5315_s22 }
   0xc   : > { %p375_p1 = scmp.eq.s32.totalorder %s374_s29, 0  ;;  %p388_p2 = scmp.eq.s32.totalorder %s5447_s25, 1 }
   0xd   : > { %p393_p3 = scmp.ne.s32.totalorder %s5315_s22, %s5311_s21  ;;  %p394_p4 = scmp.eq.s32.totalorder %s4794_s26, 1 }
   0xe   : > { %s5462_s30 = scalar_select %p375_p1, %s5319_s23, %s377_s28  }
   0xf   : > { %p5464_p5 = por %p388_p2, %p387_p0  ;;  %p5468_p6 = por %p394_p4, %p393_p3 }
  0x10   : > { %9180 = sst [smem:[#allocation11_spill]] %s5462_s30  ;;  %p4797_p7 = scmp.ge.s32.totalorder %s5323_s24, 1 }
  0x11   : > { %s9182_s17 = scalar_select %p5468_p6, 1, 0 }
  0x12   : > { %p466_p8 = scmp.lt.s32.totalorder %s5323_s24, 3 }
  0x13   : > { %9183 = sst [smem:[#allocation12_spill]] %s9182_s17 }
  0x14   : > { %p467_p9 = pnand %p4797_p7, %p466_p8 }
  0x16   : > { %470 = sbr.rel (%p467_p9) target bundleno = 2975 (0xb9f), region = 84 }
  0x1b   : > { %s9184_s1 = sld [smem:[#allocation176_spill]]  ;;  %vm777_vm0 = vcmask 1040384   ;;  %vm778_vm1 = vcmask 1041408   ;;  %s515_s20 = smul.u32 44, %s5447_s25  ;;  %v5325_v1 = vmov 65535   ;;  %vm710_vm2 = vcmask 23552  }
  0x1c   : > { %v779_v2 = vsel %vm777_vm0, 4294967295, %v5325_v1  ;;  %s9185_s18 = sld [smem:[#allocation175_spill]]  ;;  %vm1541_vm3 = vcmask 1044480   ;;  %vm2143_vm4 = vcmask 1042432   ;;  %vm1163_vm5 = vcmask 1045504   ;;  %s8961_s28 = smov 116  }
  0x1d   : > { %v780_v3 = vsel %vm778_vm1, %v779_v2, 0  ;;  %p516_p10 = scmp.lt.s32.totalorder %s515_s20, 87  ;;  %vm1765_vm6 = vcmask 1043456   ;;  %s9005_s29 = smov 108   ;;  %vm939_vm7 = vcmask 1046528   ;;  %vm3157_vm8 = vcmask 113664  }
  0x1e   : > { %s9259_s30 = smov 96   ;;  %s9269_s23 = smov 108   ;;  %vm3348_vm9 = vcmask 27648   ;;  %vm3431_vm10 = vcmask 31744   ;;  %vm4162_vm11 = vcmask 572416   ;;  %vm4215_vm12 = vcmask 60416  }
  0x1f   : > { %s9754_s20 = smov (!%p516_p10, %s515_s20), 87  ;;  %s9434_s4 = sld [smem:[#allocation177_spill]]  ;;  %vm4260_vm13 = vcmask 64512   ;;  %vm4572_vm14 = vcmask 146432   ;;  %vm4605_vm15 = vcmask 130048  }
  0x20   : > { %s4798_s26 = sshll.u32 %s9754_s20, 2  ;;  %s8963_s20 = smov 112  }
  0x21   : > { %v522_v0 = vld [vmem:[%s9184_s1] sm:$0x3]  ;;  %s9254_s1 = smov 120   ;;  %s5335_s27 = smov 80  }
  0x22   : > { %v782_v4 = vand.u32 %v780_v3, %v522_v0  ;;  %s5483_s19 = scalar_lea.vmem %s9185_s18, %s4798_s26  ;;  %s8965_s26 = smov 100  }
  0x23   : > { %v5155_v5 = vld [vmem:[%s5483_s19] sm:$0xff]  ;;  %v5173_v6 = vld [vmem:[%s5483_s19 + $0x90] sm:$0xff]  ;;  %v5156_v7 = vld [vmem:[%s5483_s19 + $0x8] sm:$0xff]  ;;  %s8967_s18 = smov 96   ;;  %s5336_s21 = smov 72  }
  0x24   : > { %791 = vmatpush.bf16.msra.mxu0 %v782_v4  ;;  %5200 = vmatpush.bf16.msra.mxu2 %v782_v4  ;;  %v5174_v8 = vld [vmem:[%s5483_s19 + $0x98] sm:$0xff]  ;;  %v5157_v9 = vld [vmem:[%s5483_s19 + $0x10] sm:$0xff]  ;;  %v5175_v10 = vld [vmem:[%s5483_s19 + $0xa0] sm:$0xff]  ;;  %s5337_s24 = smov 64   ;;  %s5338_s17 = smov 48  }
  0x25   : > { %5201 = vmatpush.bf16.msra.mxu3 %v782_v4  ;;  %v5158_v11 = vld [vmem:[%s5483_s19 + $0x18] sm:$0xff]  ;;  %v5159_v12 = vld [vmem:[%s5483_s19 + $0x20] sm:$0xff]  ;;  %v5160_v13 = vld [vmem:[%s5483_s19 + $0x28] sm:$0xff] }
  0x26   : > { %v5161_v14 = vld [vmem:[%s5483_s19 + $0x30] sm:$0xff]  ;;  %v5162_v15 = vld [vmem:[%s5483_s19 + $0x38] sm:$0xff]  ;;  %v5163_v16 = vld [vmem:[%s5483_s19 + $0x40] sm:$0xff] }
  0x27   : > { %4887 = vmatmul.msk.bf16.vlgmr.msra.gmra.mxu0 %vm710_vm2, %v5155_v5  ;;  %4905 = vmatmul.msk.bf16.vlgmr.msra.gmra.mxu2 %vm710_vm2, %v5173_v6  ;;  %v5164_v24 = vld [vmem:[%s5483_s19 + $0x48] sm:$0xff]  ;;  %v5165_v44 = vld [vmem:[%s5483_s19 + $0x50] sm:$0xff]  ;;  %v5166_v57 = vld [vmem:[%s5483_s19 + $0x58] sm:$0xff] }
  0x28   : > { %v5167_v4 = vld [vmem:[%s5483_s19 + $0x60] sm:$0xff] }
  0x37   : > { %4888 = vmatmul.msk.bf16.gmra.mxu0 %vm710_vm2, %v5156_v7  ;;  %4906 = vmatmul.msk.bf16.gmra.mxu2 %vm710_vm2, %v5174_v8 }
  0x47   : > { %4889 = vmatmul.msk.bf16.gmra.mxu0 %vm710_vm2, %v5157_v9  ;;  %4907 = vmatmul.msk.bf16.gmra.mxu2 %vm710_vm2, %v5175_v10 }
  0x57   : > { %4890 = vmatmul.msk.bf16.gmra.mxu0 %vm710_vm2, %v5158_v11 }
  0x67   : > { %4891 = vmatmul.msk.bf16.gmra.mxu0 %vm710_vm2, %v5159_v12  ;;  %v5168_v12 = vld [vmem:[%s5483_s19 + $0x68] sm:$0xff] }
  0x77   : > { %4892 = vmatmul.msk.bf16.gmra.mxu0 %vm710_vm2, %v5160_v13 }
  0x87   : > { %4893 = vmatmul.msk.bf16.gmra.mxu0 %vm710_vm2, %v5161_v14 }
  0x97   : > { %4894 = vmatmul.msk.bf16.gmra.mxu0 %vm710_vm2, %v5162_v15 }
  0xa4   : > { %v5508_v17 = vpop.f32.mrf.mxu0 }
  0xa5   : > { %9186 = vst [vmem:[#allocation13_spill] sm:$0xff] %v5508_v17 }
  0xa7   : > { %4895 = vmatmul.msk.bf16.gmra.mxu0 %vm710_vm2, %v5163_v16 }
  0xaa   : > { %v5511_v18 = vpop.f32.mrf.mxu2 }
  0xab   : > { %9187 = vst [vmem:[#allocation14_spill] sm:$0xff] %v5511_v18  ;;  %v8981_v20 = vrot.slane %v5511_v18, 3  ;;  %v8985_v21 = vrot.slane %v5511_v18, 5  ;;  %v8986_v23 = vrot.slane %v5511_v18, 2  ;;  %v8980_v32 = vrot.slane %v5511_v18, 4 }
  0xac   : > { %v5513_v19 = vpop.f32.mrf.mxu0  ;;  %v8982_v34 = vrot.slane %v5511_v18, 6 }
  0xad   : > { %9188 = vst [vmem:[#allocation15_spill] sm:$0xff] %v5513_v19 }
  0xb2   : > { %v5517_v22 = vpop.f32.mrf.mxu2 }
  0xb3   : > { %9189 = vst [vmem:[#allocation16_spill] sm:$0xff] %v5517_v22  ;;  %v1611_v25 = vrot.slane %v5517_v22, 3  ;;  %v2209_v26 = vrot.slane %v5517_v22, 5  ;;  %v1237_v28 = vrot.slane %v5517_v22, 2  ;;  %v1835_v33 = vrot.slane %v5517_v22, 4 }
  0xb4   : > { %v5523_v27 = vpop.f32.mrf.mxu0  ;;  %v2432_v35 = vrot.slane %v5517_v22, 6 }
  0xb5   : > { %9190 = vst [vmem:[#allocation17_spill] sm:$0xff] %v5523_v27  ;;  %v1612_v29 = vsel %vm1541_vm3, %v8981_v20, %v1611_v25  ;;  %v2210_v30 = vsel %vm2143_vm4, %v8985_v21, %v2209_v26  ;;  %v5537_v31 = vsel %vm1163_vm5, %v8986_v23, %v1237_v28  ;;  %v1836_v37 = vsel %vm1765_vm6, %v8980_v32, %v1835_v33 }
  0xb6   : > { %1685 = vrot.lane.b32.xlu1 %v1612_v29, %s8963_s20  ;;  %2283 = vrot.lane.b32.xlu2 %v2210_v30, %s8965_s26  ;;  %9191 = vst [vmem:[#allocation18_spill] sm:$0xff] %v5537_v31  ;;  %v2433_v38 = vsel %vm778_vm1, %v8982_v34, %v2432_v35 }
  0xb7   : > { %4896 = vmatmul.msk.bf16.gmra.mxu0 %vm710_vm2, %v5164_v24  ;;  %1461 = vrot.lane.b32.xlu0 %v5537_v31, %s8961_s28  ;;  %s8969_s28 = smov 104  }
  0xba   : > { %v5546_v36 = vpop.f32.mrf.mxu2 }
  0xbb   : > { %9192 = vst [vmem:[#allocation19_spill] sm:$0xff] %v5546_v36  ;;  %v2211_v39 = vrot.slane %v5546_v36, 5  ;;  %v8974_v42 = vrot.slane %v5546_v36, 3  ;;  %v2434_v43 = vrot.slane %v5546_v36, 6  ;;  %v8975_v48 = vrot.slane %v5546_v36, 2 }
  0xbc   : > { %v5555_v40 = vpop.f32.mrf.mxu0  ;;  %v1837_v49 = vrot.slane %v5546_v36, 4 }
  0xbd   : > { %9193 = vst [vmem:[#allocation20_spill] sm:$0xff] %v5555_v40  ;;  %v2212_v41 = vsel %vm2143_vm4, %v2209_v26, %v2211_v39  ;;  %v1614_v45 = vsel %vm1541_vm3, %v1611_v25, %v8974_v42  ;;  %v2435_v47 = vsel %vm778_vm1, %v2432_v35, %v2434_v43  ;;  %v1390_v52 = vsel %vm1163_vm5, %v1237_v28, %v8975_v48 }
  0xbe   : > { %1909 = vrot.lane.b32.xlu1 %v1836_v37, %s9005_s29  ;;  %2506 = vrot.lane.b32.xlu2 %v2433_v38, %s8967_s18  ;;  %v1838_v53 = vsel %vm1765_vm6, %v1835_v33, %v1837_v49  ;;  %v5169_v38 = vld [vmem:[%s5483_s19 + $0x70] sm:$0xff] }
  0xbf   : > { %2285 = vrot.lane.b32.xlu0 %v2212_v41, %s8965_s26 }
  0xc2   : > { %v5576_v50 = vpop.f32.mrf.mxu2 }
  0xc3   : > { %9195 = vst [vmem:[#allocation22_spill] sm:$0xff] %v5576_v50  ;;  %v1839_v51 = vrot.slane %v5576_v50, 4  ;;  %v2213_v56 = vrot.slane %v5576_v50, 5  ;;  %v2436_v61 = vrot.slane %v5576_v50, 6 }
  0xc4   : > { %v5567_v46 = vpop.f32.mrf.mxu0 }
  0xc5   : > { %9194 = vst [vmem:[#allocation21_spill] sm:$0xff] %v5567_v46  ;;  %v5586_v55 = vsel %vm1765_vm6, %v1837_v49, %v1839_v51  ;;  %v2214_v58 = vsel %vm2143_vm4, %v2211_v39, %v2213_v56  ;;  %v2437_v63 = vsel %vm778_vm1, %v2434_v43, %v2436_v61 }
  0xc6   : > { %2059 = vrot.lane.b32.xlu1 %v1836_v37, %s8969_s28  ;;  %1687 = vrot.lane.b32.xlu2 %v1614_v45, %s8963_s20  ;;  %9197 = vst [vmem:[#allocation24_spill] sm:$0xff] %v5586_v55  ;;  %s9198_s20 = smov 116  }
  0xc7   : > { %4897 = vmatmul.msk.bf16.gmra.mxu0 %vm710_vm2, %v5165_v44  ;;  %2508 = vrot.lane.b32.xlu0 %v2435_v47, %s8967_s18 }
  0xca   : > { %v5597_v60 = vpop.f32.mrf.mxu2 }
  0xcb   : > { %9200 = vst [vmem:[#allocation26_spill] sm:$0xff] %v5597_v60  ;;  %v8971_v62 = vrot.slane %v5597_v60, 5  ;;  %v8973_v2 = vrot.slane %v5597_v60, 4  ;;  %v8972_v3 = vrot.slane %v5597_v60, 6 }
  0xcc   : > { %v5583_v54 = vpop.f32.mrf.mxu0 }
  0xcd   : > { %9196 = vst [vmem:[#allocation23_spill] sm:$0xff] %v5583_v54  ;;  %v2216_v0 = vsel %vm2143_vm4, %v2213_v56, %v8971_v62  ;;  %v1992_v5 = vsel %vm1765_vm6, %v1839_v51, %v8973_v2  ;;  %v2439_v6 = vsel %vm778_vm1, %v2436_v61, %v8972_v3 }
  0xce   : > { %1463 = vrot.lane.b32.xlu1 %v1390_v52, %s9198_s20  ;;  %1911 = vrot.lane.b32.xlu2 %v1838_v53, %s9005_s29 }
  0xcf   : > { %2063 = vrot.lane.b32.xlu0 %v5586_v55, %s8969_s28 }
  0xd4   : > { %v5595_v59 = vpop.f32.mrf.mxu0 }
  0xd5   : > { %9199 = vst [vmem:[#allocation25_spill] sm:$0xff] %v5595_v59 }
  0xd6   : > { %2287 = vrot.lane.b32.xlu1 %v2214_v58, %s8965_s26  ;;  %2061 = vrot.lane.b32.xlu2 %v1838_v53, %s8969_s28 }
  0xd7   : > { %4898 = vmatmul.msk.bf16.gmra.mxu0 %vm710_vm2, %v5166_v57  ;;  %v5170_v57 = vld [vmem:[%s5483_s19 + $0x78] sm:$0xff] }
  0xdc   : > { %v5608_v1 = vpop.f32.mrf.mxu0 }
  0xdd   : > { %9201 = vst [vmem:[#allocation27_spill] sm:$0xff] %v5608_v1 }
  0xde   : > { %2510 = vrot.lane.b32.xlu1 %v2437_v63, %s8967_s18  ;;  %2289 = vrot.lane.b32.xlu2 %v2216_v0, %s8965_s26  ;;  %s8983_s26 = smov 124  }
  0xe4   : > { %v5621_v7 = vpop.f32.mrf.mxu0 }
  0xe5   : > { %9202 = vst [vmem:[#allocation28_spill] sm:$0xff] %v5621_v7  ;;  %v8979_v9 = vrot.slane %v5621_v7, 1  ;;  %v8978_v15 = vrot.slane %v5621_v7, 2 }
  0xe6   : > { %2065 = vrot.lane.b32.xlu1 %v1992_v5, %s8969_s28  ;;  %2512 = vrot.lane.b32.xlu2 %v2439_v6, %s8967_s18  ;;  %s8994_s18 = smov 120   ;;  %s9211_s28 = smov 112  }
  0xe7   : > { %4899 = vmatmul.msk.bf16.gmra.mxu0 %vm710_vm2, %v5167_v4 }
  0xec   : > { %v5626_v8 = vpop.f32.mrf.mxu0 }
  0xed   : > { %9203 = vst [vmem:[#allocation29_spill] sm:$0xff] %v5626_v8  ;;  %v957_v10 = vrot.slane %v5626_v8, 1  ;;  %v1181_v13 = vrot.slane %v5626_v8, 2 }
  0xef   : > { %v958_v11 = vsel %vm939_vm7, %v8979_v9, %v957_v10  ;;  %v5644_v24 = vsel %vm1163_vm5, %v8978_v15, %v1181_v13 }
  0xf0   : > { %1031 = vrot.lane.b32.xlu1 %v958_v11, %s8983_s26  ;;  %9204 = vst [vmem:[#allocation30_spill] sm:$0xff] %v5644_v24 }
  0xf4   : > { %v5636_v14 = vpop.f32.mrf.mxu0 }
  0xf5   : > { %v959_v16 = vrot.slane %v5636_v14, 1  ;;  %v1183_v26 = vrot.slane %v5636_v14, 2 }
  0xf7   : > { %4900 = vmatmul.msk.bf16.gmra.mxu0 %vm710_vm2, %v5168_v12  ;;  %v960_v25 = vsel %vm939_vm7, %v957_v10, %v959_v16  ;;  %v5656_v33 = vsel %vm1163_vm5, %v1181_v13, %v1183_v26 }
  0xf8   : > { %1255 = vrot.lane.b32.xlu1 %v5644_v24, %s8994_s18  ;;  %1033 = vrot.lane.b32.xlu2 %v960_v25, %s8983_s26  ;;  %9206 = vst [vmem:[#allocation32_spill] sm:$0xff] %v5656_v33 }
  0xfc   : > { %v5651_v28 = vpop.f32.mrf.mxu0 }
  0xfd   : > { %9205 = vst [vmem:[#allocation31_spill] sm:$0xff] %v5651_v28  ;;  %v1185_v29 = vrot.slane %v5651_v28, 2  ;;  %v961_v30 = vrot.slane %v5651_v28, 1 }
  0xff   : > { %v5659_v35 = vsel %vm1163_vm5, %v1183_v26, %v1185_v29  ;;  %v962_v37 = vsel %vm939_vm7, %v959_v16, %v961_v30 }
 0x100   : > { %1257 = vrot.lane.b32.xlu2 %v5656_v33, %s8994_s18  ;;  %1259 = vrot.lane.b32.xlu0 %v5659_v35, %s8994_s18 }
 0x101   : > { %1035 = vrot.lane.b32.xlu1 %v962_v37, %s8983_s26 }
 0x104   : > { %v5668_v39 = vpop.f32.mrf.mxu0 }
 0x105   : > { %v1187_v41 = vrot.slane %v5668_v39, 2  ;;  %v963_v43 = vrot.slane %v5668_v39, 1  ;;  %v8976_v13 = vrot.slane %v5668_v39, 3 }
 0x107   : > { %4901 = vmatmul.msk.bf16.gmra.mxu0 %vm710_vm2, %v5169_v38  ;;  %v5674_v44 = vsel %vm1163_vm5, %v1185_v29, %v1187_v41  ;;  %v964_v45 = vsel %vm939_vm7, %v961_v30, %v963_v43  ;;  %v5171_v30 = vld [vmem:[%s5483_s19 + $0x80] sm:$0xff] }
 0x108   : > { %1037 = vrot.lane.b32.xlu2 %v964_v45, %s8983_s26 }
 0x109   : > { %1261 = vrot.lane.b32.xlu1 %v5674_v44, %s8994_s18 }
 0x10c   : > { %v5680_v47 = vpop.f32.mrf.mxu0 }
 0x10d   : > { %9207 = vst [vmem:[#allocation33_spill] sm:$0xff] %v5680_v47  ;;  %v1189_v49 = vrot.slane %v5680_v47, 2  ;;  %v965_v51 = vrot.slane %v5680_v47, 1  ;;  %v1563_v0 = vrot.slane %v5680_v47, 3 }
 0x10f   : > { %v1190_v52 = vsel %vm1163_vm5, %v1187_v41, %v1189_v49  ;;  %v966_v53 = vsel %vm939_vm7, %v963_v43, %v965_v51  ;;  %v1564_v25 = vsel %vm1541_vm3, %v8976_v13, %v1563_v0 }
 0x110   : > { %1263 = vrot.lane.b32.xlu2 %v1190_v52, %s8994_s18  ;;  %1039 = vrot.lane.b32.xlu0 %v966_v53, %s8983_s26  ;;  %v5688_v56 = vpop.permute.xlu2 %2283 }
 0x111   : > { %9208 = vst [vmem:[#allocation34_spill] sm:$0xff] %v5688_v56 }
 0x114   : > { %v5691_v58 = vpop.f32.mrf.mxu0 }
 0x115   : > { %v1191_v61 = vrot.slane %v5691_v58, 2  ;;  %v967_v63 = vrot.slane %v5691_v58, 1  ;;  %v1565_v4 = vrot.slane %v5691_v58, 3 }
 0x117   : > { %4902 = vmatmul.msk.bf16.gmra.mxu0 %vm710_vm2, %v5170_v57  ;;  %v1192_v5 = vsel %vm1163_vm5, %v1189_v49, %v1191_v61  ;;  %v968_v6 = vsel %vm939_vm7, %v965_v51, %v967_v63  ;;  %v5701_v10 = vsel %vm1541_vm3, %v1563_v0, %v1565_v4 }
 0x118   : > { %1413 = vrot.lane.b32.xlu2 %v1190_v52, %s9198_s20  ;;  %1265 = vrot.lane.b32.xlu0 %v1192_v5, %s8994_s18  ;;  %v5705_v11 = vpop.permute.xlu2 %2506 }
 0x119   : > { %9209 = vst [vmem:[#allocation35_spill] sm:$0xff] %v5705_v11  ;;  %1041 = vrot.lane.b32.xlu1 %v968_v6, %s8983_s26 }
 0x11c   : > { %v5708_v12 = vpop.f32.mrf.mxu0 }
 0x11d   : > { %9210 = vst [vmem:[#allocation36_spill] sm:$0xff] %v5708_v12  ;;  %v1193_v16 = vrot.slane %v5708_v12, 2  ;;  %v969_v37 = vrot.slane %v5708_v12, 1  ;;  %v1567_v41 = vrot.slane %v5708_v12, 3  ;;  %v1791_v52 = vrot.slane %v5708_v12, 4 }
 0x11f   : > { %v1194_v26 = vsel %vm1163_vm5, %v1191_v61, %v1193_v16  ;;  %v970_v43 = vsel %vm939_vm7, %v967_v63, %v969_v37  ;;  %v1568_v45 = vsel %vm1541_vm3, %v1565_v4, %v1567_v41  ;;  %v8977_v61 = vrot.slane %v5691_v58, 4 }
 0x120   : > { %1637 = vrot.lane.b32.xlu2 %v1564_v25, %s9211_s28  ;;  %1415 = vrot.lane.b32.xlu0 %v1192_v5, %s9198_s20  ;;  %v5718_v29 = vpop.permute.xlu2 %1687  ;;  %v5172_v25 = vld [vmem:[%s5483_s19 + $0x88] sm:$0xff] }
 0x121   : > { %9212 = vst [vmem:[#allocation37_spill] sm:$0xff] %v5718_v29  ;;  %1267 = vrot.lane.b32.xlu1 %v1194_v26, %s8994_s18  ;;  %v5745_v0 = vsel %vm1765_vm6, %v8977_v61, %v1791_v52 }
 0x122   : > { %9216 = vst [vmem:[#allocation41_spill] sm:$0xff] %v5745_v0 }
 0x124   : > { %v5723_v38 = vpop.f32.mrf.mxu0 }
 0x125   : > { %9213 = vst [vmem:[#allocation38_spill] sm:$0xff] %v5723_v38  ;;  %v1195_v53 = vrot.slane %v5723_v38, 2  ;;  %v971_v57 = vrot.slane %v5723_v38, 1 }
 0x127   : > { %4903 = vmatmul.msk.bf16.gmra.mxu0 %vm710_vm2, %v5171_v30  ;;  %v1196_v4 = vsel %vm1163_vm5, %v1193_v16, %v1195_v53  ;;  %v972_v5 = vsel %vm939_vm7, %v969_v37, %v971_v57  ;;  %v1793_v30 = vrot.slane %v5723_v38, 4 }
 0x128   : > { %1417 = vrot.lane.b32.xlu2 %v1194_v26, %s9198_s20  ;;  %1043 = vrot.lane.b32.xlu0 %v970_v43, %s8983_s26  ;;  %v5731_v49 = vpop.permute.xlu1 %1685  ;;  %v5734_v51 = vpop.permute.xlu2 %1911  ;;  %v1569_v26 = vrot.slane %v5723_v38, 3 }
 0x129   : > { %9214 = vst [vmem:[#allocation39_spill] sm:$0xff] %v5731_v49  ;;  %1641 = vrot.lane.b32.xlu1 %v1568_v45, %s9211_s28  ;;  %v5767_v37 = vsel %vm1765_vm6, %v1791_v52, %v1793_v30  ;;  %v5819_v34 = vpop.permute.xlu0 %1461 }
 0x12a   : > { %9215 = vst [vmem:[#allocation40_spill] sm:$0xff] %v5734_v51  ;;  %v1570_v16 = vsel %vm1541_vm3, %v1567_v41, %v1569_v26 }
 0x12b   : > { %9226 = vst [vmem:[#allocation51_spill] sm:$0xff] %v5819_v34 }
 0x12c   : > { %v5740_v63 = vpop.f32.mrf.mxu0 }
 0x12d   : > { %v1571_v62 = vrot.slane %v5740_v63, 3  ;;  %v1795_v42 = vrot.slane %v5740_v63, 4  ;;  %v1197_v48 = vrot.slane %v5740_v63, 2 }
 0x130   : > { %1865 = vrot.lane.b32.xlu0 %v5745_v0, %s9005_s29  ;;  %1269 = vrot.lane.b32.xlu2 %v1196_v4, %s8994_s18  ;;  %v5752_v6 = vpop.permute.xlu1 %1909  ;;  %v5758_v43 = vpop.permute.xlu2 %2061 }
 0x131   : > { %9217 = vst [vmem:[#allocation42_spill] sm:$0xff] %v5752_v6  ;;  %1045 = vrot.lane.b32.xlu1 %v972_v5, %s8983_s26 }
 0x132   : > { %9218 = vst [vmem:[#allocation43_spill] sm:$0xff] %v5758_v43 }
 0x134   : > { %v5762_v45 = vpop.f32.mrf.mxu0 }
 0x135   : > { %v975_v41 = vrot.slane %v5762_v45, 1  ;;  %v1199_v13 = vrot.slane %v5762_v45, 2  ;;  %v1573_v32 = vrot.slane %v5762_v45, 3  ;;  %v1797_v20 = vrot.slane %v5762_v45, 4 }
 0x136   : > { %v9004_v50 = vrot.slane %v5762_v45, 5 }
 0x137   : > { %4904 = vmatmul.msk.bf16.gmra.mxu0 %vm710_vm2, %v5172_v25  ;;  %v973_v25 = vrot.slane %v5740_v63, 1  ;;  %v1200_v61 = vsel %vm1163_vm5, %v1197_v48, %v1199_v13 }
 0x138   : > { %1419 = vrot.lane.b32.xlu0 %v1196_v4, %s9198_s20  ;;  %1643 = vrot.lane.b32.xlu2 %v1570_v16, %s9211_s28  ;;  %v5769_v5 = vpop.permute.xlu1 %2059  ;;  %v5776_v3 = vpop.permute.xlu2 %2289  ;;  %v1572_v4 = vsel %vm1541_vm3, %v1569_v26, %v1571_v62  ;;  %v5790_v26 = vsel %vm1765_vm6, %v1793_v30, %v1795_v42 }
 0x139   : > { %9219 = vst [vmem:[#allocation44_spill] sm:$0xff] %v5769_v5  ;;  %1867 = vrot.lane.b32.xlu1 %v5767_v37, %s9005_s29  ;;  %v976_v16 = vsel %vm939_vm7, %v973_v25, %v975_v41  ;;  %v974_v52 = vsel %vm939_vm7, %v971_v57, %v973_v25  ;;  %v1198_v57 = vsel %vm1163_vm5, %v1195_v53, %v1197_v48 }
 0x13a   : > { %9220 = vst [vmem:[#allocation45_spill] sm:$0xff] %v5776_v3 }
 0x140   : > { %1645 = vrot.lane.b32.xlu0 %v1572_v4, %s9211_s28  ;;  %1049 = vrot.lane.b32.xlu2 %v976_v16, %s8983_s26  ;;  %v5783_v2 = vpop.permute.xlu1 %1463  ;;  %v5799_v4 = vpop.permute.xlu2 %2512 }
 0x141   : > { %9221 = vst [vmem:[#allocation46_spill] sm:$0xff] %v5783_v2  ;;  %1047 = vrot.lane.b32.xlu1 %v974_v52, %s8983_s26  ;;  %v5802_v16 = vpop.f32.mrf.mxu0 }
 0x142   : > { %9223 = vst [vmem:[#allocation48_spill] sm:$0xff] %v5799_v4  ;;  %v8987_v30 = vrot.slane %v5802_v16, 1  ;;  %v1799_v15 = vrot.slane %v5802_v16, 4  ;;  %v8988_v9 = vrot.slane %v5802_v16, 2 }
 0x144   : > { %v978_v52 = vsel %vm939_vm7, %v975_v41, %v8987_v30  ;;  %v1202_v41 = vsel %vm1163_vm5, %v1199_v13, %v8988_v9  ;;  %v1575_v30 = vrot.slane %v5802_v16, 3  ;;  %v5838_v9 = vpop.permute.xlu0 %2285 }
 0x145   : > { %9231 = vst [vmem:[#allocation55_spill] sm:$0xff] %v5838_v9 }
 0x148   : > { %1869 = vrot.lane.b32.xlu0 %v5790_v26, %s9005_s29  ;;  %1273 = vrot.lane.b32.xlu2 %v1200_v61, %s8994_s18  ;;  %v5797_v25 = vpop.permute.xlu1 %2287 }
 0x149   : > { %9222 = vst [vmem:[#allocation47_spill] sm:$0xff] %v5797_v25  ;;  %1271 = vrot.lane.b32.xlu1 %v1198_v57, %s8994_s18 }
 0x150   : > { %1423 = vrot.lane.b32.xlu2 %v1200_v61, %s9198_s20  ;;  %1051 = vrot.lane.b32.xlu0 %v978_v52, %s8983_s26  ;;  %v5811_v48 = vpop.permute.xlu1 %2510  ;;  %v1800_v61 = vsel %vm1765_vm6, %v1797_v20, %v1799_v15  ;;  %v1574_v52 = vsel %vm1541_vm3, %v1571_v62, %v1573_v32  ;;  %s9228_s26 = smov 104   ;;  %v5841_v62 = vsel %vm1765_vm6, %v1795_v42, %v1797_v20  ;;  %v5859_v42 = vpop.permute.xlu0 %2508 }
 0x151   : > { %1421 = vrot.lane.b32.xlu1 %v1198_v57, %s9198_s20  ;;  %9224 = vst [vmem:[#allocation49_spill] sm:$0xff] %v5811_v48  ;;  %v5825_v57 = vpop.f32.mrf.mxu0  ;;  %v1576_v20 = vsel %vm1541_vm3, %v1573_v32, %v1575_v30 }
 0x152   : > { %v5813_v53 = vpop.permute.xlu2 %1033  ;;  %9227 = vst [vmem:[#allocation52_spill] sm:$0xff] %v5825_v57  ;;  %v1801_v60 = vrot.slane %v5825_v57, 4  ;;  %v1203_v36 = vrot.slane %v5825_v57, 2 }
 0x153   : > { %9225 = vst [vmem:[#allocation50_spill] sm:$0xff] %v5813_v53  ;;  %v1577_v53 = vrot.slane %v5825_v57, 3 }
 0x154   : > { %v1802_v17 = vsel %vm1765_vm6, %v1799_v15, %v1801_v60  ;;  %9235 = vst [vmem:[#allocation59_spill] sm:$0xff] %v5859_v42 }
 0x155   : > { %v1578_v13 = vsel %vm1541_vm3, %v1575_v30, %v1577_v53 }
 0x158   : > { %2023 = vrot.lane.b32.xlu2 %v1800_v61, %s9228_s26  ;;  %1275 = vrot.lane.b32.xlu0 %v1202_v41, %s8994_s18  ;;  %v5833_v23 = vpop.permute.xlu1 %2065  ;;  %s9239_s18 = smov 100   ;;  %v5877_v30 = vpop.permute.xlu0 %2063 }
 0x159   : > { %1647 = vrot.lane.b32.xlu1 %v1574_v52, %s9211_s28  ;;  %9230 = vst [vmem:[#allocation54_spill] sm:$0xff] %v5833_v23 }
 0x15a   : > { %v5831_v21 = vpop.permute.xlu2 %1257  ;;  %9240 = vst [vmem:[#allocation63_spill] sm:$0xff] %v5877_v30 }
 0x15b   : > { %9229 = vst [vmem:[#allocation53_spill] sm:$0xff] %v5831_v21  ;;  %v5849_v21 = vpop.f32.mrf.mxu0 }
 0x15c   : > { %9233 = vst [vmem:[#allocation57_spill] sm:$0xff] %v5849_v21  ;;  %v9011_v8 = vrot.slane %v5849_v21, 5 }
 0x160   : > { %1425 = vrot.lane.b32.xlu0 %v1202_v41, %s9198_s20  ;;  %1651 = vrot.lane.b32.xlu2 %v1578_v13, %s9211_s28  ;;  %v2173_v13 = vrot.slane %v5802_v16, 5 }
 0x161   : > { %1871 = vrot.lane.b32.xlu1 %v5841_v62, %s9005_s29 }
 0x162   : > { %v5847_v52 = vpop.permute.xlu2 %1037  ;;  %v5852_v55 = vpop.permute.xlu1 %1031 }
 0x163   : > { %9232 = vst [vmem:[#allocation56_spill] sm:$0xff] %v5847_v52  ;;  %v2175_v52 = vrot.slane %v5825_v57, 5  ;;  %v5866_v19 = vpop.f32.mrf.mxu0 }
 0x164   : > { %9234 = vst [vmem:[#allocation58_spill] sm:$0xff] %v5852_v55  ;;  %v9001_v55 = vrot.slane %v5849_v21, 3  ;;  %v2402_v9 = vrot.slane %v5866_v19, 6 }
 0x165   : > { %9237 = vst [vmem:[#allocation61_spill] sm:$0xff] %v5866_v19  ;;  %v2176_v32 = vsel %vm2143_vm4, %v2173_v13, %v2175_v52 }
 0x168   : > { %2025 = vrot.lane.b32.xlu0 %v1802_v17, %s9228_s26  ;;  %1875 = vrot.lane.b32.xlu2 %v1802_v17, %s9005_s29  ;;  %v1580_v17 = vsel %vm1541_vm3, %v1577_v53, %v9001_v55 }
 0x169   : > { %1649 = vrot.lane.b32.xlu1 %v1576_v20, %s9211_s28 }
 0x16a   : > { %v5861_v41 = vpop.permute.xlu2 %1263  ;;  %v5868_v15 = vpop.permute.xlu1 %1255 }
 0x16b   : > { %9236 = vst [vmem:[#allocation60_spill] sm:$0xff] %v5861_v41  ;;  %v9002_v41 = vrot.slane %v5849_v21, 4  ;;  %v5885_v27 = vpop.f32.mrf.mxu0 }
 0x16c   : > { %9238 = vst [vmem:[#allocation62_spill] sm:$0xff] %v5868_v15  ;;  %v1205_v15 = vrot.slane %v5849_v21, 2  ;;  %v985_v11 = vrot.slane %v5885_v27, 1  ;;  %v1209_v3 = vrot.slane %v5885_v27, 2 }
 0x16d   : > { %9242 = vst [vmem:[#allocation65_spill] sm:$0xff] %v5885_v27  ;;  %v1804_v53 = vsel %vm1765_vm6, %v1801_v60, %v9002_v41  ;;  %v981_v60 = vrot.slane %v5849_v21, 1  ;;  %v979_v41 = vrot.slane %v5825_v57, 1 }
 0x16f   : > { %v982_v40 = vsel %vm939_vm7, %v979_v41, %v981_v60 }
 0x170   : > { %2249 = vrot.lane.b32.xlu2 %v2176_v32, %s9239_s18  ;;  %1653 = vrot.lane.b32.xlu0 %v1580_v17, %s9211_s28  ;;  %v2174_v32 = vsel %vm2143_vm4, %v9004_v50, %v2173_v13  ;;  %v9246_v13 = vrot.slane %v5802_v16, 1 }
 0x171   : > { %1873 = vrot.lane.b32.xlu1 %v1800_v61, %s9005_s29  ;;  %v5891_v61 = vsel %vm1163_vm5, %v1203_v36, %v1205_v15 }
 0x172   : > { %v5879_v20 = vpop.permute.xlu2 %1413  ;;  %v5902_v55 = vpop.permute.xlu0 %1259  ;;  %v980_v50 = vsel %vm939_vm7, %v9246_v13, %v979_v41  ;;  %v1805_v41 = vrot.slane %v5866_v19, 4 }
 0x173   : > { %9241 = vst [vmem:[#allocation64_spill] sm:$0xff] %v5879_v20  ;;  %v5899_v17 = vpop.permute.xlu1 %1035 }
 0x174   : > { %9243 = vst [vmem:[#allocation66_spill] sm:$0xff] %v5899_v17  ;;  %v5914_v17 = vpop.f32.mrf.mxu0 }
 0x175   : > { %9244 = vst [vmem:[#allocation67_spill] sm:$0xff] %v5902_v55  ;;  %v9020_v4 = vrot.slane %v5914_v17, 1 }
 0x176   : > { %9248 = vst [vmem:[#allocation69_spill] sm:$0xff] %v5914_v17 }
 0x178   : > { %1877 = vrot.lane.b32.xlu0 %v1804_v53, %s9005_s29  ;;  %1429 = vrot.lane.b32.xlu2 %v5891_v61, %s9198_s20  ;;  %s9247_s29 = smov 124  }
 0x179   : > { %2247 = vrot.lane.b32.xlu1 %v2174_v32, %s9239_s18  ;;  %v9010_v32 = vrot.slane %v5885_v27, 4 }
 0x17a   : > { %v5904_v20 = vpop.permute.xlu2 %1637 }
 0x17b   : > { %9245 = vst [vmem:[#allocation68_spill] sm:$0xff] %v5904_v20  ;;  %v5922_v24 = vpop.permute.xlu1 %1261 }
 0x17c   : > { %9251 = vst [vmem:[#allocation72_spill] sm:$0xff] %v5922_v24  ;;  %v9014_v24 = vrot.slane %v5885_v27, 5 }
 0x180   : > { %2027 = vrot.lane.b32.xlu0 %v1804_v53, %s9228_s26  ;;  %1055 = vrot.lane.b32.xlu2 %v982_v40, %s9247_s29  ;;  %v5929_v40 = vsel %vm1765_vm6, %v1805_v41, %v9010_v32  ;;  %v9253_v53 = vrot.slane %v5802_v16, 2 }
 0x181   : > { %1053 = vrot.lane.b32.xlu1 %v980_v50, %s9247_s29  ;;  %9252 = vst [vmem:[#allocation73_spill] sm:$0xff] %v5929_v40  ;;  %v2178_v50 = vsel %vm2143_vm4, %v2175_v52, %v9011_v8  ;;  %v9016_v52 = vrot.slane %v5849_v21, 6  ;;  %v2179_v8 = vrot.slane %v5866_v19, 5 }
 0x182   : > { %v5918_v20 = vpop.permute.xlu0 %1039  ;;  %v5920_v55 = vpop.permute.xlu2 %1417  ;;  %v1204_v13 = vsel %vm1163_vm5, %v9253_v53, %v1203_v36 }
 0x183   : > { %9249 = vst [vmem:[#allocation70_spill] sm:$0xff] %v5918_v20  ;;  %v5950_v36 = vpop.f32.mrf.mxu0  ;;  %v2182_v53 = vsel %vm2143_vm4, %v2179_v8, %v9014_v24  ;;  %v1207_v24 = vrot.slane %v5866_v19, 2 }
 0x184   : > { %9250 = vst [vmem:[#allocation71_spill] sm:$0xff] %v5920_v55 }
 0x185   : > { %9258 = vst [vmem:[#allocation77_spill] sm:$0xff] %v5950_v36 }
 0x188   : > { %2251 = vrot.lane.b32.xlu0 %v2178_v50, %s9239_s18  ;;  %2031 = vrot.lane.b32.xlu2 %v5929_v40, %s9228_s26  ;;  %v9015_v50 = vrot.slane %v5825_v57, 6 }
 0x189   : > { %1277 = vrot.lane.b32.xlu1 %v1204_v13, %s9254_s1 }
 0x18a   : > { %v5942_v55 = vpop.permute.xlu0 %1265  ;;  %v5944_v32 = vpop.permute.xlu2 %1269 }
 0x18b   : > { %9255 = vst [vmem:[#allocation74_spill] sm:$0xff] %v5942_v55  ;;  %v5946_v20 = vpop.permute.xlu1 %1041  ;;  %v2401_v55 = vsel %vm778_vm1, %v9015_v50, %v9016_v52  ;;  %v9018_v50 = vrot.slane %v5866_v19, 3  ;;  %v9264_v52 = vrot.slane %v5849_v21, 3 }
 0x18c   : > { %9256 = vst [vmem:[#allocation75_spill] sm:$0xff] %v5944_v32 }
 0x18d   : > { %9257 = vst [vmem:[#allocation76_spill] sm:$0xff] %v5946_v20  ;;  %v9017_v20 = vrot.slane %v5885_v27, 6 }
 0x190   : > { %2474 = vrot.lane.b32.xlu0 %v2401_v55, %s9259_s30  ;;  %2255 = vrot.lane.b32.xlu2 %v2182_v53, %s9239_s18  ;;  %v2405_v55 = vsel %vm778_vm1, %v2402_v9, %v9017_v20  ;;  %v5977_v53 = vpop.f32.mrf.mxu0 }
 0x191   : > { %1427 = vrot.lane.b32.xlu1 %v1204_v13, %s9198_s20  ;;  %9263 = vst [vmem:[#allocation81_spill] sm:$0xff] %v5977_v53  ;;  %v5980_v13 = vsel %vm1163_vm5, %v1205_v15, %v1207_v24  ;;  %v983_v15 = vrot.slane %v5866_v19, 1  ;;  %v9042_v32 = vrot.slane %v5977_v53, 3 }
 0x192   : > { %v5965_v40 = vpop.permute.xlu0 %1415  ;;  %v5967_v42 = vpop.permute.xlu2 %1643 }
 0x193   : > { %9260 = vst [vmem:[#allocation78_spill] sm:$0xff] %v5965_v40  ;;  %v5969_v31 = vpop.permute.xlu1 %1267  ;;  %v1582_v40 = vsel %vm1541_vm3, %v9264_v52, %v9018_v50  ;;  %v984_v52 = vsel %vm939_vm7, %v981_v60, %v983_v15 }
 0x194   : > { %9261 = vst [vmem:[#allocation79_spill] sm:$0xff] %v5967_v42 }
 0x195   : > { %9262 = vst [vmem:[#allocation80_spill] sm:$0xff] %v5969_v31 }
 0x198   : > { %1431 = vrot.lane.b32.xlu0 %v5980_v13, %s9198_s20  ;;  %2478 = vrot.lane.b32.xlu2 %v2405_v55, %s9259_s30  ;;  %v988_v55 = vsel %vm939_vm7, %v985_v11, %v9020_v4  ;;  %v6004_v50 = vpop.f32.mrf.mxu0 }
 0x199   : > { %1655 = vrot.lane.b32.xlu1 %v1582_v40, %s9211_s28  ;;  %9267 = vst [vmem:[#allocation84_spill] sm:$0xff] %v6004_v50  ;;  %v9268_v40 = vrot.slane %v5849_v21, 4  ;;  %v9021_v60 = vrot.slane %v6004_v50, 1  ;;  %v9030_v6 = vrot.slane %v6004_v50, 3 }
 0x19a   : > { %v5991_v42 = vpop.permute.xlu0 %1043  ;;  %v5993_v20 = vpop.permute.xlu2 %1049 }
 0x19b   : > { %9265 = vst [vmem:[#allocation82_spill] sm:$0xff] %v5991_v42  ;;  %v5995_v43 = vpop.permute.xlu1 %1641  ;;  %v1806_v48 = vsel %vm1765_vm6, %v9268_v40, %v1805_v41  ;;  %v9023_v40 = vrot.slane %v6004_v50, 2 }
 0x19c   : > { %9266 = vst [vmem:[#allocation83_spill] sm:$0xff] %v5995_v43  ;;  %v9022_v43 = vrot.slane %v5977_v53, 1 }
 0x19e   : > { %v994_v41 = vsel %vm939_vm7, %v9022_v43, %v9021_v60  ;;  %v9278_v43 = vrot.slane %v5849_v21, 5 }
 0x1a0   : > { %1057 = vrot.lane.b32.xlu0 %v984_v52, %s9247_s29  ;;  %1061 = vrot.lane.b32.xlu2 %v988_v55, %s9247_s29  ;;  %v6027_v52 = vsel %vm1163_vm5, %v1207_v24, %v1209_v3  ;;  %v9024_v55 = vrot.slane %v5977_v53, 2  ;;  %v9025_v24 = vrot.slane %v5914_v17, 4 }
 0x1a1   : > { %1879 = vrot.lane.b32.xlu1 %v1806_v48, %s9269_s23  ;;  %9272 = vst [vmem:[#allocation87_spill] sm:$0xff] %v6027_v52 }
 0x1a2   : > { %v6014_v56 = vpop.permute.xlu0 %1865  ;;  %v6016_v25 = vpop.permute.xlu2 %1273 }
 0x1a3   : > { %9270 = vst [vmem:[#allocation85_spill] sm:$0xff] %v6014_v56  ;;  %v6018_v4 = vpop.permute.xlu1 %1045 }
 0x1a4   : > { %9271 = vst [vmem:[#allocation86_spill] sm:$0xff] %v6018_v4 }
 0x1a8   : > { %1283 = vrot.lane.b32.xlu0 %v6027_v52, %s9254_s1  ;;  %1067 = vrot.lane.b32.xlu2 %v994_v41, %s9247_s29  ;;  %v1218_v41 = vsel %vm1163_vm5, %v9024_v55, %v9023_v40 }
 0x1a9   : > { %2029 = vrot.lane.b32.xlu1 %v1806_v48, %s9228_s26  ;;  %v9276_v48 = vrot.slane %v5885_v27, 4 }
 0x1aa   : > { %v6035_v56 = vpop.permute.xlu0 %1419  ;;  %v6037_v30 = vpop.permute.xlu2 %1423 }
 0x1ab   : > { %9273 = vst [vmem:[#allocation88_spill] sm:$0xff] %v6035_v56  ;;  %v6039_v5 = vpop.permute.xlu1 %1867  ;;  %v6052_v60 = vsel %vm1765_vm6, %v9276_v48, %v9025_v24  ;;  %v2180_v56 = vsel %vm2143_vm4, %v9278_v43, %v2179_v8  ;;  %v9028_v48 = vrot.slane %v5914_v17, 5  ;;  %v6068_v24 = vpop.f32.mrf.mxu0  ;;  %v9281_v8 = vrot.slane %v5885_v27, 5 }
 0x1ac   : > { %9274 = vst [vmem:[#allocation89_spill] sm:$0xff] %v6037_v30  ;;  %v9029_v23 = vrot.slane %v6068_v24, 3 }
 0x1ad   : > { %9275 = vst [vmem:[#allocation90_spill] sm:$0xff] %v6039_v5  ;;  %v2184_v43 = vsel %vm2143_vm4, %v9281_v8, %v9028_v48  ;;  %v9032_v8 = vrot.slane %v5914_v17, 6  ;;  %v1219_v48 = vrot.slane %v6068_v24, 2 }
 0x1ae   : > { %9277 = vst [vmem:[#allocation91_spill] sm:$0xff] %v6052_v60 }
 0x1b0   : > { %2033 = vrot.lane.b32.xlu0 %v6052_v60, %s9228_s26  ;;  %1291 = vrot.lane.b32.xlu2 %v1218_v41, %s9254_s1  ;;  %v9282_v60 = vrot.slane %v5849_v21, 6 }
 0x1b1   : > { %2253 = vrot.lane.b32.xlu1 %v2180_v56, %s9239_s18 }
 0x1b2   : > { %v6061_v5 = vpop.permute.xlu0 %1645  ;;  %v6063_v40 = vpop.permute.xlu2 %2023  ;;  %v2403_v56 = vsel %vm778_vm1, %v9282_v60, %v2402_v9  ;;  %v1594_v9 = vsel %vm1541_vm3, %v9030_v6, %v9029_v23 }
 0x1b3   : > { %9279 = vst [vmem:[#allocation92_spill] sm:$0xff] %v6061_v5  ;;  %v6065_v55 = vpop.permute.xlu1 %1047  ;;  %v6095_v60 = vpop.f32.mrf.mxu0  ;;  %v9292_v5 = vrot.slane %v5977_v53, 1 }
 0x1b4   : > { %9280 = vst [vmem:[#allocation93_spill] sm:$0xff] %v6063_v40  ;;  %v1221_v23 = vrot.slane %v6095_v60, 2  ;;  %v1819_v54 = vrot.slane %v6095_v60, 4 }
 0x1b8   : > { %2257 = vrot.lane.b32.xlu0 %v2184_v43, %s9239_s18  ;;  %1441 = vrot.lane.b32.xlu2 %v1218_v41, %s9198_s20  ;;  %v9286_v41 = vrot.slane %v5885_v27, 6 }
 0x1b9   : > { %2476 = vrot.lane.b32.xlu1 %v2403_v56, %s9259_s30  ;;  %v986_v56 = vsel %vm939_vm7, %v983_v15, %v985_v11  ;;  %v1211_v11 = vrot.slane %v5914_v17, 2  ;;  %v1222_v15 = vsel %vm1163_vm5, %v1219_v48, %v1221_v23 }
 0x1ba   : > { %v6083_v0 = vpop.permute.xlu0 %1869  ;;  %v6085_v49 = vpop.permute.xlu2 %1651  ;;  %v2407_v43 = vsel %vm778_vm1, %v9286_v41, %v9032_v8  ;;  %v989_v41 = vrot.slane %v5950_v36, 1 }
 0x1bb   : > { %9283 = vst [vmem:[#allocation94_spill] sm:$0xff] %v6083_v0  ;;  %v6087_v34 = vpop.permute.xlu1 %1271  ;;  %v6123_v8 = vsel %vm1163_vm5, %v1209_v3, %v1211_v11 }
 0x1bc   : > { %9284 = vst [vmem:[#allocation95_spill] sm:$0xff] %v6085_v49  ;;  %v992_v46 = vsel %vm939_vm7, %v989_v41, %v9292_v5 }
 0x1bd   : > { %9285 = vst [vmem:[#allocation96_spill] sm:$0xff] %v6087_v34 }
 0x1c0   : > { %2480 = vrot.lane.b32.xlu0 %v2407_v43, %s9259_s30  ;;  %1667 = vrot.lane.b32.xlu2 %v1594_v9, %s9211_s28  ;;  %v9289_v9 = vrot.slane %v5914_v17, 1 }
 0x1c1   : > { %1059 = vrot.lane.b32.xlu1 %v986_v56, %s9247_s29  ;;  %v6120_v56 = vpop.f32.mrf.mxu0 }
 0x1c2   : > { %v6108_v6 = vpop.permute.xlu0 %1051  ;;  %v6110_v21 = vpop.permute.xlu2 %1875  ;;  %v990_v43 = vsel %vm939_vm7, %v9289_v9, %v989_v41  ;;  %v1223_v40 = vrot.slane %v6120_v56, 2  ;;  %v1213_v9 = vrot.slane %v5950_v36, 2  ;;  %v9038_v33 = vrot.slane %v6120_v56, 3 }
 0x1c3   : > { %9287 = vst [vmem:[#allocation97_spill] sm:$0xff] %v6110_v21  ;;  %v6112_v51 = vpop.permute.xlu1 %1421  ;;  %v999_v19 = vrot.slane %v6120_v56, 1 }
 0x1c4   : > { %9288 = vst [vmem:[#allocation98_spill] sm:$0xff] %v6112_v51  ;;  %v6138_v3 = vsel %vm1163_vm5, %v1221_v23, %v1223_v40 }
 0x1c8   : > { %1063 = vrot.lane.b32.xlu0 %v990_v43, %s9247_s29  ;;  %1295 = vrot.lane.b32.xlu2 %v1222_v15, %s9254_s1  ;;  %v1214_v43 = vsel %vm1163_vm5, %v1211_v11, %v1213_v9 }
 0x1c9   : > { %1285 = vrot.lane.b32.xlu1 %v6123_v8, %s9254_s1  ;;  %v6159_v5 = vpop.f32.mrf.mxu0 }
 0x1ca   : > { %v6130_v29 = vpop.permute.xlu0 %1275  ;;  %v6132_v0 = vpop.permute.xlu2 %2249 }
 0x1cb   : > { %9290 = vst [vmem:[#allocation99_spill] sm:$0xff] %v6132_v0  ;;  %v6134_v2 = vpop.permute.xlu1 %1647  ;;  %v1595_v0 = vrot.slane %v6095_v60, 3 }
 0x1cc   : > { %9291 = vst [vmem:[#allocation100_spill] sm:$0xff] %v6134_v2 }
 0x1cd   : > { %v1598_v51 = vsel %vm1541_vm3, %v1595_v0, %v9038_v33 }
 0x1d0   : > { %1287 = vrot.lane.b32.xlu0 %v1214_v43, %s9254_s1  ;;  %1447 = vrot.lane.b32.xlu2 %v6138_v3, %s9198_s20 }
 0x1d1   : > { %1065 = vrot.lane.b32.xlu1 %v992_v46, %s9247_s29  ;;  %v9295_v46 = vrot.slane %v5977_v53, 2 }
 0x1d2   : > { %v6150_v52 = vpop.permute.xlu0 %1425  ;;  %v6152_v23 = vpop.permute.xlu2 %1429 }
 0x1d3   : > { %9293 = vst [vmem:[#allocation101_spill] sm:$0xff] %v6150_v52  ;;  %v6154_v11 = vpop.permute.xlu1 %1871  ;;  %v1216_v41 = vsel %vm1163_vm5, %v1213_v9, %v9295_v46 }
 0x1d4   : > { %9294 = vst [vmem:[#allocation102_spill] sm:$0xff] %v6154_v11  ;;  %v9041_v11 = vrot.slane %v6159_v5, 1 }
 0x1d6   : > { %v1002_v9 = vsel %vm939_vm7, %v999_v19, %v9041_v11 }
 0x1d8   : > { %1437 = vrot.lane.b32.xlu0 %v1214_v43, %s9198_s20  ;;  %1671 = vrot.lane.b32.xlu2 %v1598_v51, %s9211_s28  ;;  %v995_v43 = vrot.slane %v6068_v24, 1  ;;  %v9299_v51 = vrot.slane %v6004_v50, 1 }
 0x1d9   : > { %1289 = vrot.lane.b32.xlu1 %v1216_v41, %s9254_s1 }
 0x1da   : > { %v6169_v2 = vpop.permute.xlu0 %2025  ;;  %v6171_v31 = vpop.permute.xlu2 %1055  ;;  %v996_v46 = vsel %vm939_vm7, %v9299_v51, %v995_v43  ;;  %v9302_v51 = vrot.slane %v6004_v50, 2 }
 0x1db   : > { %9296 = vst [vmem:[#allocation103_spill] sm:$0xff] %v6169_v2  ;;  %v6173_v33 = vpop.permute.xlu1 %1649 }
 0x1dc   : > { %9297 = vst [vmem:[#allocation104_spill] sm:$0xff] %v6171_v31  ;;  %v1225_v31 = vrot.slane %v6159_v5, 2 }
 0x1dd   : > { %9298 = vst [vmem:[#allocation105_spill] sm:$0xff] %v6173_v33 }
 0x1de   : > { %v1226_v11 = vsel %vm1163_vm5, %v1223_v40, %v1225_v31  ;;  %v9043_v40 = vrot.slane %v6159_v5, 4 }
 0x1e0   : > { %1069 = vrot.lane.b32.xlu0 %v996_v46, %s9247_s29  ;;  %1075 = vrot.lane.b32.xlu2 %v1002_v9, %s9247_s29  ;;  %v1220_v46 = vsel %vm1163_vm5, %v9302_v51, %v1219_v48  ;;  %v9303_v9 = vrot.slane %v6004_v50, 3  ;;  %v1821_v48 = vrot.slane %v6120_v56, 4 }
 0x1e1   : > { %1439 = vrot.lane.b32.xlu1 %v1216_v41, %s9198_s20 }
 0x1e2   : > { %v6186_v2 = vpop.permute.xlu0 %1653  ;;  %v6188_v30 = vpop.permute.xlu2 %2031  ;;  %v1592_v41 = vsel %vm1541_vm3, %v9042_v32, %v9303_v9  ;;  %v1824_v51 = vsel %vm1765_vm6, %v1821_v48, %v9043_v40  ;;  %v9309_v40 = vrot.slane %v6068_v24, 3 }
 0x1e3   : > { %9300 = vst [vmem:[#allocation106_spill] sm:$0xff] %v6188_v30  ;;  %v6190_v27 = vpop.permute.xlu1 %1873  ;;  %v6216_v9 = vpop.f32.mrf.mxu0 }
 0x1e4   : > { %9301 = vst [vmem:[#allocation107_spill] sm:$0xff] %v6190_v27 }
 0x1e8   : > { %1293 = vrot.lane.b32.xlu0 %v1220_v46, %s9254_s1  ;;  %1299 = vrot.lane.b32.xlu2 %v1226_v11, %s9254_s1 }
 0x1e9   : > { %1665 = vrot.lane.b32.xlu1 %v1592_v41, %s9211_s28 }
 0x1ea   : > { %v6206_v27 = vpop.permute.xlu0 %1877  ;;  %v6208_v42 = vpop.permute.xlu2 %2255 }
 0x1eb   : > { %9304 = vst [vmem:[#allocation108_spill] sm:$0xff] %v6206_v27  ;;  %v6210_v30 = vpop.permute.xlu1 %2247  ;;  %v6229_v21 = vpop.f32.mrf.mxu0  ;;  %v9332_v27 = vrot.slane %v6159_v5, 4 }
 0x1ec   : > { %9305 = vst [vmem:[#allocation109_spill] sm:$0xff] %v6208_v42 }
 0x1ed   : > { %9306 = vst [vmem:[#allocation110_spill] sm:$0xff] %v6210_v30  ;;  %v997_v30 = vrot.slane %v6095_v60, 1 }
 0x1ef   : > { %v998_v33 = vsel %vm939_vm7, %v995_v43, %v997_v30 }
 0x1f0   : > { %1443 = vrot.lane.b32.xlu0 %v1220_v46, %s9198_s20  ;;  %1897 = vrot.lane.b32.xlu2 %v1824_v51, %s9269_s23  ;;  %v1596_v46 = vsel %vm1541_vm3, %v9309_v40, %v1595_v0  ;;  %v9045_v0 = vrot.slane %v6068_v24, 4 }
 0x1f1   : > { %1445 = vrot.lane.b32.xlu1 %v1222_v15, %s9198_s20  ;;  %v1227_v15 = vrot.slane %v6216_v9, 2 }
 0x1f2   : > { %v6221_v41 = vpop.permute.xlu0 %2027  ;;  %v6223_v32 = vpop.permute.xlu2 %2478  ;;  %v6251_v40 = vsel %vm1765_vm6, %v9045_v0, %v1819_v54  ;;  %v6267_v0 = vsel %vm1765_vm6, %v1819_v54, %v1821_v48 }
 0x1f3   : > { %9307 = vst [vmem:[#allocation111_spill] sm:$0xff] %v6221_v41  ;;  %v6225_v42 = vpop.permute.xlu1 %1053  ;;  %v6298_v4 = vpop.f32.mrf.mxu0 }
 0x1f4   : > { %9308 = vst [vmem:[#allocation112_spill] sm:$0xff] %v6223_v32  ;;  %v1229_v32 = vrot.slane %v6229_v21, 2 }
 0x1f8   : > { %1071 = vrot.lane.b32.xlu0 %v998_v33, %s9247_s29  ;;  %2047 = vrot.lane.b32.xlu2 %v1824_v51, %s9228_s26  ;;  %v1230_v33 = vsel %vm1163_vm5, %v1227_v15, %v1229_v32  ;;  %v1000_v51 = vsel %vm939_vm7, %v997_v30, %v999_v19  ;;  %v9046_v19 = vrot.slane %v6229_v21, 4 }
 0x1f9   : > { %1669 = vrot.lane.b32.xlu1 %v1596_v46, %s9211_s28 }
 0x1fa   : > { %v6239_v41 = vpop.permute.xlu0 %2251  ;;  %v6241_v52 = vpop.permute.xlu2 %1061 }
 0x1fb   : > { %9310 = vst [vmem:[#allocation113_spill] sm:$0xff] %v6239_v41  ;;  %v6243_v43 = vpop.permute.xlu1 %1277  ;;  %v6355_v34 = vpop.f32.mrf.mxu0 }
 0x1fc   : > { %9311 = vst [vmem:[#allocation114_spill] sm:$0xff] %v6241_v52 }
 0x1fd   : > { %9312 = vst [vmem:[#allocation115_spill] sm:$0xff] %v6243_v43  ;;  %v9054_v43 = vrot.slane %v6355_v34, 3 }
 0x200   : > { %1893 = vrot.lane.b32.xlu0 %v6251_v40, %s9269_s23  ;;  %1303 = vrot.lane.b32.xlu2 %v1230_v33, %s9254_s1 }
 0x201   : > { %1073 = vrot.lane.b32.xlu1 %v1000_v51, %s9247_s29 }
 0x202   : > { %v6258_v46 = vpop.permute.xlu0 %2474  ;;  %v6260_v52 = vpop.permute.xlu2 %1067 }
 0x203   : > { %9313 = vst [vmem:[#allocation116_spill] sm:$0xff] %v6258_v46  ;;  %v6262_v41 = vpop.permute.xlu1 %1427  ;;  %v1825_v46 = vrot.slane %v6216_v9, 4 }
 0x204   : > { %9314 = vst [vmem:[#allocation117_spill] sm:$0xff] %v6260_v52 }
 0x205   : > { %v1828_v54 = vsel %vm1765_vm6, %v1825_v46, %v9046_v19  ;;  %v9321_v19 = vrot.slane %v6120_v56, 3 }
 0x208   : > { %1297 = vrot.lane.b32.xlu0 %v6138_v3, %s9254_s1  ;;  %1453 = vrot.lane.b32.xlu2 %v1230_v33, %s9198_s20  ;;  %v1228_v3 = vsel %vm1163_vm5, %v1225_v31, %v1227_v15  ;;  %v9049_v15 = vrot.slane %v6298_v4, 2 }
 0x209   : > { %1895 = vrot.lane.b32.xlu1 %v6267_v0, %s9269_s23 }
 0x20a   : > { %v6273_v30 = vpop.permute.xlu0 %1431  ;;  %v6275_v51 = vpop.permute.xlu2 %1291 }
 0x20b   : > { %9315 = vst [vmem:[#allocation118_spill] sm:$0xff] %v6273_v30  ;;  %v6277_v52 = vpop.permute.xlu1 %1655  ;;  %v1601_v30 = vrot.slane %v6216_v9, 3 }
 0x20c   : > { %9316 = vst [vmem:[#allocation119_spill] sm:$0xff] %v6275_v51 }
 0x20d   : > { %9317 = vst [vmem:[#allocation120_spill] sm:$0xff] %v6277_v52  ;;  %v1599_v52 = vrot.slane %v6159_v5, 3 }
 0x20f   : > { %v1602_v31 = vsel %vm1541_vm3, %v1599_v52, %v1601_v30 }
 0x210   : > { %1449 = vrot.lane.b32.xlu0 %v1226_v11, %s9198_s20  ;;  %1901 = vrot.lane.b32.xlu2 %v1828_v54, %s9269_s23  ;;  %v1600_v11 = vsel %vm1541_vm3, %v9321_v19, %v1599_v52  ;;  %v1003_v19 = vrot.slane %v6216_v9, 1  ;;  %v6316_v52 = vsel %vm1163_vm5, %v1229_v32, %v9049_v15  ;;  %v1605_v32 = vrot.slane %v6298_v4, 3 }
 0x211   : > { %1451 = vrot.lane.b32.xlu1 %v1228_v3, %s9198_s20  ;;  %v9050_v15 = vrot.slane %v6216_v9, 5 }
 0x212   : > { %v6287_v48 = vpop.permute.xlu0 %1057  ;;  %v6289_v33 = vpop.permute.xlu2 %1441 }
 0x213   : > { %9318 = vst [vmem:[#allocation121_spill] sm:$0xff] %v6287_v48  ;;  %v6291_v51 = vpop.permute.xlu1 %1879 }
 0x214   : > { %9319 = vst [vmem:[#allocation122_spill] sm:$0xff] %v6289_v33 }
 0x215   : > { %9320 = vst [vmem:[#allocation123_spill] sm:$0xff] %v6291_v51  ;;  %v1603_v51 = vrot.slane %v6229_v21, 3 }
 0x218   : > { %1673 = vrot.lane.b32.xlu0 %v1600_v11, %s9211_s28  ;;  %2051 = vrot.lane.b32.xlu2 %v1828_v54, %s9228_s26  ;;  %v1604_v54 = vsel %vm1541_vm3, %v1601_v30, %v1603_v51  ;;  %v9325_v11 = vrot.slane %v6159_v5, 1  ;;  %v2201_v30 = vrot.slane %v6229_v21, 5 }
 0x219   : > { %1675 = vrot.lane.b32.xlu1 %v1602_v31, %s9211_s28 }
 0x21a   : > { %v6305_v48 = vpop.permute.xlu0 %1283  ;;  %v6307_v33 = vpop.permute.xlu2 %1667  ;;  %v1004_v31 = vsel %vm939_vm7, %v9325_v11, %v1003_v19  ;;  %v1606_v11 = vsel %vm1541_vm3, %v1603_v51, %v1605_v32  ;;  %v2424_v51 = vrot.slane %v6229_v21, 6 }
 0x21b   : > { %9322 = vst [vmem:[#allocation124_spill] sm:$0xff] %v6305_v48  ;;  %v6310_v12 = vpop.permute.xlu1 %2029 }
 0x21c   : > { %9323 = vst [vmem:[#allocation125_spill] sm:$0xff] %v6307_v33 }
 0x21d   : > { %9324 = vst [vmem:[#allocation126_spill] sm:$0xff] %v6310_v12 }
 0x220   : > { %1077 = vrot.lane.b32.xlu0 %v1004_v31, %s9247_s29  ;;  %1305 = vrot.lane.b32.xlu2 %v6316_v52, %s9254_s1 }
 0x221   : > { %1677 = vrot.lane.b32.xlu1 %v1604_v54, %s9211_s28  ;;  %v2202_v54 = vsel %vm2143_vm4, %v9050_v15, %v2201_v30  ;;  %v1826_v15 = vsel %vm1765_vm6, %v9332_v27, %v1825_v46  ;;  %v1233_v27 = vrot.slane %v6355_v34, 2  ;;  %v1007_v46 = vrot.slane %v6298_v4, 1 }
 0x222   : > { %v6326_v48 = vpop.permute.xlu0 %2033  ;;  %v6328_v33 = vpop.permute.xlu2 %1295 }
 0x223   : > { %9326 = vst [vmem:[#allocation127_spill] sm:$0xff] %v6326_v48  ;;  %v6330_v12 = vpop.permute.xlu1 %2253 }
 0x224   : > { %9327 = vst [vmem:[#allocation128_spill] sm:$0xff] %v6328_v33 }
 0x225   : > { %9328 = vst [vmem:[#allocation129_spill] sm:$0xff] %v6330_v12  ;;  %v2203_v12 = vrot.slane %v6298_v4, 5 }
 0x228   : > { %1301 = vrot.lane.b32.xlu0 %v1228_v3, %s9254_s1  ;;  %1679 = vrot.lane.b32.xlu2 %v1606_v11, %s9211_s28  ;;  %v9052_v3 = vrot.slane %v6298_v4, 6  ;;  %v2204_v11 = vsel %vm2143_vm4, %v2201_v30, %v2203_v12  ;;  %v1009_v30 = vrot.slane %v6355_v34, 1 }
 0x229   : > { %2275 = vrot.lane.b32.xlu1 %v2202_v54, %s9239_s18 }
 0x22a   : > { %v6342_v31 = vpop.permute.xlu0 %2257  ;;  %v6344_v33 = vpop.permute.xlu2 %1447  ;;  %v2427_v54 = vsel %vm778_vm1, %v2424_v51, %v9052_v3  ;;  %v1010_v22 = vsel %vm939_vm7, %v1007_v46, %v1009_v30  ;;  %v9336_v3 = vrot.slane %v5511_v18, 2 }
 0x22b   : > { %9329 = vst [vmem:[#allocation130_spill] sm:$0xff] %v6342_v31  ;;  %v6346_v48 = vpop.permute.xlu1 %2476 }
 0x22c   : > { %9330 = vst [vmem:[#allocation131_spill] sm:$0xff] %v6344_v33 }
 0x22d   : > { %9331 = vst [vmem:[#allocation132_spill] sm:$0xff] %v6346_v48 }
 0x230   : > { %1899 = vrot.lane.b32.xlu0 %v1826_v15, %s9269_s23  ;;  %2277 = vrot.lane.b32.xlu2 %v2204_v11, %s9239_s18  ;;  %v1236_v11 = vsel %vm1163_vm5, %v1233_v27, %v9336_v3  ;;  %v1608_v3 = vsel %vm1541_vm3, %v1605_v32, %v9054_v43  ;;  %v1829_v32 = vrot.slane %v6298_v4, 4 }
 0x231   : > { %2500 = vrot.lane.b32.xlu1 %v2427_v54, %s9259_s30 }
 0x232   : > { %v6363_v33 = vpop.permute.xlu0 %2480  ;;  %v6365_v31 = vpop.permute.xlu2 %1671 }
 0x233   : > { %9333 = vst [vmem:[#allocation133_spill] sm:$0xff] %v6363_v33  ;;  %v6367_v48 = vpop.permute.xlu1 %1059  ;;  %v1005_v33 = vrot.slane %v6229_v21, 1 }
 0x234   : > { %9334 = vst [vmem:[#allocation134_spill] sm:$0xff] %v6365_v31 }
 0x235   : > { %9335 = vst [vmem:[#allocation135_spill] sm:$0xff] %v6367_v48  ;;  %v1006_v49 = vsel %vm939_vm7, %v1003_v19, %v1005_v33  ;;  %v9055_v19 = vrot.slane %v6355_v34, 4 }
 0x238   : > { %2049 = vrot.lane.b32.xlu0 %v1826_v15, %s9228_s26  ;;  %1459 = vrot.lane.b32.xlu2 %v1236_v11, %s9198_s20  ;;  %v9053_v15 = vrot.slane %v5511_v18, 1 }
 0x239   : > { %1083 = vrot.lane.b32.xlu1 %v1010_v22, %s9247_s29 }
 0x23a   : > { %v6379_v54 = vpop.permute.xlu0 %1063  ;;  %v6381_v48 = vpop.permute.xlu2 %1075  ;;  %v1012_v22 = vsel %vm939_vm7, %v1009_v30, %v9053_v15 }
 0x23b   : > { %9337 = vst [vmem:[#allocation136_spill] sm:$0xff] %v6379_v54  ;;  %v6383_v31 = vpop.permute.xlu1 %1285 }
 0x23c   : > { %9338 = vst [vmem:[#allocation137_spill] sm:$0xff] %v6381_v48 }
 0x23d   : > { %9339 = vst [vmem:[#allocation138_spill] sm:$0xff] %v6383_v31 }
 0x240   : > { %1079 = vrot.lane.b32.xlu0 %v1006_v49, %s9247_s29  ;;  %1681 = vrot.lane.b32.xlu2 %v1608_v3, %s9211_s28  ;;  %v9056_v49 = vrot.slane %v6216_v9, 6  ;;  %v1832_v3 = vsel %vm1765_vm6, %v1829_v32, %v9055_v19 }
 0x241   : > { %1085 = vrot.lane.b32.xlu1 %v1012_v22, %s9247_s29 }
 0x242   : > { %v6398_v31 = vpop.permute.xlu0 %1287  ;;  %v6400_v54 = vpop.permute.xlu2 %1299  ;;  %v2425_v30 = vsel %vm778_vm1, %v9056_v49, %v2424_v51  ;;  %v2205_v49 = vrot.slane %v6355_v34, 5 }
 0x243   : > { %9340 = vst [vmem:[#allocation139_spill] sm:$0xff] %v6398_v31  ;;  %v6402_v48 = vpop.permute.xlu1 %1065  ;;  %v9344_v31 = vrot.slane %v6298_v4, 2 }
 0x244   : > { %9341 = vst [vmem:[#allocation140_spill] sm:$0xff] %v6402_v48  ;;  %v1008_v48 = vsel %vm939_vm7, %v1005_v33, %v1007_v46 }
 0x245   : > { %v1234_v19 = vsel %vm1163_vm5, %v9344_v31, %v1233_v27 }
 0x248   : > { %2498 = vrot.lane.b32.xlu0 %v2425_v30, %s9259_s30  ;;  %1905 = vrot.lane.b32.xlu2 %v1832_v3, %s9269_s23 }
 0x249   : > { %1309 = vrot.lane.b32.xlu1 %v1236_v11, %s9254_s1 }
 0x24a   : > { %v6416_v22 = vpop.permute.xlu0 %1437  ;;  %v6418_v15 = vpop.permute.xlu2 %1897 }
 0x24b   : > { %9342 = vst [vmem:[#allocation141_spill] sm:$0xff] %v6416_v22  ;;  %v6420_v43 = vpop.permute.xlu1 %1289  ;;  %v9348_v22 = vrot.slane %v5511_v18, 5 }
 0x24c   : > { %9343 = vst [vmem:[#allocation142_spill] sm:$0xff] %v6420_v43 }
 0x24d   : > { %v2208_v31 = vsel %vm2143_vm4, %v2205_v49, %v9348_v22 }
 0x250   : > { %1081 = vrot.lane.b32.xlu0 %v1008_v48, %s9247_s29  ;;  %2055 = vrot.lane.b32.xlu2 %v1832_v3, %s9228_s26  ;;  %v2206_v48 = vsel %vm2143_vm4, %v2203_v12, %v2205_v49  ;;  %v2428_v3 = vrot.slane %v6355_v34, 6  ;;  %v9353_v12 = vrot.slane %v6298_v4, 6 }
 0x251   : > { %1457 = vrot.lane.b32.xlu1 %v1234_v19, %s9198_s20 }
 0x252   : > { %v6429_v51 = vpop.permute.xlu0 %1069  ;;  %v6431_v11 = vpop.permute.xlu2 %2047  ;;  %v2429_v49 = vsel %vm778_vm1, %v9353_v12, %v2428_v3 }
 0x253   : > { %9345 = vst [vmem:[#allocation143_spill] sm:$0xff] %v6429_v51  ;;  %v6433_v30 = vpop.permute.xlu1 %1439  ;;  %v9362_v51 = vrot.slane %v5825_v57, 6 }
 0x254   : > { %9346 = vst [vmem:[#allocation144_spill] sm:$0xff] %v6431_v11 }
 0x255   : > { %9347 = vst [vmem:[#allocation145_spill] sm:$0xff] %v6433_v30  ;;  %v9351_v30 = vrot.slane %v6229_v21, 4 }
 0x257   : > { %v1830_v22 = vsel %vm1765_vm6, %v9351_v30, %v1829_v32  ;;  %v1815_v32 = vrot.slane %v6004_v50, 4  ;;  %v9057_v30 = vrot.slane %v5977_v53, 4  ;;  %v953_v50 = vrot.slane %v5608_v1, 1 }
 0x258   : > { %1455 = vrot.lane.b32.xlu0 %v6316_v52, %s9198_s20  ;;  %2281 = vrot.lane.b32.xlu2 %v2208_v31, %s9239_s18  ;;  %v9352_v52 = vrot.slane %v5511_v18, 6 }
 0x259   : > { %2279 = vrot.lane.b32.xlu1 %v2206_v48, %s9239_s18 }
 0x25a   : > { %v6444_v33 = vpop.permute.xlu0 %1293  ;;  %v6446_v27 = vpop.permute.xlu2 %1303  ;;  %v2431_v31 = vsel %vm778_vm1, %v2428_v3, %v9352_v52  ;;  %v9356_v52 = vrot.slane %v6068_v24, 4  ;;  %v6482_v3 = vsel %vm1765_vm6, %v9057_v30, %v1815_v32 }
 0x25b   : > { %9349 = vst [vmem:[#allocation146_spill] sm:$0xff] %v6444_v33  ;;  %v6448_v46 = vpop.permute.xlu1 %1665  ;;  %v2396_v33 = vrot.slane %v5802_v16, 6 }
 0x25c   : > { %9350 = vst [vmem:[#allocation147_spill] sm:$0xff] %v6448_v46 }
 0x25d   : > { %9357 = vst [vmem:[#allocation150_spill] sm:$0xff] %v6482_v3 }
 0x260   : > { %1903 = vrot.lane.b32.xlu0 %v1830_v22, %s9269_s23  ;;  %2504 = vrot.lane.b32.xlu2 %v2431_v31, %s9259_s30  ;;  %v6474_v31 = vsel %vm1765_vm6, %v1815_v32, %v9356_v52  ;;  %v2197_v52 = vrot.slane %v6159_v5, 5 }
 0x261   : > { %2502 = vrot.lane.b32.xlu1 %v2429_v49, %s9259_s30 }
 0x262   : > { %v6463_v48 = vpop.permute.xlu0 %1443  ;;  %v6465_v46 = vpop.permute.xlu2 %1453 }
 0x263   : > { %9354 = vst [vmem:[#allocation148_spill] sm:$0xff] %v6463_v48  ;;  %v6467_v43 = vpop.permute.xlu1 %1445 }
 0x264   : > { %9355 = vst [vmem:[#allocation149_spill] sm:$0xff] %v6467_v43  ;;  %v9063_v43 = vrot.slane %v5762_v45, 6 }
 0x268   : > { %2053 = vrot.lane.b32.xlu0 %v1830_v22, %s9228_s26  ;;  %1891 = vrot.lane.b32.xlu2 %v6474_v31, %s9269_s23  ;;  %v9058_v22 = vrot.slane %v6120_v56, 5 }
 0x269   : > { %1889 = vrot.lane.b32.xlu1 %v6482_v3, %s9269_s23 }
 0x26a   : > { %v6486_v12 = vpop.permute.xlu0 %1071  ;;  %v6488_v49 = vpop.permute.xlu2 %1901  ;;  %v2198_v11 = vsel %vm2143_vm4, %v9058_v22, %v2197_v52  ;;  %v2399_v22 = vsel %vm778_vm1, %v2396_v33, %v9362_v51 }
 0x26b   : > { %9358 = vst [vmem:[#allocation151_spill] sm:$0xff] %v6488_v49  ;;  %v6490_v48 = vpop.permute.xlu1 %1669 }
 0x26c   : > { %9359 = vst [vmem:[#allocation152_spill] sm:$0xff] %v6490_v48 }
 0x270   : > { %2271 = vrot.lane.b32.xlu2 %v2198_v11, %s9239_s18  ;;  %1307 = vrot.lane.b32.xlu0 %v1234_v19, %s9254_s1  ;;  %v9363_v11 = vrot.slane %v5511_v18, 3  ;;  %v9364_v19 = vrot.slane %v6355_v34, 3 }
 0x271   : > { %2021 = vrot.lane.b32.xlu1 %v5841_v62, %s9228_s26 }
 0x272   : > { %v6501_v32 = vpop.permute.xlu0 %1893  ;;  %v6503_v30 = vpop.permute.xlu2 %2051  ;;  %v1610_v62 = vsel %vm1541_vm3, %v9364_v19, %v9363_v11  ;;  %v9366_v11 = vrot.slane %v5511_v18, 4 }
 0x273   : > { %9360 = vst [vmem:[#allocation153_spill] sm:$0xff] %v6501_v32  ;;  %v6505_v48 = vpop.permute.xlu1 %1073  ;;  %v2397_v32 = vsel %vm778_vm1, %v9063_v43, %v2396_v33  ;;  %v9368_v33 = vrot.slane %v5621_v7, 1 }
 0x274   : > { %9361 = vst [vmem:[#allocation154_spill] sm:$0xff] %v6503_v30 }
 0x278   : > { %2472 = vrot.lane.b32.xlu2 %v2399_v22, %s9259_s30  ;;  %1683 = vrot.lane.b32.xlu0 %v1610_v62, %s9211_s28  ;;  %v9367_v22 = vrot.slane %v6355_v34, 4 }
 0x279   : > { %2470 = vrot.lane.b32.xlu1 %v2397_v32, %s9259_s30  ;;  %v956_v32 = vsel %vm939_vm7, %v953_v50, %v9368_v33  ;;  %v9065_v33 = vrot.slane %v5680_v47, 4 }
 0x27a   : > { %v6523_v3 = vpop.permute.xlu0 %1297  ;;  %v6525_v57 = vpop.permute.xlu2 %1305  ;;  %v1834_v19 = vsel %vm1765_vm6, %v9367_v22, %v9366_v11 }
 0x27b   : > { %v6527_v51 = vpop.permute.xlu1 %1895 }
 0x27c   : > { %9365 = vst [vmem:[#allocation155_spill] sm:$0xff] %v6527_v51 }
 0x280   : > { %1279 = vrot.lane.b32.xlu2 %v5891_v61, %s9254_s1  ;;  %1907 = vrot.lane.b32.xlu0 %v1834_v19, %s9269_s23 }
 0x281   : > { %1029 = vrot.lane.b32.xlu1 %v956_v32, %s9247_s29  ;;  %v1587_v32 = vrot.slane %v5950_v36, 3 }
 0x282   : > { %v6542_v62 = vpop.permute.xlu0 %1449  ;;  %v6544_v43 = vpop.permute.xlu2 %1679 }
 0x283   : > { %9369 = vst [vmem:[#allocation156_spill] sm:$0xff] %v6544_v43  ;;  %v6546_v51 = vpop.permute.xlu1 %1451  ;;  %v9064_v43 = vrot.slane %v5668_v39, 4 }
 0x288   : > { %1411 = vrot.lane.b32.xlu2 %v5674_v44, %s9198_s20  ;;  %2057 = vrot.lane.b32.xlu0 %v1834_v19, %s9228_s26  ;;  %v6567_v44 = vsel %vm1765_vm6, %v9064_v43, %v9065_v33  ;;  %v9068_v43 = vrot.slane %v6159_v5, 6  ;;  %v9069_v33 = vrot.slane %v5740_v63, 5 }
 0x289   : > { %1409 = vrot.lane.b32.xlu1 %v5659_v35, %s9198_s20  ;;  %9371 = vst [vmem:[#allocation158_spill] sm:$0xff] %v6567_v44  ;;  %v9372_v35 = vrot.slane %v5977_v53, 3 }
 0x28a   : > { %v6553_v61 = vpop.permute.xlu0 %1673  ;;  %v6555_v11 = vpop.permute.xlu2 %2277 }
 0x28b   : > { %9370 = vst [vmem:[#allocation157_spill] sm:$0xff] %v6555_v11  ;;  %v6557_v22 = vpop.permute.xlu1 %1675  ;;  %v1590_v19 = vsel %vm1541_vm3, %v1587_v32, %v9372_v35 }
 0x290   : > { %1861 = vrot.lane.b32.xlu2 %v6567_v44, %s9269_s23  ;;  %1639 = vrot.lane.b32.xlu0 %v5701_v10, %s9211_s28  ;;  %v9067_v44 = vrot.slane %v6120_v56, 6 }
 0x291   : > { %1663 = vrot.lane.b32.xlu1 %v1590_v19, %s9211_s28 }
 0x292   : > { %v6577_v11 = vpop.permute.xlu0 %1077  ;;  %v6579_v49 = vpop.permute.xlu2 %1459 }
 0x293   : > { %9373 = vst [vmem:[#allocation159_spill] sm:$0xff] %v6577_v11  ;;  %v6581_v30 = vpop.permute.xlu1 %1677 }
 0x294   : > { %9374 = vst [vmem:[#allocation160_spill] sm:$0xff] %v6579_v49 }
 0x298   : > { %2045 = vrot.lane.b32.xlu2 %v6267_v0, %s9228_s26  ;;  %2019 = vrot.lane.b32.xlu0 %v5790_v26, %s9228_s26  ;;  %v2421_v26 = vsel %vm778_vm1, %v9067_v44, %v9068_v43  ;;  %v9377_v0 = vrot.slane %v6216_v9, 5 }
 0x299   : > { %2043 = vrot.lane.b32.xlu1 %v6251_v40, %s9228_s26 }
 0x29a   : > { %v6589_v10 = vpop.permute.xlu0 %1301  ;;  %v6591_v35 = vpop.permute.xlu2 %1681  ;;  %v2200_v40 = vsel %vm2143_vm4, %v2197_v52, %v9377_v0  ;;  %v1177_v52 = vrot.slane %v5608_v1, 2  ;;  %v9073_v0 = vrot.slane %v5595_v59, 2 }
 0x29b   : > { %9375 = vst [vmem:[#allocation161_spill] sm:$0xff] %v6589_v10  ;;  %v6593_v19 = vpop.permute.xlu1 %2275 }
 0x29c   : > { %9376 = vst [vmem:[#allocation162_spill] sm:$0xff] %v6593_v19  ;;  %v9378_v19 = vrot.slane %v5762_v45, 5 }
 0x29e   : > { %v2172_v10 = vsel %vm2143_vm4, %v9069_v33, %v9378_v19  ;;  %v6637_v19 = vsel %vm1163_vm5, %v9073_v0, %v1177_v52 }
 0x29f   : > { %9382 = vst [vmem:[#allocation165_spill] sm:$0xff] %v6637_v19 }
 0x2a0   : > { %2494 = vrot.lane.b32.xlu2 %v2421_v26, %s9259_s30  ;;  %2273 = vrot.lane.b32.xlu0 %v2200_v40, %s9239_s18  ;;  %v9072_v26 = vrot.slane %v5595_v59, 1  ;;  %v9380_v40 = vrot.slane %v5621_v7, 2  ;;  %v9083_v7 = vrot.slane %v5914_v17, 3 }
 0x2a1   : > { %2245 = vrot.lane.b32.xlu1 %v2172_v10, %s9239_s18 }
 0x2a2   : > { %v6614_v49 = vpop.permute.xlu0 %1899  ;;  %v6616_v11 = vpop.permute.xlu2 %1905  ;;  %v6626_v43 = vsel %vm1163_vm5, %v1177_v52, %v9380_v40  ;;  %v954_v10 = vsel %vm939_vm7, %v9072_v26, %v953_v50  ;;  %v9078_v50 = vrot.slane %v5651_v28, 3  ;;  %v9077_v26 = vrot.slane %v5636_v14, 3 }
 0x2a3   : > { %v6618_v44 = vpop.permute.xlu1 %2500  ;;  %9381 = vst [vmem:[#allocation164_spill] sm:$0xff] %v6626_v43 }
 0x2a4   : > { %9379 = vst [vmem:[#allocation163_spill] sm:$0xff] %v6618_v44  ;;  %v1560_v52 = vsel %vm1541_vm3, %v9077_v26, %v9078_v50  ;;  %v9386_v26 = vrot.slane %v5977_v53, 4 }
 0x2a8   : > { %1253 = vrot.lane.b32.xlu2 %v6626_v43, %s9254_s1  ;;  %1027 = vrot.lane.b32.xlu0 %v954_v10, %s9247_s29 }
 0x2a9   : > { %1251 = vrot.lane.b32.xlu1 %v6637_v19, %s9254_s1 }
 0x2aa   : > { %v6641_v33 = vpop.permute.xlu0 %2049  ;;  %v6643_v40 = vpop.permute.xlu2 %2055 }
 0x2ab   : > { %9383 = vst [vmem:[#allocation166_spill] sm:$0xff] %v6641_v33  ;;  %v6645_v1 = vpop.permute.xlu1 %1083  ;;  %v1811_v33 = vrot.slane %v5950_v36, 4 }
 0x2ac   : > { %9384 = vst [vmem:[#allocation167_spill] sm:$0xff] %v6643_v40 }
 0x2b0   : > { %1633 = vrot.lane.b32.xlu2 %v1560_v52, %s9211_s28  ;;  %1281 = vrot.lane.b32.xlu0 %v5980_v13, %s9254_s1  ;;  %v6670_v52 = vsel %vm1765_vm6, %v1811_v33, %v9386_v26  ;;  %v1588_v13 = vsel %vm1541_vm3, %v9083_v7, %v1587_v32  ;;  %v9088_v32 = vrot.slane %v6095_v60, 5  ;;  %v9087_v7 = vrot.slane %v6068_v24, 5 }
 0x2b1   : > { %1435 = vrot.lane.b32.xlu1 %v6123_v8, %s9198_s20  ;;  %9387 = vst [vmem:[#allocation169_spill] sm:$0xff] %v6670_v52  ;;  %v9388_v8 = vrot.slane %v5914_v17, 4  ;;  %v9396_v17 = vrot.slane %v5762_v45, 6 }
 0x2b2   : > { %v6659_v10 = vpop.permute.xlu0 %1079  ;;  %v6661_v0 = vpop.permute.xlu2 %2281 }
 0x2b3   : > { %9385 = vst [vmem:[#allocation168_spill] sm:$0xff] %v6661_v0  ;;  %v6663_v19 = vpop.permute.xlu1 %1085  ;;  %v6681_v50 = vsel %vm1765_vm6, %v9388_v8, %v1811_v33  ;;  %v2194_v33 = vsel %vm2143_vm4, %v9087_v7, %v9088_v32  ;;  %v9393_v8 = vrot.slane %v5680_v47, 4  ;;  %v9095_v47 = vrot.slane %v5723_v38, 5 }
 0x2b4   : > { %9389 = vst [vmem:[#allocation170_spill] sm:$0xff] %v6681_v50 }
 0x2b8   : > { %1887 = vrot.lane.b32.xlu2 %v6670_v52, %s9269_s23  ;;  %1661 = vrot.lane.b32.xlu0 %v1588_v13, %s9211_s28  ;;  %v9392_v13 = vrot.slane %v5691_v58, 4 }
 0x2b9   : > { %1885 = vrot.lane.b32.xlu1 %v6681_v50, %s9269_s23  ;;  %v1143_v50 = vadd.f32 %v5993_v20, %v5740_v63  ;;  %v9094_v20 = vrot.slane %v5723_v38, 6 }
 0x2ba   : > { %v6685_v36 = vpop.permute.xlu0 %2498  ;;  %v6687_v26 = vpop.permute.xlu2 %2504  ;;  %v6703_v52 = vsel %vm1765_vm6, %v9393_v8, %v9392_v13  ;;  %v2392_v13 = vrot.slane %v5740_v63, 6 }
 0x2bb   : > { %9390 = vst [vmem:[#allocation171_spill] sm:$0xff] %v6685_v36  ;;  %v6689_v53 = vpop.permute.xlu1 %1309  ;;  %v1367_v8 = vadd.f32 %v6016_v25, %v1143_v50 }
 0x2bc   : > { %9391 = vst [vmem:[#allocation172_spill] sm:$0xff] %v6687_v26  ;;  %v9397_v26 = vrot.slane %v5740_v63, 5  ;;  %v1142_v63 = vadd.f32 %v6065_v55, %v5723_v38  ;;  %v9406_v55 = vld [vmem:[#allocation86_spill] sm:$0xff]  ;;  %v9409_v38 = vld [vmem:[#allocation101_spill] sm:$0xff] }
 0x2bd   : > { %9394 = vst [vmem:[#allocation173_spill] sm:$0xff] %v6703_v52 }
 0x2be   : > { %v2170_v25 = vsel %vm2143_vm4, %v9095_v47, %v9397_v26  ;;  %v9400_v26 = vld [vmem:[#allocation115_spill] sm:$0xff] }
 0x2c0   : > { %2267 = vrot.lane.b32.xlu2 %v2194_v33, %s9239_s18  ;;  %1863 = vrot.lane.b32.xlu0 %v6703_v52, %s9269_s23  ;;  %v1144_v33 = vadd.f32 %v6108_v6, %v5762_v45  ;;  %v1521_v52 = vadd.f32 %v6262_v41, %v1367_v8  ;;  %v1145_v45 = vadd.f32 %v6225_v42, %v5802_v16  ;;  %v9398_v41 = vld [vmem:[#allocation95_spill] sm:$0xff]  ;;  %v9403_v16 = vld [vmem:[#allocation96_spill] sm:$0xff] }
 0x2c1   : > { %2017 = vrot.lane.b32.xlu1 %v5767_v37, %s9228_s26  ;;  %v1366_v42 = vadd.f32 %v9403_v16, %v1142_v63  ;;  %v9413_v63 = vrot.slane %v6159_v5, 6  ;;  %v9414_v16 = vrot.slane %v5595_v59, 1  ;;  %v9426_v59 = vld [vmem:[#allocation123_spill] sm:$0xff] }
 0x2c2   : > { %v6712_v43 = vpop.permute.xlu0 %1081  ;;  %v6714_v7 = vpop.permute.xlu2 %1891  ;;  %v1368_v37 = vadd.f32 %v6130_v29, %v1144_v33  ;;  %v2393_v29 = vsel %vm778_vm1, %v9094_v20, %v2392_v13  ;;  %v1369_v8 = vadd.f32 %v9400_v26, %v1145_v45  ;;  %v9405_v20 = vld [vmem:[#allocation36_spill] sm:$0xff]  ;;  %v9411_v45 = vrot.slane %v5511_v18, 1 }
 0x2c3   : > { %9395 = vst [vmem:[#allocation174_spill] sm:$0xff] %v6714_v7  ;;  %v6716_v32 = vpop.permute.xlu1 %1457  ;;  %v2395_v7 = vsel %vm778_vm1, %v2392_v13, %v9396_v17  ;;  %v9402_v13 = vld [vmem:[#allocation16_spill] sm:$0xff]  ;;  %v1141_v47 = vadd.f32 %v9406_v55, %v9405_v20  ;;  %v1520_v0 = vadd.f32 %v9409_v38, %v1366_v42  ;;  %v9416_v42 = vld [vmem:[#allocation106_spill] sm:$0xff] }
 0x2c4   : > { %v1522_v6 = vadd.f32 %v6152_v23, %v1368_v37  ;;  %v1745_v23 = vadd.f32 %v9398_v41, %v1521_v52  ;;  %v1013_v37 = vrot.slane %v9402_v13, 1  ;;  %v9408_v52 = vld [vmem:[#allocation23_spill] sm:$0xff]  ;;  %v9412_v13 = vrot.slane %v6216_v9, 6 }
 0x2c5   : > { %v9099_v41 = vrot.slane %v9408_v52, 1 }
 0x2c6   : > { %v1746_v17 = vadd.f32 %v6186_v2, %v1522_v6  ;;  %v9407_v2 = vld [vmem:[#allocation118_spill] sm:$0xff]  ;;  %v1014_v26 = vsel %vm939_vm7, %v9411_v45, %v1013_v37  ;;  %v9419_v45 = vld [vmem:[#allocation75_spill] sm:$0xff] }
 0x2c7   : > { %v1523_v6 = vadd.f32 %v9407_v2, %v1369_v8  ;;  %v952_v8 = vsel %vm939_vm7, %v9099_v41, %v9414_v16  ;;  %v9418_v37 = vld [vmem:[#allocation82_spill] sm:$0xff]  ;;  %v9421_v16 = vld [vmem:[#allocation107_spill] sm:$0xff] }
 0x2c8   : > { %2468 = vrot.lane.b32.xlu2 %v2395_v7, %s9259_s30  ;;  %2243 = vrot.lane.b32.xlu0 %v2170_v25, %s9239_s18  ;;  %v9404_v25 = vld [vmem:[#allocation108_spill] sm:$0xff]  ;;  %v1140_v2 = vadd.f32 %v9418_v37, %v5691_v58 }
 0x2c9   : > { %2466 = vrot.lane.b32.xlu1 %v2393_v29, %s9259_s30  ;;  %v1970_v29 = vadd.f32 %v9404_v25, %v1746_v17  ;;  %v2423_v17 = vsel %vm778_vm1, %v9413_v63, %v9412_v13  ;;  %v9415_v25 = vld [vmem:[#allocation105_spill] sm:$0xff]  ;;  %v1365_v13 = vadd.f32 %v9419_v45, %v1141_v47  ;;  %v9420_v63 = vld [vmem:[#allocation120_spill] sm:$0xff] }
 0x2ca   : > { %v6747_v50 = vpop.permute.xlu0 %1455  ;;  %v6749_v7 = vpop.permute.xlu2 %2271  ;;  %v1744_v38 = vadd.f32 %v9415_v25, %v1520_v0  ;;  %v1747_v18 = vadd.f32 %v9420_v63, %v1523_v6  ;;  %v9422_v0 = vld [vmem:[#allocation129_spill] sm:$0xff]  ;;  %v9429_v6 = vld [vmem:[#allocation111_spill] sm:$0xff] }
 0x2cb   : > { %9399 = vst [vmem:[#allocation95_spill] sm:$0xff] %v6749_v7  ;;  %v6752_v33 = vpop.permute.xlu1 %2279  ;;  %v9410_v7 = vld [vmem:[#allocation97_spill] sm:$0xff] }
 0x2cc   : > { %9401 = vst [vmem:[#allocation115_spill] sm:$0xff] %v6752_v33  ;;  %v1969_v36 = vadd.f32 %v9410_v7, %v1745_v23  ;;  %v2124_v23 = vadd.f32 %v9416_v42, %v1970_v29  ;;  %v9417_v7 = vld [vmem:[#allocation126_spill] sm:$0xff]  ;;  %v1968_v41 = vadd.f32 %v9421_v16, %v1744_v38  ;;  %v9424_v42 = vld [vmem:[#allocation65_spill] sm:$0xff]  ;;  %v1971_v44 = vadd.f32 %v9426_v59, %v1747_v18  ;;  %v9431_v38 = vld [vmem:[#allocation80_spill] sm:$0xff] }
 0x2cd   : > { %v9428_v47 = vld [vmem:[#allocation109_spill] sm:$0xff]  ;;  %v1364_v16 = vadd.f32 %v9431_v38, %v1140_v2  ;;  %v9435_v18 = vld [vmem:[#allocation112_spill] sm:$0xff]  ;;  %v9440_v2 = vld [vmem:[#allocation98_spill] sm:$0xff]  ;;  %v1161_v38 = vadd.f32 %v6663_v19, %v6355_v34  ;;  %v1783_v19 = vrot.slane %v5651_v28, 4 }
 0x2ce   : > { %v2123_v55 = vadd.f32 %v9417_v7, %v1969_v36  ;;  %v9425_v7 = vld [vmem:[#allocation89_spill] sm:$0xff]  ;;  %v2348_v45 = vadd.f32 %v9428_v47, %v2124_v23  ;;  %v2122_v63 = vadd.f32 %v9429_v6, %v1968_v41  ;;  %v9437_v23 = vrot.slane %v9424_v42, 3  ;;  %v9447_v34 = vld [vmem:[#allocation32_spill] sm:$0xff] }
 0x2cf   : > { %v9438_v41 = vld [vmem:[#allocation61_spill] sm:$0xff]  ;;  %v1518_v6 = vadd.f32 %v9440_v2, %v1364_v16  ;;  %v9445_v16 = vld [vmem:[#allocation103_spill] sm:$0xff] }
 0x2d0   : > { %1087 = vrot.lane.b32.xlu2 %v1014_v26, %s9247_s29  ;;  %2496 = vrot.lane.b32.xlu0 %v2423_v17, %s9259_s30  ;;  %v2347_v25 = vadd.f32 %v9422_v0, %v2123_v55  ;;  %v1519_v17 = vadd.f32 %v9425_v7, %v1365_v13  ;;  %v9432_v55 = vld [vmem:[#allocation100_spill] sm:$0xff]  ;;  %v2571_v59 = vadd.f32 %v9435_v18, %v2348_v45  ;;  %v9436_v7 = vld [vmem:[#allocation113_spill] sm:$0xff]  ;;  %v9439_v47 = vrot.slane %v9438_v41, 3  ;;  %v9444_v18 = vld [vmem:[#allocation87_spill] sm:$0xff] }
 0x2d1   : > { %1025 = vrot.lane.b32.xlu1 %v952_v8, %s9247_s29  ;;  %v9430_v8 = vld [vmem:[#allocation132_spill] sm:$0xff]  ;;  %v2346_v26 = vadd.f32 %v9436_v7, %v2122_v63  ;;  %v1158_v63 = vadd.f32 %v6659_v10, %v6216_v9  ;;  %v9446_v7 = vld [vmem:[#allocation133_spill] sm:$0xff] }
 0x2d2   : > { %v6788_v29 = vpop.permute.xlu0 %1903  ;;  %v2473_v36 = vpop.permute.xlu2 %2472  ;;  %v2570_v33 = vadd.f32 %v9430_v8, %v2347_v25  ;;  %v1743_v0 = vadd.f32 %v9432_v55, %v1519_v17  ;;  %v6804_v13 = vld [vmem:[%s9434_s4] ss:$0 sm:$0xff]  ;;  %v1584_v25 = vsel %vm1541_vm3, %v9439_v47, %v9437_v23  ;;  %v9441_v17 = vld [vmem:[#allocation102_spill] sm:$0xff]  ;;  %v1385_v23 = vadd.f32 %v6689_v53, %v1161_v38 }
 0x2d3   : > { %9423 = vst [vmem:[#allocation16_spill] sm:$0xff] %v6788_v29  ;;  %v6793_v37 = vpop.permute.xlu1 %2502  ;;  %v9433_v29 = vld [vmem:[#allocation127_spill] sm:$0xff]  ;;  %v9443_v55 = vld [vmem:[#allocation116_spill] sm:$0xff]  ;;  %v9105_v47 = vrot.slane %v5636_v14, 4  ;;  %v9453_v38 = vld [vmem:[#allocation46_spill] sm:$0xff] }
 0x2d4   : > { %9427 = vst [vmem:[#allocation96_spill] sm:$0xff] %v6793_v37  ;;  %v2125_v40 = vadd.f32 %v9433_v29, %v1971_v44  ;;  %v1967_v8 = vadd.f32 %v9441_v17, %v1743_v0  ;;  %v9442_v44 = vld [vmem:[#allocation130_spill] sm:$0xff]  ;;  %v2569_v37 = vadd.f32 %v9443_v55, %v2346_v26  ;;  %v6820_v45 = vadd.f32 %v6804_v13, %v2570_v33  ;;  %v9451_v17 = vld [vmem:[#allocation92_spill] sm:$0xff] }
 0x2d5   : > { %v6834_v33 = vadd.f32 %v6804_v13, %v2571_v59  ;;  %v1742_v53 = vadd.f32 %v9451_v17, %v1518_v6  ;;  %v1382_v59 = vadd.f32 %v6446_v27, %v1158_v63  ;;  %v1539_v55 = vadd.f32 %v9453_v38, %v1385_v23 }
 0x2d6   : > { %v2349_v29 = vadd.f32 %v9442_v44, %v2125_v40  ;;  %v2121_v0 = vadd.f32 %v9445_v16, %v1967_v8  ;;  %v6846_v8 = vadd.f32 %v6804_v13, %v2569_v37  ;;  %v9109_v44 = vmax.f32 %v6820_v45, 0.0 }
 0x2d7   : > { %v9106_v6 = vmax.f32 %v6834_v33, 0.0  ;;  %v1536_v37 = vadd.f32 %v6716_v32, %v1382_v59  ;;  %v9108_v63 = vrot.slane %v9405_v20, 5  ;;  %v9456_v23 = vrot.slane %v5668_v39, 3 }
 0x2d8   : > { %1657 = vrot.lane.b32.xlu2 %v1584_v25, %s9211_s28  ;;  %1433 = vrot.lane.b32.xlu0 %v9444_v18, %s9198_s20  ;;  %v2572_v40 = vadd.f32 %v9446_v7, %v2349_v29  ;;  %v9450_v25 = vld [vmem:[#allocation21_spill] sm:$0xff]  ;;  %v9454_v18 = vld [vmem:[#allocation99_spill] sm:$0xff]  ;;  %v6858_v7 = vsel %vm1765_vm6, %v9105_v47, %v1783_v19  ;;  %v9107_v38 = vrot.slane %v5691_v58, 5  ;;  %v9458_v47 = vld [vmem:[#allocation94_spill] sm:$0xff]  ;;  %v2646_v59 = vmax.f32 %v6846_v8, 0.0 }
 0x2d9   : > { %1407 = vrot.lane.b32.xlu1 %v9447_v34, %s9198_s20  ;;  %v9110_v2 = vrot.slane %v9450_v25, 1  ;;  %v2345_v16 = vadd.f32 %v9454_v18, %v2121_v0  ;;  %v9455_v34 = vrot.slane %v5668_v39, 4  ;;  %v9457_v0 = vrot.slane %v5651_v28, 3  ;;  %v9470_v28 = vld [vmem:[#allocation51_spill] sm:$0xff] }
 0x2da   : > { %v6836_v9 = vpop.permute.xlu0 %2053  ;;  %v6838_v10 = vpop.permute.xlu2 %1279  ;;  %v6851_v29 = vadd.f32 %v6804_v13, %v2572_v40  ;;  %v9111_v18 = vrot.slane %v6095_v60, 6  ;;  %v1966_v32 = vadd.f32 %v9458_v47, %v1742_v53  ;;  %v1760_v8 = vadd.f32 %v6591_v35, %v1536_v37 }
 0x2db   : > { %9448 = vst [vmem:[#allocation108_spill] sm:$0xff] %v6838_v10  ;;  %v6840_v26 = vpop.permute.xlu1 %1889  ;;  %v6865_v27 = vsel %vm1765_vm6, %v1783_v19, %v9455_v34  ;;  %v2568_v40 = vadd.f32 %v2473_v36, %v2345_v16  ;;  %v1562_v17 = vsel %vm1541_vm3, %v9457_v0, %v9456_v23  ;;  %v2734_v19 = vrot.slane %v9109_v44, 1  ;;  %v9459_v23 = vld [vmem:[#allocation37_spill] sm:$0xff] }
 0x2dc   : > { %9449 = vst [vmem:[#allocation36_spill] sm:$0xff] %v6840_v26  ;;  %v1154_v36 = vadd.f32 %v6486_v12, %v6068_v24  ;;  %v1160_v34 = vadd.f32 %v6645_v1, %v6298_v4  ;;  %v1763_v47 = vadd.f32 %v9459_v23, %v1539_v55  ;;  %v2736_v12 = vrot.slane %v9106_v6, 1 }
 0x2dd   : > { %9452 = vst [vmem:[#allocation86_spill] sm:$0xff] %v6851_v29  ;;  %v2166_v1 = vsel %vm2143_vm4, %v9107_v38, %v9108_v63  ;;  %v9461_v4 = vrot.slane %v9408_v52, 1  ;;  %v6909_v23 = vadd.f32 %v6804_v13, %v2568_v40  ;;  %v9462_v53 = vrot.slane %v6120_v56, 6 }
 0x2de   : > { %v9463_v38 = vrot.slane %v6120_v56, 5  ;;  %v9464_v63 = vrot.slane %v6095_v60, 5  ;;  %v2732_v16 = vrot.slane %v2646_v59, 1  ;;  %v2737_v40 = vsel %vm939_vm7, %v2734_v19, %v2736_v12 }
 0x2df   : > { %v6906_v55 = vsel %vm939_vm7, %v9110_v2, %v9461_v4  ;;  %v2419_v6 = vsel %vm778_vm1, %v9111_v18, %v9462_v53  ;;  %v9465_v4 = vld [vmem:[#allocation93_spill] sm:$0xff]  ;;  %v1155_v53 = vadd.f32 %v6505_v48, %v6095_v60  ;;  %v9469_v18 = vld [vmem:[#allocation40_spill] sm:$0xff]  ;;  %v2645_v48 = vmax.f32 %v6909_v23, 0.0 }
 0x2e0   : > { %1859 = vrot.lane.b32.xlu2 %v6865_v27, %s9269_s23  ;;  %1635 = vrot.lane.b32.xlu0 %v1562_v17, %s9211_s28  ;;  %v2196_v44 = vsel %vm2143_vm4, %v9464_v63, %v9463_v38  ;;  %v2120_v2 = vadd.f32 %v9465_v4, %v1966_v32  ;;  %v1987_v41 = vadd.f32 %v9469_v18, %v1763_v47  ;;  %v9471_v63 = vld [vmem:[#allocation137_spill] sm:$0xff]  ;;  %v9473_v47 = vld [vmem:[#allocation110_spill] sm:$0xff] }
 0x2e1   : > { %1857 = vrot.lane.b32.xlu1 %v6858_v7, %s9269_s23  ;;  %v1156_v38 = vadd.f32 %v9471_v63, %v6120_v56  ;;  %v1984_v4 = vadd.f32 %v6616_v11, %v1760_v8  ;;  %v9481_v63 = vld [vmem:[#allocation63_spill] sm:$0xff] }
 0x2e2   : > { %v6894_v0 = vpop.permute.xlu2 %1411  ;;  %v1308_v17 = vpop.permute.xlu0 %1307 }
 0x2e3   : > { %9460 = vst [vmem:[#allocation118_spill] sm:$0xff] %v6894_v0  ;;  %v1384_v35 = vadd.f32 %v1308_v17, %v1160_v34  ;;  %v6911_v37 = vpop.permute.xlu1 %2021  ;;  %v9466_v34 = vld [vmem:[#allocation128_spill] sm:$0xff]  ;;  %v9467_v0 = vmax.f32 %v6851_v29, 0.0  ;;  %v9472_v29 = vld [vmem:[#allocation39_spill] sm:$0xff] }
 0x2e4   : > { %v1378_v17 = vadd.f32 %v9466_v34, %v1154_v36  ;;  %v2735_v36 = vsel %vm939_vm7, %v2732_v16, %v2734_v19  ;;  %v1379_v34 = vadd.f32 %v6523_v3, %v1155_v53  ;;  %v9117_v3 = vrot.slane %v6068_v24, 6  ;;  %v9476_v19 = vld [vmem:[#allocation42_spill] sm:$0xff] }
 0x2e5   : > { %v6928_v10 = vrot.slane %v9467_v0, 1  ;;  %v1538_v26 = vadd.f32 %v9470_v28, %v1384_v35  ;;  %v1159_v0 = vadd.f32 %v6712_v43, %v6229_v21  ;;  %v2344_v28 = vadd.f32 %v9473_v47, %v2120_v2  ;;  %v9475_v21 = vld [vmem:[#allocation54_spill] sm:$0xff] }
 0x2e6   : > { %v1532_v32 = vadd.f32 %v6542_v62, %v1378_v17  ;;  %v1380_v35 = vadd.f32 %v6400_v54, %v1156_v38  ;;  %v9474_v62 = vld [vmem:[#allocation41_spill] sm:$0xff]  ;;  %v1533_v11 = vadd.f32 %v6546_v51, %v1379_v34  ;;  %v2141_v43 = vadd.f32 %v9475_v21, %v1987_v41 }
 0x2e7   : > { %9468 = vst [vmem:[#allocation23_spill] sm:$0xff] %v6928_v10  ;;  %v1762_v18 = vadd.f32 %v9472_v29, %v1538_v26  ;;  %v2739_v54 = vsel %vm939_vm7, %v2736_v12, %v6928_v10  ;;  %v9479_v29 = vld [vmem:[#allocation44_spill] sm:$0xff]  ;;  %v6966_v41 = vmax.f32 %v2646_v59, %v2735_v36  ;;  %v2730_v53 = vrot.slane %v2645_v48, 1  ;;  %v9485_v36 = vld [vmem:[#allocation45_spill] sm:$0xff] }
 0x2e8   : > { %v1756_v56 = vadd.f32 %v6553_v61, %v1532_v32  ;;  %2239 = vrot.lane.b32.xlu2 %v2166_v1, %s9239_s18  ;;  %2015 = vrot.lane.b32.xlu0 %v9474_v62, %s9228_s26  ;;  %v9477_v61 = vmax.f32 %v6820_v45, 0.0  ;;  %v1534_v2 = vadd.f32 %v6465_v46, %v1380_v35  ;;  %v2138_v1 = vadd.f32 %v9479_v29, %v1984_v4  ;;  %v9489_v62 = vld [vmem:[#allocation160_spill] sm:$0xff]  ;;  %v9490_v21 = vld [vmem:[#allocation161_spill] sm:$0xff] }
 0x2e9   : > { %v1986_v8 = vadd.f32 %v9476_v19, %v1762_v18  ;;  %2041 = vrot.lane.b32.xlu1 %v6474_v31, %s9228_s26  ;;  %9480 = vst [vmem:[#allocation97_spill] sm:$0xff] %v6966_v41  ;;  %v1757_v17 = vadd.f32 %v6557_v22, %v1533_v11  ;;  %v1383_v31 = vadd.f32 %v6525_v57, %v1159_v0  ;;  %v9482_v46 = vrot.slane %v6095_v60, 6  ;;  %v9486_v0 = vld [vmem:[#allocation47_spill] sm:$0xff]  ;;  %v9488_v60 = vld [vmem:[#allocation34_spill] sm:$0xff]  ;;  %v9491_v19 = vld [vmem:[#allocation49_spill] sm:$0xff] }
 0x2ea   : > { %v6960_v26 = vmax.f32 %v9477_v61, %v2737_v40  ;;  %v6964_v23 = vpop.permute.xlu2 %1861  ;;  %v1684_v51 = vpop.permute.xlu0 %1683  ;;  %v1980_v45 = vadd.f32 %v6418_v15, %v1756_v56  ;;  %v9483_v59 = vmax.f32 %v6834_v33, 0.0  ;;  %v1758_v22 = vadd.f32 %v6581_v30, %v1534_v2  ;;  %v9487_v15 = vld [vmem:[#allocation159_spill] sm:$0xff]  ;;  %v9492_v61 = vld [vmem:[#allocation154_spill] sm:$0xff] }
 0x2eb   : > { %v2140_v12 = vadd.f32 %v9481_v63, %v1986_v8  ;;  %v2471_v38 = vpop.permute.xlu1 %2470  ;;  %v2417_v32 = vsel %vm778_vm1, %v9117_v3, %v9482_v46  ;;  %v1981_v57 = vadd.f32 %v6614_v49, %v1757_v17  ;;  %v2365_v34 = vadd.f32 %v9485_v36, %v2141_v43  ;;  %v9496_v46 = vld [vmem:[#allocation167_spill] sm:$0xff] }
 0x2ec   : > { %9478 = vst [vmem:[#allocation101_spill] sm:$0xff] %v6960_v26  ;;  %v2567_v40 = vadd.f32 %v2471_v38, %v2344_v28  ;;  %v6979_v4 = vmax.f32 %v9483_v59, %v2739_v54  ;;  %v1157_v47 = vadd.f32 %v9487_v15, %v6159_v5  ;;  %v2362_v28 = vadd.f32 %v9488_v60, %v2138_v1  ;;  %v9494_v1 = vld [vmem:[#allocation48_spill] sm:$0xff]  ;;  %v9497_v59 = vld [vmem:[#allocation157_spill] sm:$0xff]  ;;  %v9501_v15 = vld [vmem:[#allocation115_spill] sm:$0xff] }
 0x2ed   : > { %v2364_v18 = vadd.f32 %v9486_v0, %v2140_v12  ;;  %v9121_v56 = vrot.slane %v6966_v41, 2  ;;  %v2135_v33 = vadd.f32 %v6836_v9, %v1981_v57  ;;  %v1537_v11 = vadd.f32 %v9489_v62, %v1383_v31  ;;  %v9493_v9 = vld [vmem:[#allocation151_spill] sm:$0xff] }
 0x2ee   : > { %9484 = vst [vmem:[#allocation105_spill] sm:$0xff] %v6979_v4  ;;  %v2607_v35 = vadd.f32 %v6804_v13, %v2567_v40  ;;  %v2733_v30 = vsel %vm939_vm7, %v2730_v53, %v2732_v16  ;;  %v2914_v49 = vrot.slane %v6960_v26, 2  ;;  %v1381_v43 = vadd.f32 %v9490_v21, %v1157_v47  ;;  %v9495_v31 = vld [vmem:[#allocation35_spill] sm:$0xff]  ;;  %v9568_v26 = vld [vmem:[#allocation117_spill] sm:$0xff] }
 0x2ef   : > { %v2587_v8 = vadd.f32 %v9491_v19, %v2364_v18  ;;  %v9116_v5 = vrot.slane %v6979_v4, 2  ;;  %v2134_v2 = vadd.f32 %v9492_v61, %v1980_v45  ;;  %v1982_v29 = vadd.f32 %v9493_v9, %v1758_v22  ;;  %v9502_v60 = vld [vmem:[#allocation43_spill] sm:$0xff] }
 0x2f0   : > { %v2644_v54 = vmax.f32 %v2607_v35, 0.0  ;;  %2492 = vrot.lane.b32.xlu2 %v2419_v6, %s9259_s30  ;;  %2269 = vrot.lane.b32.xlu0 %v2196_v44, %s9239_s18  ;;  %v2588_v17 = vadd.f32 %v9494_v1, %v2365_v34  ;;  %v1761_v16 = vadd.f32 %v1684_v51, %v1537_v11  ;;  %v2585_v63 = vadd.f32 %v9495_v31, %v2362_v28  ;;  %v9508_v1 = vld [vmem:[#allocation18_spill] sm:$0xff] }
 0x2f1   : > { %2490 = vrot.lane.b32.xlu1 %v2417_v32, %s9259_s30  ;;  %v1535_v12 = vadd.f32 %v6747_v50, %v1381_v43  ;;  %v7009_v40 = vmax.f32 %v2645_v48, %v2733_v30  ;;  %v2136_v45 = vadd.f32 %v9496_v46, %v1982_v29  ;;  %v2359_v22 = vadd.f32 %v9497_v59, %v2135_v33  ;;  %v9499_v32 = vld [vmem:[#allocation162_spill] sm:$0xff]  ;;  %v9503_v33 = vld [vmem:[#allocation156_spill] sm:$0xff]  ;;  %v9505_v43 = vld [vmem:[#allocation55_spill] sm:$0xff] }
 0x2f2   : > { %v7005_v38 = vrot.slane %v2644_v54, 1  ;;  %v7007_v6 = vpop.permute.xlu2 %2045  ;;  %v1908_v44 = vpop.permute.xlu0 %1907  ;;  %v2915_v51 = vsel %vm1163_vm5, %v9121_v56, %v2914_v49  ;;  %v2358_v50 = vadd.f32 %v9499_v32, %v2134_v2  ;;  %v2917_v48 = vsel %vm1163_vm5, %v2914_v49, %v9116_v5  ;;  %v9504_v49 = vld [vmem:[#allocation163_spill] sm:$0xff] }
 0x2f3   : > { %v1985_v57 = vadd.f32 %v1908_v44, %v1761_v16  ;;  %v7013_v36 = vpop.permute.xlu1 %1029  ;;  %v2627_v0 = vadd.f32 %v6804_v13, %v2587_v8  ;;  %v7026_v18 = vadd.f32 %v6804_v13, %v2588_v17  ;;  %v2360_v47 = vadd.f32 %v9501_v15, %v2136_v45  ;;  %v9506_v2 = vld [vmem:[#allocation171_spill] sm:$0xff]  ;;  %v9509_v17 = vld [vmem:[#allocation25_spill] sm:$0xff]  ;;  %v9512_v44 = vld [vmem:[#allocation96_spill] sm:$0xff] }
 0x2f4   : > { %9498 = vst [vmem:[#allocation106_spill] sm:$0xff] %v7013_v36  ;;  %v2731_v34 = vsel %vm939_vm7, %v7005_v38, %v2730_v53  ;;  %v1759_v62 = vadd.f32 %v9503_v33, %v1535_v12  ;;  %v9120_v11 = vrot.slane %v7009_v40, 2  ;;  %v3001_v53 = vmax.f32 %v7009_v40, %v2917_v48  ;;  %v9513_v45 = vld [vmem:[#allocation59_spill] sm:$0xff]  ;;  %v9567_v36 = vld [vmem:[#allocation81_spill] sm:$0xff] }
 0x2f5   : > { %9500 = vst [vmem:[#allocation126_spill] sm:$0xff] %v7026_v18  ;;  %v2139_v28 = vadd.f32 %v9502_v60, %v1985_v57  ;;  %v7030_v35 = vmax.f32 %v2644_v54, %v2731_v34  ;;  %v2625_v30 = vadd.f32 %v6804_v13, %v2585_v63  ;;  %v2582_v21 = vadd.f32 %v9504_v49, %v2359_v22  ;;  %v9507_v54 = vld [vmem:[#allocation16_spill] sm:$0xff]  ;;  %v9517_v49 = vld [vmem:[#allocation29_spill] sm:$0xff] }
 0x2f6   : > { %v2581_v9 = vadd.f32 %v9506_v2, %v2358_v50  ;;  %v1983_v29 = vadd.f32 %v9507_v54, %v1759_v62  ;;  %v9510_v16 = vrot.slane %v9509_v17, 2  ;;  %v9511_v31 = vrot.slane %v9408_v52, 2  ;;  %v9516_v62 = vld [vmem:[#allocation168_spill] sm:$0xff] }
 0x2f7   : > { %v2363_v19 = vadd.f32 %v9505_v43, %v2139_v28  ;;  %v9118_v8 = vrot.slane %v7030_v35, 2  ;;  %v3000_v61 = vmax.f32 %v7030_v35, %v2915_v51  ;;  %v2664_v12 = vmax.f32 %v2627_v0, 0.0 }
 0x2f8   : > { %1311 = vrot.lane.b32.xlu2 %v9508_v1, %s9254_s1  ;;  %1023 = vrot.lane.b32.xlu0 %v6906_v55, %s9247_s29  ;;  %v7051_v63 = vsel %vm1163_vm5, %v9511_v31, %v9510_v16  ;;  %v2583_v46 = vadd.f32 %v9512_v44, %v2360_v47  ;;  %v9115_v57 = vmax.f32 %v7026_v18, 0.0  ;;  %v7068_v50 = vadd.f32 %v6804_v13, %v2582_v21  ;;  %v9522_v1 = vld [vmem:[#allocation30_spill] sm:$0xff]  ;;  %v9553_v18 = vld [vmem:[#allocation19_spill] sm:$0xff] }
 0x2f9   : > { %v2586_v59 = vadd.f32 %v9513_v45, %v2363_v19  ;;  %1249 = vrot.lane.b32.xlu1 %v7051_v63, %s9254_s1  ;;  %v3027_v22 = vpack.c.bf16 %v3001_v53, %v3000_v61  ;;  %v7062_v55 = vsel %vm1163_vm5, %v9118_v8, %v9120_v11  ;;  %v2662_v15 = vmax.f32 %v2625_v30, 0.0  ;;  %v9520_v61 = vld [vmem:[#allocation172_spill] sm:$0xff] }
 0x2fa   : > { %v7065_v51 = vpop.permute.xlu2 %2494  ;;  %v2058_v32 = vpop.permute.xlu0 %2057  ;;  %v2621_v47 = vadd.f32 %v6804_v13, %v2581_v9  ;;  %v2839_v60 = vrot.slane %v2664_v12, 1  ;;  %v2623_v28 = vadd.f32 %v6804_v13, %v2583_v46  ;;  %v9125_v43 = vrot.slane %v9517_v49, 3 }
 0x2fb   : > { %v2626_v34 = vadd.f32 %v6804_v13, %v2586_v59  ;;  %v2137_v48 = vadd.f32 %v2058_v32, %v1983_v29  ;;  %3185 = vmatpush.bf16.msra.mxu1 %v3027_v22  ;;  %v7071_v0 = vpop.permute.xlu1 %1409  ;;  %v7081_v21 = vrot.slane %v9115_v57, 1  ;;  %v2764_v2 = vrot.slane %v2662_v15, 1  ;;  %v9521_v29 = vld [vmem:[#allocation73_spill] sm:$0xff] }
 0x2fc   : > { %9514 = vst [vmem:[#allocation82_spill] sm:$0xff] %v7071_v0  ;;  %v2659_v9 = vmax.f32 %v7068_v50, 0.0  ;;  %v2658_v54 = vmax.f32 %v2621_v47, 0.0  ;;  %v9523_v16 = vrot.slane %v5636_v14, 3  ;;  %v2660_v46 = vmax.f32 %v2623_v28, 0.0  ;;  %v9531_v57 = vld [vmem:[#allocation173_spill] sm:$0xff] }
 0x2fd   : > { %v7075_v33 = vmax.f32 %v2626_v34, 0.0  ;;  %v2361_v53 = vadd.f32 %v9516_v62, %v2137_v48  ;;  %9518 = vst [vmem:[#allocation120_spill] sm:$0xff] %v7081_v21  ;;  %v2842_v44 = vsel %vm939_vm7, %v2839_v60, %v7081_v21  ;;  %v9559_v21 = vld [vmem:[#allocation28_spill] sm:$0xff]  ;;  %v1152_v4 = vadd.f32 %v9568_v26, %v9567_v36 }
 0x2fe   : > { %v1558_v31 = vsel %vm1541_vm3, %v9125_v43, %v9523_v16  ;;  %v9544_v43 = vrot.slane %v9450_v25, 1  ;;  %v9570_v10 = vrot.slane %v7009_v40, 2  ;;  %v9573_v26 = vrot.slane %v5691_v58, 5 }
 0x2ff   : > { %9515 = vst [vmem:[#allocation75_spill] sm:$0xff] %v7075_v33  ;;  %v7084_v19 = vrot.slane %v7075_v33, 1  ;;  %v2584_v30 = vadd.f32 %v9520_v61, %v2361_v53  ;;  %v7116_v53 = vmax.f32 %v2664_v12, %v2842_v44  ;;  %v2758_v61 = vrot.slane %v2659_v9, 1 }
 0x300   : > { %1881 = vrot.lane.b32.xlu2 %v9521_v29, %s9269_s23  ;;  %1405 = vrot.lane.b32.xlu0 %v9522_v1, %s9198_s20 }
 0x301   : > { %9519 = vst [vmem:[#allocation107_spill] sm:$0xff] %v7084_v19  ;;  %v2624_v45 = vadd.f32 %v6804_v13, %v2584_v30  ;;  %1631 = vrot.lane.b32.xlu1 %v1558_v31, %s9211_s28  ;;  %v2767_v59 = vsel %vm939_vm7, %v2764_v2, %v7084_v19  ;;  %v2840_v22 = vsel %vm939_vm7, %v7084_v19, %v2839_v60  ;;  %v7118_v30 = vrot.slane %v2658_v54, 1 }
 0x302   : > { %v7105_v32 = vpop.permute.xlu2 %1253  ;;  %v7107_v50 = vpop.permute.xlu0 %1639  ;;  %v7109_v34 = vmax.f32 %v2662_v15, %v2767_v59  ;;  %v2848_v48 = vmax.f32 %v7075_v33, %v2840_v22  ;;  %9527 = vst [vmem:[#allocation109_spill] sm:$0xff] %v7116_v53  ;;  %v2760_v60 = vrot.slane %v2660_v46, 1  ;;  %v9528_v15 = vld [vmem:[#allocation69_spill] sm:$0xff]  ;;  %v9530_v59 = vrot.slane %v9424_v42, 3  ;;  %v9551_v33 = vld [vmem:[#allocation22_spill] sm:$0xff] }
 0x303   : > { %9524 = vst [vmem:[#allocation129_spill] sm:$0xff] %v7105_v32  ;;  %v7114_v28 = vpop.permute.xlu1 %1663  ;;  %v2661_v62 = vmax.f32 %v2624_v45, 0.0  ;;  %v9529_v31 = vrot.slane %v9528_v15, 3  ;;  %v9119_v12 = vrot.slane %v7116_v53, 2  ;;  %v2759_v44 = vsel %vm939_vm7, %v7118_v30, %v2758_v61 }
 0x304   : > { %9525 = vst [vmem:[#allocation89_spill] sm:$0xff] %v7109_v34  ;;  %v2944_v1 = vrot.slane %v7109_v34, 2  ;;  %v2946_v16 = vrot.slane %v2848_v48, 2  ;;  %v2761_v3 = vsel %vm939_vm7, %v2758_v61, %v2760_v60  ;;  %v9547_v34 = vrot.slane %v9405_v20, 5 }
 0x305   : > { %9526 = vst [vmem:[#allocation123_spill] sm:$0xff] %v7114_v28  ;;  %v2762_v29 = vrot.slane %v2661_v62, 1  ;;  %v1586_v22 = vsel %vm1541_vm3, %v9530_v59, %v9529_v31  ;;  %v9532_v31 = vld [vmem:[#allocation158_spill] sm:$0xff]  ;;  %v9560_v32 = vrot.slane %v9517_v49, 3 }
 0x307   : > { %v2763_v47 = vsel %vm939_vm7, %v2760_v60, %v2762_v29  ;;  %v2765_v45 = vsel %vm939_vm7, %v2762_v29, %v2764_v2  ;;  %v2947_v2 = vsel %vm1163_vm5, %v2944_v1, %v2946_v16  ;;  %v2949_v29 = vsel %vm1163_vm5, %v2946_v16, %v9119_v12  ;;  %v9534_v16 = vld [vmem:[#allocation84_spill] sm:$0xff] }
 0x308   : > { %2013 = vrot.lane.b32.xlu2 %v9531_v57, %s9228_s26  ;;  %1659 = vrot.lane.b32.xlu0 %v1586_v22, %s9211_s28  ;;  %v7134_v48 = vmax.f32 %v2660_v46, %v2763_v47  ;;  %v2833_v5 = vmax.f32 %v2661_v62, %v2765_v45  ;;  %v9124_v60 = vrot.slane %v9405_v20, 6  ;;  %v7152_v22 = vmax.f32 %v2658_v54, %v2759_v44  ;;  %v9535_v54 = vld [vmem:[#allocation33_spill] sm:$0xff]  ;;  %v9536_v44 = vld [vmem:[#allocation76_spill] sm:$0xff] }
 0x309   : > { %2011 = vrot.lane.b32.xlu1 %v9532_v31, %s9228_s26  ;;  %v7154_v45 = vmax.f32 %v2659_v9, %v2761_v3  ;;  %v9126_v12 = vrot.slane %v9534_v16, 5  ;;  %v1139_v3 = vadd.f32 %v9536_v44, %v9535_v54  ;;  %v9541_v44 = vld [vmem:[#allocation20_spill] sm:$0xff] }
 0x30a   : > { %v7143_v59 = vpop.permute.xlu2 %1633  ;;  %v7145_v8 = vpop.permute.xlu0 %2019  ;;  %v9123_v57 = vrot.slane %v7134_v48, 2  ;;  %v2942_v46 = vrot.slane %v2833_v5, 2  ;;  %v3016_v47 = vmax.f32 %v7134_v48, %v2947_v2  ;;  %v3017_v62 = vmax.f32 %v2833_v5, %v2949_v29 }
 0x30b   : > { %9533 = vst [vmem:[#allocation111_spill] sm:$0xff] %v7143_v59  ;;  %v7149_v61 = vpop.permute.xlu1 %2043  ;;  %v9122_v2 = vrot.slane %v5691_v58, 6  ;;  %v9571_v59 = vld [vmem:[#allocation60_spill] sm:$0xff] }
 0x30c   : > { %v3035_v31 = vpack.c.bf16 %v3017_v62, %v3016_v47  ;;  %v2943_v11 = vsel %vm1163_vm5, %v9123_v57, %v2942_v46  ;;  %v2945_v56 = vsel %vm1163_vm5, %v2942_v46, %v2944_v1  ;;  %v9537_v1 = vld [vmem:[#allocation150_spill] sm:$0xff]  ;;  %v9543_v57 = vld [vmem:[#allocation17_spill] sm:$0xff] }
 0x30d   : > { %v3014_v5 = vmax.f32 %v7152_v22, %v2943_v11  ;;  %v3015_v29 = vmax.f32 %v7154_v45, %v2945_v56  ;;  %v2389_v9 = vsel %vm778_vm1, %v9122_v2, %v9124_v60  ;;  %v9538_v11 = vrot.slane %v6068_v24, 5  ;;  %v9542_v2 = vld [vmem:[#allocation88_spill] sm:$0xff] }
 0x30e   : > { %3234 = vmatpush.bf16.msrb.mxu2 %v3035_v31  ;;  %v9540_v31 = vld [vmem:[#allocation74_spill] sm:$0xff]  ;;  %v9132_v60 = vrot.slane %v9543_v57, 1 }
 0x30f   : > { %v3034_v47 = vpack.c.bf16 %v3015_v29, %v3014_v5  ;;  %v2192_v56 = vsel %vm2143_vm4, %v9126_v12, %v9538_v11  ;;  %v1363_v5 = vadd.f32 %v9540_v31, %v1139_v3  ;;  %v9545_v12 = vld [vmem:[#allocation38_spill] sm:$0xff]  ;;  %v9548_v3 = vld [vmem:[#allocation79_spill] sm:$0xff] }
 0x310   : > { %2462 = vrot.lane.b32.xlu2 %v2389_v9, %s9259_s30  ;;  %2039 = vrot.lane.b32.xlu0 %v9537_v1, %s9228_s26  ;;  %v945_v9 = vrot.slane %v9541_v44, 1 }
 0x311   : > { %2265 = vrot.lane.b32.xlu1 %v2192_v56, %s9239_s18  ;;  %v1517_v1 = vadd.f32 %v9542_v2, %v1363_v5  ;;  %v9546_v56 = vrot.slane %v9545_v12, 5 }
 0x312   : > { %v7180_v46 = vpop.permute.xlu2 %1887  ;;  %v7182_v62 = vpop.permute.xlu0 %2273  ;;  %3235 = vmatpush.bf16.msrb.mxu2 %v3034_v47  ;;  %v948_v11 = vsel %vm939_vm7, %v945_v9, %v9544_v43  ;;  %v946_v2 = vsel %vm939_vm7, %v9132_v60, %v945_v9  ;;  %v9554_v9 = vrot.slane %v9553_v18, 2 }
 0x313   : > { %9539 = vst [vmem:[#allocation132_spill] sm:$0xff] %v7180_v46  ;;  %v2246_v29 = vpop.permute.xlu1 %2245  ;;  %v2168_v19 = vsel %vm2143_vm4, %v9547_v34, %v9546_v56  ;;  %v1741_v47 = vadd.f32 %v9548_v3, %v1517_v1  ;;  %v1391_v34 = vrot.slane %v9551_v33, 2  ;;  %v9552_v56 = vld [vmem:[#allocation90_spill] sm:$0xff]  ;;  %v9585_v46 = vld [vmem:[#allocation85_spill] sm:$0xff] }
 0x315   : > { %v1392_v1 = vsel %vm1163_vm5, %v9554_v9, %v1391_v34 }
 0x318   : > { %1021 = vrot.lane.b32.xlu2 %v948_v11, %s9247_s29  ;;  %2241 = vrot.lane.b32.xlu0 %v2168_v19, %s9239_s18  ;;  %v1965_v11 = vadd.f32 %v9552_v56, %v1741_v47  ;;  %v9134_v19 = vrot.slane %v9450_v25, 2  ;;  %v9556_v56 = vld [vmem:[#allocation164_spill] sm:$0xff] }
 0x319   : > { %1019 = vrot.lane.b32.xlu1 %v946_v2, %s9247_s29  ;;  %v9555_v2 = vrot.slane %v9408_v52, 2 }
 0x31a   : > { %v7203_v31 = vpop.permute.xlu2 %2267  ;;  %v7205_v43 = vpop.permute.xlu0 %1027  ;;  %v2119_v53 = vadd.f32 %v6911_v37, %v1965_v11 }
 0x31b   : > { %9549 = vst [vmem:[#allocation80_spill] sm:$0xff] %v7205_v43  ;;  %v7207_v5 = vpop.permute.xlu1 %1251  ;;  %v7221_v3 = vsel %vm1163_vm5, %v9134_v19, %v9555_v2  ;;  %v9135_v2 = vrot.slane %v9559_v21, 3  ;;  %v9136_v19 = vrot.slane %v9517_v49, 4 }
 0x31c   : > { %9550 = vst [vmem:[#allocation100_spill] sm:$0xff] %v7207_v5  ;;  %v2343_v47 = vadd.f32 %v2246_v29, %v2119_v53  ;;  %v9561_v29 = vld [vmem:[#allocation170_spill] sm:$0xff] }
 0x31d   : > { %v1556_v53 = vsel %vm1541_vm3, %v9135_v2, %v9560_v32 }
 0x320   : > { %1465 = vrot.lane.b32.xlu2 %v1392_v1, %s9198_s20  ;;  %1247 = vrot.lane.b32.xlu0 %v7221_v3, %s9254_s1 }
 0x321   : > { %1403 = vrot.lane.b32.xlu1 %v9556_v56, %s9198_s20 }
 0x322   : > { %v2469_v37 = vpop.permute.xlu2 %2468  ;;  %v7228_v11 = vpop.permute.xlu0 %1281 }
 0x323   : > { %9557 = vst [vmem:[#allocation127_spill] sm:$0xff] %v7228_v11  ;;  %v2566_v34 = vadd.f32 %v2469_v37, %v2343_v47  ;;  %v7230_v9 = vpop.permute.xlu1 %1435  ;;  %v9562_v47 = vrot.slane %v5636_v14, 4 }
 0x324   : > { %9558 = vst [vmem:[#allocation112_spill] sm:$0xff] %v7230_v9  ;;  %v9582_v9 = vld [vmem:[#allocation152_spill] sm:$0xff] }
 0x325   : > { %v2606_v60 = vadd.f32 %v6804_v13, %v2566_v34  ;;  %v7248_v56 = vsel %vm1765_vm6, %v9136_v19, %v9562_v47  ;;  %v9565_v34 = vld [vmem:[#allocation70_spill] sm:$0xff]  ;;  %v2161_v47 = vrot.slane %v9535_v54, 5 }
 0x327   : > { %v2643_v1 = vmax.f32 %v2606_v60, 0.0 }
 0x328   : > { %2035 = vrot.lane.b32.xlu2 %v9561_v29, %s9228_s26  ;;  %1629 = vrot.lane.b32.xlu0 %v1556_v53, %s9211_s28  ;;  %v1138_v29 = vadd.f32 %v9565_v34, %v5668_v39  ;;  %v9142_v34 = vrot.slane %v5668_v39, 5 }
 0x329   : > { %v7250_v37 = vrot.slane %v2643_v1, 1  ;;  %1855 = vrot.lane.b32.xlu1 %v7248_v56, %s9269_s23 }
 0x32a   : > { %v7254_v60 = vpop.permute.xlu2 %1087  ;;  %v7256_v32 = vpop.permute.xlu0 %1661  ;;  %v2162_v40 = vsel %vm2143_vm4, %v9142_v34, %v2161_v47  ;;  %v9581_v34 = vld [vmem:[#allocation146_spill] sm:$0xff] }
 0x32b   : > { %9563 = vst [vmem:[#allocation113_spill] sm:$0xff] %v7254_v60  ;;  %v7260_v53 = vpop.permute.xlu1 %1885  ;;  %v2729_v2 = vsel %vm939_vm7, %v7250_v37, %v7005_v38  ;;  %v9569_v60 = vrot.slane %v6966_v41, 2  ;;  %v2164_v41 = vsel %vm2143_vm4, %v2161_v47, %v9573_v26  ;;  %v9580_v38 = vld [vmem:[#allocation71_spill] sm:$0xff] }
 0x32c   : > { %9564 = vst [vmem:[#allocation98_spill] sm:$0xff] %v7256_v32  ;;  %v7266_v19 = vmax.f32 %v2643_v1, %v2729_v2  ;;  %v1362_v2 = vadd.f32 %v9571_v59, %v1138_v29  ;;  %v9572_v1 = vld [vmem:[#allocation119_spill] sm:$0xff]  ;;  %v9146_v32 = vrot.slane %v9567_v36, 5 }
 0x32d   : > { %9566 = vst [vmem:[#allocation102_spill] sm:$0xff] %v7260_v53  ;;  %v7275_v5 = vsel %vm1163_vm5, %v9570_v10, %v9569_v60  ;;  %v1376_v0 = vadd.f32 %v9572_v1, %v1152_v4  ;;  %v9574_v10 = vld [vmem:[#allocation91_spill] sm:$0xff]  ;;  %v9575_v60 = vrot.slane %v7030_v35, 2  ;;  %v9578_v1 = vld [vmem:[#allocation149_spill] sm:$0xff] }
 0x32e   : > { %v9143_v43 = vrot.slane %v7266_v19, 2  ;;  %v9577_v4 = vld [vmem:[#allocation143_spill] sm:$0xff]  ;;  %v1516_v47 = vadd.f32 %v9580_v38, %v1362_v2 }
 0x32f   : > { %v1153_v29 = vadd.f32 %v9577_v4, %v9534_v16  ;;  %v1530_v26 = vadd.f32 %v9578_v1, %v1376_v0  ;;  %v9148_v4 = vrot.slane %v9534_v16, 6  ;;  %v9584_v1 = vld [vmem:[#allocation153_spill] sm:$0xff]  ;;  %v9586_v2 = vld [vmem:[#allocation131_spill] sm:$0xff] }
 0x330   : > { %2237 = vrot.lane.b32.xlu2 %v2164_v41, %s9239_s18  ;;  %1883 = vrot.lane.b32.xlu0 %v9574_v10, %s9269_s23  ;;  %v7297_v59 = vsel %vm1163_vm5, %v9143_v43, %v9575_v60  ;;  %v9145_v60 = vrot.slane %v9541_v44, 2  ;;  %v9583_v43 = vld [vmem:[#allocation83_spill] sm:$0xff] }
 0x331   : > { %9576 = vst [vmem:[#allocation130_spill] sm:$0xff] %v7297_v59  ;;  %2235 = vrot.lane.b32.xlu1 %v2162_v40, %s9239_s18  ;;  %v1377_v35 = vadd.f32 %v9581_v34, %v1153_v29  ;;  %v1754_v11 = vadd.f32 %v9582_v9, %v1530_v26  ;;  %v1740_v0 = vadd.f32 %v9583_v43, %v1516_v47  ;;  %v9587_v29 = vrot.slane %v9534_v16, 5  ;;  %v9589_v26 = vld [vmem:[#allocation144_spill] sm:$0xff]  ;;  %v9593_v59 = vld [vmem:[#allocation155_spill] sm:$0xff] }
 0x332   : > { %v7303_v41 = vpop.permute.xlu2 %1657  ;;  %v7305_v10 = vpop.permute.xlu0 %1863 }
 0x333   : > { %9579 = vst [vmem:[#allocation116_spill] sm:$0xff] %v7303_v41  ;;  %v7310_v53 = vpop.permute.xlu1 %2017  ;;  %v1978_v40 = vadd.f32 %v9584_v1, %v1754_v11  ;;  %v9144_v41 = vrot.slane %v9543_v57, 2  ;;  %v1964_v38 = vadd.f32 %v9585_v46, %v1740_v0  ;;  %v1531_v34 = vadd.f32 %v9586_v2, %v1377_v35  ;;  %v9590_v2 = vld [vmem:[#allocation134_spill] sm:$0xff] }
 0x334   : > { %v2190_v43 = vsel %vm2143_vm4, %v9146_v32, %v9587_v29  ;;  %v9588_v46 = vrot.slane %v6068_v24, 6  ;;  %v9592_v24 = vld [vmem:[#allocation27_spill] sm:$0xff] }
 0x335   : > { %v7325_v9 = vsel %vm1163_vm5, %v9144_v41, %v9145_v60  ;;  %v2132_v47 = vadd.f32 %v9589_v26, %v1978_v40  ;;  %v2118_v35 = vadd.f32 %v7145_v8, %v1964_v38  ;;  %v1755_v29 = vadd.f32 %v9590_v2, %v1531_v34  ;;  %v9591_v41 = vld [vmem:[#allocation95_spill] sm:$0xff]  ;;  %v9594_v38 = vld [vmem:[#allocation166_spill] sm:$0xff] }
 0x336   : > { %v2415_v11 = vsel %vm778_vm1, %v9148_v4, %v9588_v46  ;;  %v1551_v28 = vrot.slane %v9592_v24, 3  ;;  %v9149_v8 = vrot.slane %v9509_v17, 3  ;;  %v9595_v4 = vrot.slane %v9559_v21, 3 }
 0x337   : > { %v2356_v60 = vadd.f32 %v9591_v41, %v2132_v47  ;;  %v1979_v42 = vadd.f32 %v9593_v59, %v1755_v29  ;;  %v9596_v41 = vrot.slane %v9545_v12, 6  ;;  %v9597_v47 = vrot.slane %v9405_v20, 6 }
 0x338   : > { %1243 = vrot.lane.b32.xlu2 %v7325_v9, %s9254_s1  ;;  %2263 = vrot.lane.b32.xlu0 %v2190_v43, %s9239_s18  ;;  %v1554_v34 = vsel %vm1541_vm3, %v1551_v28, %v9595_v4 }
 0x339   : > { %2488 = vrot.lane.b32.xlu1 %v2415_v11, %s9259_s30  ;;  %v2579_v46 = vadd.f32 %v7065_v51, %v2356_v60  ;;  %v2133_v11 = vadd.f32 %v9594_v38, %v1979_v42  ;;  %v1552_v42 = vsel %vm1541_vm3, %v9149_v8, %v1551_v28  ;;  %v9610_v8 = vld [vmem:[#allocation13_spill] sm:$0xff] }
 0x33a   : > { %v7343_v0 = vpop.permute.xlu2 %1859  ;;  %v2244_v1 = vpop.permute.xlu0 %2243 }
 0x33b   : > { %v2342_v43 = vadd.f32 %v2244_v1, %v2118_v35  ;;  %v2467_v32 = vpop.permute.xlu1 %2466  ;;  %v2391_v35 = vsel %vm778_vm1, %v9597_v47, %v9596_v41  ;;  %v2619_v51 = vadd.f32 %v6804_v13, %v2579_v46  ;;  %v9599_v46 = vld [vmem:[#allocation165_spill] sm:$0xff] }
 0x33d   : > { %v2565_v40 = vadd.f32 %v2467_v32, %v2342_v43  ;;  %v2357_v32 = vadd.f32 %v7182_v62, %v2133_v11  ;;  %v2656_v2 = vmax.f32 %v2619_v51, 0.0  ;;  %v9154_v11 = vrot.slane %v7152_v22, 2 }
 0x33f   : > { %v2605_v26 = vadd.f32 %v6804_v13, %v2565_v40  ;;  %v7387_v38 = vrot.slane %v2656_v2, 1 }
 0x340   : > { %1627 = vrot.lane.b32.xlu2 %v1554_v34, %s9211_s28  ;;  %2464 = vrot.lane.b32.xlu0 %v2391_v35, %s9259_s30 }
 0x341   : > { %v2642_v59 = vmax.f32 %v2605_v26, 0.0  ;;  %1625 = vrot.lane.b32.xlu1 %v1552_v42, %s9211_s28  ;;  %v2938_v26 = vrot.slane %v7154_v45, 2 }
 0x342   : > { %v7369_v12 = vpop.permute.xlu2 %2239  ;;  %v2497_v20 = vpop.permute.xlu0 %2496 }
 0x343   : > { %v7371_v60 = vrot.slane %v2642_v59, 1  ;;  %v2580_v4 = vadd.f32 %v2497_v20, %v2357_v32  ;;  %v7373_v1 = vpop.permute.xlu1 %1025  ;;  %v9150_v20 = vrot.slane %v9559_v21, 4 }
 0x344   : > { %9598 = vst [vmem:[#allocation87_spill] sm:$0xff] %v7373_v1 }
 0x345   : > { %v2620_v29 = vadd.f32 %v6804_v13, %v2580_v4  ;;  %v2727_v28 = vsel %vm939_vm7, %v7371_v60, %v7250_v37  ;;  %v2939_v4 = vsel %vm1163_vm5, %v9154_v11, %v2938_v26 }
 0x346   : > { %v7379_v43 = vmax.f32 %v2642_v59, %v2727_v28 }
 0x347   : > { %v2657_v62 = vmax.f32 %v2620_v29, 0.0  ;;  %v9603_v29 = vrot.slane %v7134_v48, 2  ;;  %v9605_v48 = vrot.slane %v9567_v36, 5 }
 0x348   : > { %2009 = vrot.lane.b32.xlu2 %v6865_v27, %s9228_s26  ;;  %1401 = vrot.lane.b32.xlu0 %v9599_v46, %s9198_s20  ;;  %v2998_v40 = vmax.f32 %v7379_v43, %v7062_v55  ;;  %v9600_v27 = vmax.f32 %v7266_v19, %v7275_v5  ;;  %v9152_v55 = vrot.slane %v9535_v54, 6  ;;  %v9151_v5 = vrot.slane %v5668_v39, 6 }
 0x349   : > { %v2754_v34 = vrot.slane %v2657_v62, 1  ;;  %2007 = vrot.lane.b32.xlu1 %v6858_v7, %s9228_s26  ;;  %v9602_v7 = vld [vmem:[#allocation77_spill] sm:$0xff]  ;;  %v2941_v28 = vsel %vm1163_vm5, %v2938_v26, %v9603_v29  ;;  %v9608_v29 = vld [vmem:[#allocation136_spill] sm:$0xff] }
 0x34a   : > { %v7393_v37 = vpop.permute.xlu2 %2492  ;;  %v7395_v41 = vpop.permute.xlu0 %1433  ;;  %v3026_v47 = vpack.c.bf16 %v9600_v27, %v2998_v40  ;;  %v9153_v51 = vrot.slane %v9602_v7, 5 }
 0x34b   : > { %v7400_v35 = vpop.permute.xlu1 %1407  ;;  %v2755_v42 = vsel %vm939_vm7, %v7387_v38, %v2754_v34  ;;  %v2757_v45 = vsel %vm939_vm7, %v2754_v34, %v7118_v30 }
 0x34c   : > { %9601 = vst [vmem:[#allocation103_spill] sm:$0xff] %v7400_v35  ;;  %3186 = vmatpush.bf16.msra.mxu1 %v3026_v47  ;;  %v7408_v32 = vmax.f32 %v2656_v2, %v2755_v42  ;;  %v7410_v59 = vmax.f32 %v2657_v62, %v2757_v45  ;;  %v2385_v2 = vsel %vm778_vm1, %v9151_v5, %v9152_v55  ;;  %v9604_v62 = vrot.slane %v9517_v49, 4  ;;  %v9607_v45 = vld [vmem:[#allocation15_spill] sm:$0xff]  ;;  %v9614_v55 = vld [vmem:[#allocation169_spill] sm:$0xff] }
 0x34d   : > { %v2188_v26 = vsel %vm2143_vm4, %v9153_v51, %v9605_v48  ;;  %v940_v48 = vrot.slane %v9610_v8, 1  ;;  %v9613_v5 = vrot.slane %v9543_v57, 1  ;;  %v9615_v51 = vld [vmem:[#allocation148_spill] sm:$0xff]  ;;  %v9621_v35 = vrot.slane %v9534_v16, 6 }
 0x34e   : > { %v3012_v30 = vmax.f32 %v7408_v32, %v2939_v4  ;;  %v3013_v46 = vmax.f32 %v7410_v59, %v2941_v28  ;;  %v7432_v40 = vsel %vm1765_vm6, %v9150_v20, %v9604_v62  ;;  %v941_v4 = vrot.slane %v9607_v45, 1 }
 0x34f   : > { %v1150_v28 = vadd.f32 %v9608_v29, %v9528_v15 }
 0x350   : > { %2458 = vrot.lane.b32.xlu2 %v2385_v2, %s9259_s30  ;;  %1853 = vrot.lane.b32.xlu0 %v7432_v40, %s9269_s23  ;;  %v3033_v34 = vpack.c.bf16 %v3013_v46, %v3012_v30  ;;  %v9609_v2 = vld [vmem:[#allocation140_spill] sm:$0xff]  ;;  %v9611_v30 = vld [vmem:[#allocation139_spill] sm:$0xff]  ;;  %v942_v29 = vsel %vm939_vm7, %v940_v48, %v941_v4 }
 0x351   : > { %2261 = vrot.lane.b32.xlu1 %v2188_v26, %s9239_s18  ;;  %v1151_v62 = vadd.f32 %v9609_v2, %v9602_v7  ;;  %v1374_v46 = vadd.f32 %v9611_v30, %v1150_v28  ;;  %v9612_v26 = vld [vmem:[#allocation142_spill] sm:$0xff] }
 0x352   : > { %v7443_v27 = vpop.permute.xlu2 %1311  ;;  %v7445_v47 = vpop.permute.xlu0 %1635  ;;  %3236 = vmatpush.bf16.msrb.mxu2 %v3033_v34  ;;  %v944_v34 = vsel %vm939_vm7, %v941_v4, %v9613_v5  ;;  %v9616_v2 = vld [vmem:[#allocation122_spill] sm:$0xff]  ;;  %v9158_v5 = vrot.slane %v9592_v24, 4  ;;  %v9155_v4 = vrot.slane %v9509_v17, 4 }
 0x353   : > { %9606 = vst [vmem:[#allocation133_spill] sm:$0xff] %v7443_v27  ;;  %v7447_v42 = vpop.permute.xlu1 %1857  ;;  %v1375_v20 = vadd.f32 %v9612_v26, %v1151_v62  ;;  %v1528_v1 = vadd.f32 %v9616_v2, %v1374_v46  ;;  %v9617_v26 = vld [vmem:[#allocation147_spill] sm:$0xff]  ;;  %v9618_v27 = vld [vmem:[#allocation125_spill] sm:$0xff] }
 0x354   : > { %v7485_v2 = vsel %vm1765_vm6, %v9155_v4, %v9158_v5 }
 0x355   : > { %v1529_v11 = vadd.f32 %v9615_v51, %v1375_v20  ;;  %v2410_v51 = vrot.slane %v9567_v36, 6  ;;  %v9619_v20 = vld [vmem:[#allocation36_spill] sm:$0xff] }
 0x358   : > { %1017 = vrot.lane.b32.xlu2 %v944_v34, %s9247_s29  ;;  %2037 = vrot.lane.b32.xlu0 %v9614_v55, %s9228_s26  ;;  %v1752_v34 = vadd.f32 %v9617_v26, %v1528_v1  ;;  %v1753_v55 = vadd.f32 %v9618_v27, %v1529_v11  ;;  %v2413_v1 = vsel %vm778_vm1, %v2410_v51, %v9621_v35  ;;  %v9622_v35 = vld [vmem:[#allocation31_spill] sm:$0xff] }
 0x359   : > { %1015 = vrot.lane.b32.xlu1 %v942_v29, %s9247_s29  ;;  %v9620_v29 = vld [vmem:[#allocation174_spill] sm:$0xff] }
 0x35a   : > { %v7467_v28 = vpop.permute.xlu2 %1881  ;;  %v7469_v62 = vpop.permute.xlu0 %2015  ;;  %v1976_v48 = vadd.f32 %v9619_v20, %v1752_v34  ;;  %v1977_v46 = vadd.f32 %v9620_v29, %v1753_v55  ;;  %v9156_v20 = vrot.slane %v9622_v35, 5  ;;  %v9157_v29 = vrot.slane %v5636_v14, 5 }
 0x35b   : > { %v7471_v30 = vpop.permute.xlu1 %2041 }
 0x35c   : > { %v2130_v11 = vadd.f32 %v7149_v61, %v1976_v48  ;;  %v2131_v36 = vadd.f32 %v7007_v6, %v1977_v46  ;;  %v9624_v46 = vrot.slane %v9541_v44, 2 }
 0x35e   : > { %v2354_v27 = vadd.f32 %v7203_v31, %v2130_v11  ;;  %v9623_v31 = vrot.slane %v9450_v25, 2 }
 0x360   : > { %1849 = vrot.lane.b32.xlu2 %v7485_v2, %s9269_s23  ;;  %2486 = vrot.lane.b32.xlu0 %v2413_v1, %s9259_s30  ;;  %v7515_v11 = vsel %vm1163_vm5, %v9624_v46, %v9623_v31 }
 0x361   : > { %1399 = vrot.lane.b32.xlu1 %v7051_v63, %s9198_s20  ;;  %v2158_v63 = vsel %vm2143_vm4, %v9157_v29, %v9156_v20  ;;  %v9629_v20 = vrot.slane %v9528_v15, 6 }
 0x362   : > { %v7498_v26 = vpop.permute.xlu2 %2013  ;;  %v2270_v34 = vpop.permute.xlu0 %2269 }
 0x363   : > { %v2355_v16 = vadd.f32 %v2270_v34, %v2131_v36  ;;  %v2491_v55 = vpop.permute.xlu1 %2490  ;;  %v9625_v36 = vld [vmem:[#allocation24_spill] sm:$0xff] }
 0x364   : > { %v2577_v61 = vadd.f32 %v2491_v55, %v2354_v27  ;;  %v1615_v55 = vrot.slane %v9551_v33, 3 }
 0x365   : > { %v2578_v48 = vadd.f32 %v7393_v37, %v2355_v16  ;;  %v2408_v16 = vrot.slane %v9602_v7, 6 }
 0x366   : > { %v2617_v1 = vadd.f32 %v6804_v13, %v2577_v61  ;;  %v2932_v61 = vrot.slane %v7408_v32, 2 }
 0x367   : > { %v2618_v6 = vadd.f32 %v6804_v13, %v2578_v48  ;;  %v2934_v48 = vrot.slane %v7410_v59, 2  ;;  %v2411_v59 = vsel %vm778_vm1, %v2408_v16, %v2410_v51  ;;  %v2409_v29 = vsel %vm778_vm1, %v9629_v20, %v2408_v16 }
 0x368   : > { %v2654_v37 = vmax.f32 %v2617_v1, 0.0  ;;  %2231 = vrot.lane.b32.xlu2 %v2158_v63, %s9239_s18  ;;  %1245 = vrot.lane.b32.xlu0 %v7515_v11, %s9254_s1 }
 0x369   : > { %v2655_v13 = vmax.f32 %v2618_v6, 0.0  ;;  %1913 = vrot.lane.b32.xlu1 %v9625_v36, %s9269_s23  ;;  %v9628_v36 = vrot.slane %v9553_v18, 3  ;;  %v2935_v5 = vsel %vm1163_vm5, %v2932_v61, %v2934_v48 }
 0x36a   : > { %v7522_v27 = vpop.permute.xlu2 %2462  ;;  %v7524_v34 = vpop.permute.xlu0 %1023  ;;  %v7530_v63 = vrot.slane %v2654_v37, 1 }
 0x36b   : > { %9626 = vst [vmem:[#allocation32_spill] sm:$0xff] %v7524_v34  ;;  %v2750_v1 = vrot.slane %v2655_v13, 1  ;;  %v7532_v31 = vpop.permute.xlu1 %1249  ;;  %v1616_v4 = vsel %vm1541_vm3, %v9628_v36, %v1615_v55 }
 0x36c   : > { %9627 = vst [vmem:[#allocation21_spill] sm:$0xff] %v7532_v31  ;;  %v9630_v31 = vrot.slane %v7152_v22, 2 }
 0x36d   : > { %v2751_v6 = vsel %vm939_vm7, %v7530_v63, %v2750_v1  ;;  %v2753_v46 = vsel %vm939_vm7, %v2750_v1, %v7387_v38  ;;  %v9632_v1 = vrot.slane %v9602_v7, 5  ;;  %v9636_v7 = vrot.slane %v9535_v54, 6 }
 0x36e   : > { %v7541_v33 = vmax.f32 %v2654_v37, %v2751_v6  ;;  %v2827_v32 = vmax.f32 %v2655_v13, %v2753_v46  ;;  %v2937_v34 = vsel %vm1163_vm5, %v2934_v48, %v9630_v31  ;;  %v9633_v31 = vrot.slane %v9528_v15, 5 }
 0x36f   : > { %v9634_v6 = vrot.slane %v9543_v57, 2  ;;  %v9635_v15 = vrot.slane %v5691_v58, 6  ;;  %v9161_v58 = vrot.slane %v5636_v14, 6  ;;  %v9637_v54 = vrot.slane %v5668_v39, 6 }
 0x370   : > { %2484 = vrot.lane.b32.xlu2 %v2411_v59, %s9259_s30  ;;  %1689 = vrot.lane.b32.xlu0 %v1616_v4, %s9211_s28  ;;  %v9159_v18 = vrot.slane %v7541_v33, 2  ;;  %v2930_v38 = vrot.slane %v2827_v32, 2  ;;  %v3010_v37 = vmax.f32 %v7541_v33, %v2935_v5  ;;  %v3011_v51 = vmax.f32 %v2827_v32, %v2937_v34 }
 0x371   : > { %2482 = vrot.lane.b32.xlu1 %v2409_v29, %s9259_s30  ;;  %v9163_v5 = vrot.slane %v9408_v52, 3  ;;  %v1545_v29 = vrot.slane %v9450_v25, 3  ;;  %v1165_v34 = vrot.slane %v9607_v45, 2  ;;  %v1542_v45 = vrot.slane %v9543_v57, 3 }
 0x372   : > { %v7556_v13 = vpop.permute.xlu2 %1021  ;;  %v7558_v20 = vpop.permute.xlu0 %1405  ;;  %v3032_v16 = vpack.c.bf16 %v3011_v51, %v3010_v37  ;;  %v7563_v22 = vsel %vm1163_vm5, %v9159_v18, %v2930_v38  ;;  %v7566_v4 = vsel %vm1163_vm5, %v2930_v38, %v2932_v61  ;;  %v2186_v61 = vsel %vm2143_vm4, %v9633_v31, %v9632_v1 }
 0x373   : > { %9631 = vst [vmem:[#allocation92_spill] sm:$0xff] %v7556_v13  ;;  %v7568_v55 = vpop.permute.xlu1 %1631  ;;  %v1548_v48 = vsel %vm1541_vm3, %v1545_v29, %v9163_v5  ;;  %v1168_v46 = vsel %vm1163_vm5, %v1165_v34, %v9634_v6  ;;  %v2387_v38 = vsel %vm778_vm1, %v9636_v7, %v9635_v15  ;;  %v9160_v6 = vrot.slane %v9450_v25, 4 }
 0x374   : > { %3237 = vmatpush.bf16.msrb.mxu2 %v3032_v16  ;;  %v2380_v16 = vrot.slane %v9622_v35, 6  ;;  %v9639_v15 = vrot.slane %v9559_v21, 4  ;;  %v9640_v7 = vrot.slane %v9592_v24, 4  ;;  %v9643_v18 = vrot.slane %v5636_v14, 5 }
 0x376   : > { %v2383_v1 = vsel %vm778_vm1, %v2380_v16, %v9637_v54 }
 0x378   : > { %1621 = vrot.lane.b32.xlu2 %v1548_v48, %s9211_s28  ;;  %2259 = vrot.lane.b32.xlu0 %v2186_v61, %s9239_s18  ;;  %v9162_v61 = vrot.slane %v9408_v52, 4 }
 0x379   : > { %1241 = vrot.lane.b32.xlu1 %v1168_v46, %s9254_s1 }
 0x37a   : > { %v7587_v36 = vpop.permute.xlu0 %1659  ;;  %v7589_v32 = vpop.permute.xlu2 %1465 }
 0x37b   : > { %v7591_v59 = vpop.permute.xlu1 %2011 }
 0x380   : > { %2005 = vrot.lane.b32.xlu2 %v7248_v56, %s9228_s26  ;;  %2460 = vrot.lane.b32.xlu0 %v2387_v38, %s9259_s30  ;;  %v2381_v56 = vsel %vm778_vm1, %v9161_v58, %v2380_v16  ;;  %v1778_v38 = vsel %vm1765_vm6, %v9640_v7, %v9639_v15  ;;  %v9644_v7 = vrot.slane %v5668_v39, 5 }
 0x381   : > { %2003 = vrot.lane.b32.xlu1 %v7432_v40, %s9228_s26 }
 0x382   : > { %v7603_v37 = vpop.permute.xlu0 %2039  ;;  %v7608_v48 = vpop.permute.xlu2 %2035 }
 0x383   : > { %v7605_v51 = vpop.permute.xlu1 %2265 }
 0x388   : > { %2456 = vrot.lane.b32.xlu2 %v2383_v1, %s9259_s30  ;;  %1397 = vrot.lane.b32.xlu0 %v7221_v3, %s9198_s20  ;;  %v7634_v3 = vsel %vm1765_vm6, %v9160_v6, %v9162_v61  ;;  %v2153_v1 = vrot.slane %v9517_v49, 5  ;;  %v9645_v6 = vrot.slane %v9622_v35, 5  ;;  %v9646_v61 = vld [vmem:[#allocation66_spill] sm:$0xff] }
 0x389   : > { %2454 = vrot.lane.b32.xlu1 %v2381_v56, %s9259_s30  ;;  %v9165_v56 = vrot.slane %v9559_v21, 5  ;;  %v1136_v5 = vadd.f32 %v9646_v61, %v5636_v14 }
 0x38a   : > { %v7621_v40 = vpop.permute.xlu0 %2241  ;;  %v7627_v46 = vpop.permute.xlu2 %2237  ;;  %v2156_v15 = vsel %vm2143_vm4, %v2153_v1, %v9643_v18  ;;  %v2160_v58 = vsel %vm2143_vm4, %v9645_v6, %v9644_v7  ;;  %v1543_v6 = vrot.slane %v9541_v44, 3 }
 0x38b   : > { %v7623_v31 = vpop.permute.xlu1 %1019 }
 0x38c   : > { %9638 = vst [vmem:[#allocation46_spill] sm:$0xff] %v7623_v31 }
 0x390   : > { %1845 = vrot.lane.b32.xlu2 %v7634_v3, %s9269_s23  ;;  %1851 = vrot.lane.b32.xlu0 %v1778_v38, %s9269_s23 }
 0x391   : > { %1395 = vrot.lane.b32.xlu1 %v7515_v11, %s9198_s20  ;;  %v2154_v11 = vsel %vm2143_vm4, %v9165_v56, %v2153_v1  ;;  %v1546_v1 = vsel %vm1541_vm3, %v1543_v6, %v1545_v29  ;;  %v9649_v56 = vld [vmem:[#allocation64_spill] sm:$0xff] }
 0x392   : > { %v7646_v16 = vpop.permute.xlu0 %1247  ;;  %v7667_v13 = vpop.permute.xlu2 %1243 }
 0x393   : > { %9641 = vst [vmem:[#allocation99_spill] sm:$0xff] %v7646_v16  ;;  %v7648_v54 = vpop.permute.xlu1 %1403 }
 0x394   : > { %9642 = vst [vmem:[#allocation94_spill] sm:$0xff] %v7648_v54 }
 0x395   : > { %9647 = vst [vmem:[#allocation37_spill] sm:$0xff] %v7667_v13 }
 0x398   : > { %2229 = vrot.lane.b32.xlu2 %v2156_v15, %s9239_s18  ;;  %2233 = vrot.lane.b32.xlu0 %v2160_v58, %s9239_s18  ;;  %v1164_v15 = vrot.slane %v9610_v8, 2  ;;  %v9648_v58 = vld [vmem:[#allocation67_spill] sm:$0xff]  ;;  %v9651_v8 = vld [vmem:[#allocation68_spill] sm:$0xff] }
 0x399   : > { %2227 = vrot.lane.b32.xlu1 %v2154_v11, %s9239_s18  ;;  %v1360_v7 = vadd.f32 %v9648_v58, %v1136_v5  ;;  %v1544_v11 = vsel %vm1541_vm3, %v1542_v45, %v1543_v6  ;;  %v9650_v5 = vld [vmem:[#allocation56_spill] sm:$0xff]  ;;  %v9654_v6 = vld [vmem:[#allocation78_spill] sm:$0xff] }
 0x39a   : > { %v7670_v39 = vpop.permute.xlu0 %1629  ;;  %v1166_v61 = vsel %vm1163_vm5, %v1164_v15, %v1165_v34  ;;  %v1137_v58 = vadd.f32 %v9650_v5, %v9622_v35  ;;  %v7690_v29 = vpop.permute.xlu2 %1627  ;;  %v9169_v15 = vrot.slane %v9517_v49, 6  ;;  %v9655_v35 = vrot.slane %v9509_v17, 3 }
 0x39b   : > { %v7672_v18 = vpop.permute.xlu1 %1855  ;;  %v1514_v13 = vadd.f32 %v9649_v56, %v1360_v7  ;;  %9652 = vst [vmem:[#allocation93_spill] sm:$0xff] %v7690_v29  ;;  %v9167_v56 = vrot.slane %v9559_v21, 6  ;;  %v2370_v29 = vrot.slane %v9509_v17, 6 }
 0x39d   : > { %v1738_v54 = vadd.f32 %v9651_v8, %v1514_v13  ;;  %v2377_v8 = vsel %vm778_vm1, %v9167_v56, %v9169_v15  ;;  %v9656_v13 = vrot.slane %v9408_v52, 3 }
 0x39f   : > { %v1962_v45 = vadd.f32 %v6964_v23, %v1738_v54  ;;  %v1550_v5 = vsel %vm1541_vm3, %v9656_v13, %v9655_v35 }
 0x3a0   : > { %1619 = vrot.lane.b32.xlu2 %v1546_v1, %s9211_s28  ;;  %1239 = vrot.lane.b32.xlu0 %v1166_v61, %s9254_s1  ;;  %v9653_v1 = vld [vmem:[#allocation72_spill] sm:$0xff] }
 0x3a1   : > { %1617 = vrot.lane.b32.xlu1 %v1544_v11, %s9211_s28  ;;  %v1361_v61 = vadd.f32 %v9653_v1, %v1137_v58  ;;  %v2116_v11 = vadd.f32 %v7469_v62, %v1962_v45  ;;  %v7710_v58 = vpop.f32.mrf.mxu2 }
 0x3a2   : > { %v7685_v31 = vpop.permute.xlu0 %1883  ;;  %v1993_v54 = vrot.slane %v7710_v58, 4  ;;  %v7726_v13 = vpop.permute.xlu2 %2009 }
 0x3a3   : > { %v7692_v34 = vpop.permute.xlu1 %2235  ;;  %v1515_v7 = vadd.f32 %v9654_v6, %v1361_v61  ;;  %v2340_v61 = vadd.f32 %v7369_v12, %v2116_v11  ;;  %v9168_v6 = vrot.slane %v9541_v44, 4 }
 0x3a5   : > { %v1739_v23 = vadd.f32 %v7107_v50, %v1515_v7  ;;  %v2563_v35 = vadd.f32 %v7522_v27, %v2340_v61  ;;  %v1766_v50 = vrot.slane %v9543_v57, 4  ;;  %v9657_v7 = vld [vmem:[#allocation26_spill] sm:$0xff]  ;;  %v9666_v57 = vld [vmem:[#allocation145_spill] sm:$0xff] }
 0x3a6   : > { %v9658_v12 = vrot.slane %v9657_v7, 4  ;;  %v9659_v27 = vrot.slane %v9657_v7, 6 }
 0x3a7   : > { %v1963_v1 = vadd.f32 %v7305_v10, %v1739_v23  ;;  %v1768_v10 = vsel %vm1765_vm6, %v1766_v50, %v9168_v6 }
 0x3a8   : > { %2450 = vrot.lane.b32.xlu2 %v2377_v8, %s9259_s30  ;;  %1623 = vrot.lane.b32.xlu0 %v1550_v5, %s9211_s28  ;;  %v2440_v8 = vrot.slane %v7710_v58, 6  ;;  %v1994_v11 = vsel %vm1765_vm6, %v9658_v12, %v1993_v54 }
 0x3a9   : > { %2001 = vrot.lane.b32.xlu1 %v1778_v38, %s9228_s26  ;;  %v2117_v38 = vadd.f32 %v7310_v53, %v1963_v1  ;;  %v7744_v53 = vld [vmem:[%s9434_s4] ss:$0 sm:$0xff] }
 0x3aa   : > { %v7716_v62 = vpop.permute.xlu0 %2263  ;;  %v2441_v5 = vsel %vm778_vm1, %v9659_v27, %v2440_v8  ;;  %v2603_v23 = vadd.f32 %v7744_v53, %v2563_v35  ;;  %v7754_v27 = vpop.permute.xlu2 %2458  ;;  %v9661_v35 = vrot.slane %v9559_v21, 5 }
 0x3ab   : > { %v7721_v45 = vpop.permute.xlu1 %2488  ;;  %v2341_v1 = vadd.f32 %v7621_v40, %v2117_v38 }
 0x3ac   : > { %v2640_v12 = vmax.f32 %v2603_v23, 0.0  ;;  %v9663_v23 = vld [vmem:[#allocation114_spill] sm:$0xff] }
 0x3b0   : > { %1841 = vrot.lane.b32.xlu2 %v1768_v10, %s9269_s23  ;;  %2067 = vrot.lane.b32.xlu0 %v1994_v11, %s9228_s26  ;;  %v2149_v10 = vrot.slane %v9592_v24, 5  ;;  %v2147_v11 = vrot.slane %v9509_v17, 5 }
 0x3b1   : > { %2514 = vrot.lane.b32.xlu1 %v2441_v5, %s9259_s30  ;;  %v9662_v5 = vld [vmem:[#allocation65_spill] sm:$0xff] }
 0x3b2   : > { %v2465_v54 = vpop.permute.xlu0 %2464  ;;  %v2152_v40 = vsel %vm2143_vm4, %v2149_v10, %v9661_v35  ;;  %v2150_v38 = vsel %vm2143_vm4, %v2147_v11, %v2149_v10  ;;  %v9665_v35 = vld [vmem:[#allocation138_spill] sm:$0xff] }
 0x3b3   : > { %v2564_v61 = vadd.f32 %v2465_v54, %v2341_v1  ;;  %v7749_v50 = vpop.permute.xlu1 %1625  ;;  %v1149_v1 = vadd.f32 %v9663_v23, %v9662_v5 }
 0x3b4   : > { %9660 = vst [vmem:[#allocation128_spill] sm:$0xff] %v7749_v50 }
 0x3b5   : > { %v2604_v8 = vadd.f32 %v7744_v53, %v2564_v61  ;;  %v7766_v61 = vrot.slane %v2640_v12, 1  ;;  %v1373_v15 = vadd.f32 %v9665_v35, %v1149_v1  ;;  %v9667_v1 = vrot.slane %v7266_v19, 2 }
 0x3b6   : > { %v9668_v35 = vrot.slane %v7379_v43, 2 }
 0x3b7   : > { %v2641_v56 = vmax.f32 %v2604_v8, 0.0 }
 0x3b8   : > { %2225 = vrot.lane.b32.xlu2 %v2152_v40, %s9239_s18  ;;  %1393 = vrot.lane.b32.xlu0 %v7325_v9, %s9198_s20  ;;  %v2907_v9 = vsel %vm1163_vm5, %v9668_v35, %v9667_v1  ;;  %v9676_v1 = vld [vmem:[#allocation132_spill] sm:$0xff]  ;;  %v7807_v35 = vpop.permute.xlu2 %1017 }
 0x3b9   : > { %v2722_v6 = vrot.slane %v2641_v56, 1  ;;  %2223 = vrot.lane.b32.xlu1 %v2150_v38, %s9239_s18  ;;  %v1527_v38 = vadd.f32 %v9666_v57, %v1373_v15  ;;  %v9672_v57 = vrot.slane %v9509_v17, 4  ;;  %v9673_v15 = vrot.slane %v9408_v52, 4  ;;  %9677 = vst [vmem:[#allocation51_spill] sm:$0xff] %v7807_v35 }
 0x3ba   : > { %v7769_v8 = vpop.permute.xlu0 %1401 }
 0x3bb   : > { %9664 = vst [vmem:[#allocation40_spill] sm:$0xff] %v7769_v8  ;;  %v7772_v40 = vpop.permute.xlu1 %2007  ;;  %v2723_v10 = vsel %vm939_vm7, %v7766_v61, %v2722_v6  ;;  %v2725_v5 = vsel %vm939_vm7, %v2722_v6, %v7371_v60  ;;  %v9669_v8 = vld [vmem:[#allocation130_spill] sm:$0xff]  ;;  %v9670_v60 = vld [vmem:[#allocation123_spill] sm:$0xff]  ;;  %v1774_v19 = vsel %vm1765_vm6, %v9673_v15, %v9672_v57  ;;  %v2145_v15 = vrot.slane %v9408_v52, 5 }
 0x3bc   : > { %v7779_v23 = vmax.f32 %v2640_v12, %v2723_v10  ;;  %v7781_v54 = vmax.f32 %v2641_v56, %v2725_v5  ;;  %v1751_v6 = vadd.f32 %v9670_v60, %v1527_v38  ;;  %v9671_v56 = vrot.slane %v9592_v24, 6  ;;  %v9674_v10 = vld [vmem:[#allocation61_spill] sm:$0xff]  ;;  %v9675_v5 = vld [vmem:[#allocation135_spill] sm:$0xff] }
 0x3bd   : > { %v2148_v35 = vsel %vm2143_vm4, %v2145_v15, %v2147_v11 }
 0x3be   : > { %v2996_v50 = vmax.f32 %v7779_v23, %v2907_v9  ;;  %v2997_v16 = vmax.f32 %v7781_v54, %v9669_v8  ;;  %v2373_v12 = vsel %vm778_vm1, %v2370_v29, %v9671_v56  ;;  %v1148_v8 = vadd.f32 %v9675_v5, %v9674_v10  ;;  %v9679_v5 = vld [vmem:[#allocation141_spill] sm:$0xff] }
 0x3bf   : > { %v1975_v38 = vadd.f32 %v9676_v1, %v1751_v6  ;;  %v2217_v56 = vrot.slane %v7710_v58, 5  ;;  %v2144_v6 = vrot.slane %v9450_v25, 5 }
 0x3c0   : > { %2446 = vrot.lane.b32.xlu2 %v2373_v12, %s9259_s30  ;;  %1847 = vrot.lane.b32.xlu0 %v1774_v19, %s9269_s23  ;;  %v3025_v9 = vpack.c.bf16 %v2997_v16, %v2996_v50  ;;  %v9678_v16 = vld [vmem:[#allocation124_spill] sm:$0xff] }
 0x3c1   : > { %1997 = vrot.lane.b32.xlu1 %v1774_v19, %s9228_s26  ;;  %v2129_v57 = vadd.f32 %v7471_v30, %v1975_v38  ;;  %v1372_v50 = vadd.f32 %v9678_v16, %v1148_v8  ;;  %v2146_v30 = vsel %vm2143_vm4, %v2144_v6, %v2145_v15  ;;  %v9681_v8 = vld [vmem:[#allocation98_spill] sm:$0xff]  ;;  %v9683_v16 = vld [vmem:[#allocation121_spill] sm:$0xff]  ;;  %v2368_v15 = vrot.slane %v9408_v52, 6 }
 0x3c2   : > { %v7810_v60 = vpop.permute.xlu0 %1853  ;;  %3187 = vmatpush.bf16.msra.mxu1 %v3025_v9  ;;  %v9680_v9 = vrot.slane %v9657_v7, 5  ;;  %v9682_v7 = vld [vmem:[#allocation57_spill] sm:$0xff] }
 0x3c3   : > { %v2262_v12 = vpop.permute.xlu1 %2261  ;;  %v2353_v10 = vadd.f32 %v7605_v51, %v2129_v57  ;;  %v1526_v1 = vadd.f32 %v9679_v5, %v1372_v50  ;;  %v9684_v50 = vld [vmem:[#allocation102_spill] sm:$0xff] }
 0x3c4   : > { %v2218_v58 = vsel %vm2143_vm4, %v9680_v9, %v2217_v56  ;;  %v1147_v56 = vadd.f32 %v9683_v16, %v9682_v7 }
 0x3c5   : > { %v2576_v19 = vadd.f32 %v7721_v45, %v2353_v10  ;;  %v1750_v51 = vadd.f32 %v9681_v8, %v1526_v1  ;;  %v7830_v45 = vpop.permute.xlu2 %1849  ;;  %v9685_v10 = vld [vmem:[#allocation127_spill] sm:$0xff] }
 0x3c6   : > { %v1371_v5 = vadd.f32 %v9685_v10, %v1147_v56 }
 0x3c7   : > { %v2616_v57 = vadd.f32 %v7744_v53, %v2576_v19  ;;  %v2371_v19 = vsel %vm778_vm1, %v2368_v15, %v2370_v29 }
 0x3c8   : > { %2221 = vrot.lane.b32.xlu2 %v2148_v35, %s9239_s18  ;;  %2291 = vrot.lane.b32.xlu0 %v2218_v58, %s9239_s18  ;;  %v1974_v35 = vadd.f32 %v9684_v50, %v1750_v51  ;;  %v9686_v58 = vld [vmem:[#allocation112_spill] sm:$0xff]  ;;  %v9688_v50 = vrot.slane %v9517_v49, 6 }
 0x3c9   : > { %2219 = vrot.lane.b32.xlu1 %v2146_v30, %s9239_s18  ;;  %v2653_v1 = vmax.f32 %v2616_v57, 0.0  ;;  %v1525_v30 = vadd.f32 %v9686_v58, %v1371_v5  ;;  %s5334_s18 = smov 88  }
 0x3ca   : > { %v2038_v38 = vpop.permute.xlu0 %2037  ;;  %v2128_v6 = vadd.f32 %v7603_v37, %v1974_v35 }
 0x3cb   : > { %v7832_v11 = vpop.permute.xlu1 %1015  ;;  %v2746_v51 = vrot.slane %v2653_v1, 1  ;;  %v1749_v37 = vadd.f32 %v7587_v36, %v1525_v30 }
 0x3cc   : > { %v2352_v9 = vadd.f32 %v7716_v62, %v2128_v6  ;;  %v9687_v62 = vrot.slane %v5636_v14, 6 }
 0x3cd   : > { %v7851_v57 = vpop.permute.xlu2 %2231  ;;  %v1973_v56 = vadd.f32 %v7685_v31, %v1749_v37  ;;  %v2749_v10 = vsel %vm939_vm7, %v2746_v51, %v7530_v63  ;;  %v9691_v63 = vld [vmem:[#allocation104_spill] sm:$0xff]  ;;  %v9692_v37 = vld [vmem:[#allocation62_spill] sm:$0xff] }
 0x3ce   : > { %v2379_v35 = vsel %vm778_vm1, %v9688_v50, %v9687_v62 }
 0x3cf   : > { %v2127_v5 = vadd.f32 %v2038_v38, %v1973_v56 }
 0x3d0   : > { %1999 = vrot.lane.b32.xlu0 %v7485_v2, %s9228_s26 }
 0x3d1   : > { %2444 = vrot.lane.b32.xlu1 %v2371_v19, %s9259_s30  ;;  %v7865_v19 = vmax.f32 %v2653_v1, %v2749_v10  ;;  %v2351_v58 = vadd.f32 %v2262_v12, %v2127_v5  ;;  %v9694_v12 = vrot.slane %v9450_v25, 4  ;;  %v9696_v10 = vld [vmem:[#allocation82_spill] sm:$0xff] }
 0x3d2   : > { %v2487_v8 = vpop.permute.xlu0 %2486 }
 0x3d3   : > { %v2575_v7 = vadd.f32 %v2487_v8, %v2352_v9  ;;  %v7848_v16 = vpop.permute.xlu1 %1399  ;;  %v9689_v9 = vld [vmem:[#allocation58_spill] sm:$0xff]  ;;  %v3009_v1 = vmax.f32 %v7865_v19, %v7566_v4 }
 0x3d4   : > { %v1134_v14 = vadd.f32 %v9689_v9, %v9559_v21 }
 0x3d5   : > { %v2615_v2 = vadd.f32 %v7744_v53, %v2575_v7  ;;  %v9690_v7 = vld [vmem:[#allocation52_spill] sm:$0xff]  ;;  %v2485_v50 = vpop.permute.xlu2 %2484 }
 0x3d6   : > { %v1146_v38 = vadd.f32 %v9691_v63, %v9690_v7  ;;  %v9698_v63 = vld [vmem:[#allocation50_spill] sm:$0xff] }
 0x3d7   : > { %v2652_v29 = vmax.f32 %v2615_v2, 0.0  ;;  %v1358_v2 = vadd.f32 %v9692_v37, %v1134_v14  ;;  %v9697_v14 = vld [vmem:[#allocation111_spill] sm:$0xff] }
 0x3d8   : > { %2452 = vrot.lane.b32.xlu0 %v2379_v35, %s9259_s30  ;;  %v9695_v35 = vrot.slane %v9541_v44, 4 }
 0x3d9   : > { %v2744_v36 = vrot.slane %v2652_v29, 1  ;;  %v1512_v5 = vadd.f32 %v9696_v10, %v1358_v2 }
 0x3da   : > { %v7863_v6 = vpop.permute.xlu0 %1245 }
 0x3db   : > { %v2747_v31 = vsel %vm939_vm7, %v2744_v36, %v2746_v51  ;;  %v7870_v30 = vpop.permute.xlu1 %1913  ;;  %v9693_v51 = vld [vmem:[#allocation108_spill] sm:$0xff]  ;;  %v1736_v7 = vadd.f32 %v9697_v14, %v1512_v5 }
 0x3dc   : > { %v7872_v8 = vmax.f32 %v2652_v29, %v2747_v31  ;;  %v1370_v62 = vadd.f32 %v9693_v51, %v1146_v38  ;;  %v1770_v29 = vsel %vm1765_vm6, %v9695_v35, %v9694_v12  ;;  %v2574_v31 = vadd.f32 %v2485_v50, %v2351_v58  ;;  %v9699_v12 = vld [vmem:[#allocation53_spill] sm:$0xff]  ;;  %v9700_v58 = vld [vmem:[#allocation116_spill] sm:$0xff] }
 0x3dd   : > { %v1135_v38 = vadd.f32 %v9698_v63, %v9517_v49  ;;  %v1960_v37 = vadd.f32 %v7447_v42, %v1736_v7 }
 0x3de   : > { %v3008_v56 = vmax.f32 %v7872_v8, %v7563_v22  ;;  %v1524_v22 = vadd.f32 %v7395_v41, %v1370_v62  ;;  %v2614_v51 = vadd.f32 %v7744_v53, %v2574_v31  ;;  %v9701_v41 = vld [vmem:[#allocation118_spill] sm:$0xff] }
 0x3df   : > { %v1359_v2 = vadd.f32 %v9699_v12, %v1135_v38  ;;  %v9705_v12 = vld [vmem:[#allocation100_spill] sm:$0xff] }
 0x3e0   : > { %1843 = vrot.lane.b32.xlu0 %v1770_v29, %s9269_s23  ;;  %v3031_v9 = vpack.c.bf16 %v3009_v1, %v3008_v56  ;;  %v1748_v50 = vadd.f32 %v9700_v58, %v1524_v22  ;;  %v2114_v56 = vadd.f32 %v7591_v59, %v1960_v37  ;;  %v2651_v49 = vmax.f32 %v2614_v51, 0.0  ;;  %s5339_s23 = smov 32  }
 0x3e1   : > { %v1513_v62 = vadd.f32 %v9701_v41, %v1359_v2  ;;  %v2924_v58 = vrot.slane %v7872_v8, 2  ;;  %v2367_v41 = vrot.slane %v9450_v25, 6 }
 0x3e2   : > { %v7891_v4 = vpop.permute.xlu0 %1689  ;;  %3238 = vmatpush.bf16.msrb.mxu2 %v3031_v9  ;;  %v1972_v35 = vadd.f32 %v7467_v28, %v1748_v50  ;;  %v2338_v29 = vadd.f32 %v7692_v34, %v2114_v56  ;;  %v2742_v59 = vrot.slane %v2651_v49, 1  ;;  %v9702_v28 = vld [vmem:[#allocation80_spill] sm:$0xff] }
 0x3e3   : > { %v2483_v1 = vpop.permute.xlu1 %2482  ;;  %v1737_v42 = vadd.f32 %v7445_v47, %v1513_v62  ;;  %v1132_v7 = vadd.f32 %v9702_v28, %v9509_v17 }
 0x3e4   : > { %v2126_v10 = vadd.f32 %v7608_v48, %v1972_v35  ;;  %v2561_v5 = vadd.f32 %v7754_v27, %v2338_v29  ;;  %v9703_v48 = vrot.slane %v9559_v21, 6  ;;  %v9704_v27 = vrot.slane %v9592_v24, 6  ;;  %v9706_v29 = vld [vmem:[#allocation23_spill] sm:$0xff] }
 0x3e5   : > { %v1961_v22 = vadd.f32 %v7343_v0, %v1737_v42  ;;  %v2926_v21 = vrot.slane %v7865_v19, 2  ;;  %v2369_v19 = vsel %vm778_vm1, %v2367_v41, %v2368_v15 }
 0x3e6   : > { %v2601_v34 = vadd.f32 %v7744_v53, %v2561_v5  ;;  %v2375_v38 = vsel %vm778_vm1, %v9704_v27, %v9703_v48 }
 0x3e7   : > { %v2115_v63 = vadd.f32 %v7498_v26, %v1961_v22 }
 0x3e8   : > { %1995 = vrot.lane.b32.xlu0 %v7634_v3, %s9228_s26  ;;  %v2745_v3 = vsel %vm939_vm7, %v2742_v59, %v2744_v36  ;;  %v1356_v36 = vadd.f32 %v9705_v12, %v1132_v7  ;;  %v2638_v2 = vmax.f32 %v2601_v34, 0.0  ;;  %v9710_v12 = vld [vmem:[#allocation105_spill] sm:$0xff] }
 0x3e9   : > { %v2339_v17 = vadd.f32 %v7627_v46, %v2115_v63  ;;  %v2823_v51 = vmax.f32 %v2651_v49, %v2745_v3  ;;  %v2900_v3 = vrot.slane %v7779_v23, 2  ;;  %v2902_v63 = vrot.slane %v7781_v54, 2  ;;  %v9718_v23 = vld [vmem:[#allocation14_spill] sm:$0xff] }
 0x3ea   : > { %v2260_v31 = vpop.permute.xlu0 %2259 }
 0x3eb   : > { %v2350_v9 = vadd.f32 %v2260_v31, %v2126_v10  ;;  %v7920_v37 = vpop.permute.xlu1 %1241  ;;  %v2922_v35 = vrot.slane %v2823_v51, 2  ;;  %v9707_v10 = vld [vmem:[#allocation86_spill] sm:$0xff]  ;;  %v7939_v31 = vrot.slane %v2638_v2, 1 }
 0x3ec   : > { %v9708_v5 = vmax.f32 %v9707_v10, 0.0 }
 0x3ed   : > { %v2573_v14 = vadd.f32 %v2483_v1, %v2350_v9  ;;  %v1510_v1 = vadd.f32 %v7558_v20, %v1356_v36  ;;  %v7941_v9 = vpop.permute.xlu2 %1621  ;;  %v2925_v48 = vsel %vm1163_vm5, %v2922_v35, %v2924_v58  ;;  %v9711_v36 = vrot.slane %v9710_v12, 2 }
 0x3ef   : > { %v2613_v47 = vadd.f32 %v7744_v53, %v2573_v14  ;;  %v1734_v42 = vadd.f32 %v7670_v39, %v1510_v1  ;;  %v9709_v14 = vrot.slane %v7541_v33, 2 }
 0x3f0   : > { %2448 = vrot.lane.b32.xlu0 %v2375_v38, %s9259_s30 }
 0x3f1   : > { %v2650_v0 = vmax.f32 %v2613_v47, 0.0  ;;  %v2929_v28 = vsel %vm1163_vm5, %v2926_v21, %v9709_v14  ;;  %v1958_v1 = vadd.f32 %v7810_v60, %v1734_v42  ;;  %v9716_v60 = vld [vmem:[#allocation129_spill] sm:$0xff] }
 0x3f2   : > { %v2461_v26 = vpop.permute.xlu0 %2460  ;;  %v3007_v15 = vmax.f32 %v2823_v51, %v2929_v28  ;;  %v9717_v28 = vld [vmem:[#allocation103_spill] sm:$0xff] }
 0x3f3   : > { %v2740_v50 = vrot.slane %v2650_v0, 1  ;;  %v2562_v56 = vadd.f32 %v2461_v26, %v2339_v17  ;;  %v7951_v27 = vpop.permute.xlu1 %2003 }
 0x3f5   : > { %v2602_v62 = vadd.f32 %v7744_v53, %v2562_v56  ;;  %v2743_v46 = vsel %vm939_vm7, %v2740_v50, %v2742_v59  ;;  %v2741_v49 = vsel %vm939_vm7, %v9706_v29, %v2740_v50  ;;  %v2927_v59 = vsel %vm1163_vm5, %v2924_v58, %v2926_v21 }
 0x3f6   : > { %v2822_v8 = vmax.f32 %v2650_v0, %v2743_v46  ;;  %v2821_v20 = vmax.f32 %v9708_v5, %v2741_v49  ;;  %v9712_v46 = vrot.slane %v7379_v43, 2 }
 0x3f7   : > { %v2639_v22 = vmax.f32 %v2602_v62, 0.0  ;;  %v2903_v62 = vsel %vm1163_vm5, %v2900_v3, %v2902_v63 }
 0x3f8   : > { %2442 = vrot.lane.b32.xlu0 %v2369_v19, %s9259_s30  ;;  %v2920_v39 = vrot.slane %v2822_v8, 2  ;;  %v3006_v7 = vmax.f32 %v2822_v8, %v2927_v59  ;;  %v2918_v34 = vrot.slane %v2821_v20, 2  ;;  %v3005_v0 = vmax.f32 %v2821_v20, %v2925_v48  ;;  %v9714_v19 = vld [vmem:[#allocation101_spill] sm:$0xff] }
 0x3f9   : > { %v2718_v47 = vrot.slane %v2639_v22, 1  ;;  %v2112_v20 = vadd.f32 %v7772_v40, %v1958_v1 }
 0x3fa   : > { %v7953_v38 = vpop.permute.xlu0 %1397  ;;  %v3030_v33 = vpack.c.bf16 %v3007_v15, %v3006_v7  ;;  %v2923_v17 = vsel %vm1163_vm5, %v2920_v39, %v2922_v35  ;;  %v2919_v51 = vsel %vm1163_vm5, %v9711_v36, %v2918_v34  ;;  %v2921_v21 = vsel %vm1163_vm5, %v2918_v34, %v2920_v39 }
 0x3fb   : > { %v3004_v26 = vmax.f32 %v9710_v12, %v2923_v17  ;;  %v2719_v54 = vsel %vm939_vm7, %v7939_v31, %v2718_v47  ;;  %v2721_v58 = vsel %vm939_vm7, %v2718_v47, %v7766_v61  ;;  %v2905_v35 = vsel %vm1163_vm5, %v2902_v63, %v9712_v46  ;;  %v9713_v61 = vld [vmem:[#allocation97_spill] sm:$0xff]  ;;  %v2455_v7 = vpop.permute.xlu1 %2454 }
 0x3fc   : > { %3239 = vmatpush.bf16.msrb.mxu2 %v3030_v33  ;;  %v7965_v50 = vmax.f32 %v2638_v2, %v2719_v54  ;;  %v2811_v56 = vmax.f32 %v2639_v22, %v2721_v58  ;;  %v3002_v49 = vmax.f32 %v9713_v61, %v2919_v51  ;;  %v3003_v8 = vmax.f32 %v9714_v19, %v2921_v21  ;;  %v9715_v2 = vld [vmem:[#allocation106_spill] sm:$0xff]  ;;  %v7981_v22 = vpop.permute.xlu2 %2005 }
 0x3fd   : > { %v3029_v41 = vpack.c.bf16 %v3005_v0, %v3004_v26  ;;  %v1133_v10 = vadd.f32 %v9715_v2, %v9592_v24  ;;  %v2336_v24 = vadd.f32 %v7851_v57, %v2112_v20  ;;  %v9720_v20 = vld [vmem:[#allocation133_spill] sm:$0xff] }
 0x3fe   : > { %v2994_v29 = vmax.f32 %v7965_v50, %v2903_v62  ;;  %v2995_v5 = vmax.f32 %v2811_v56, %v2905_v35  ;;  %v3028_v14 = vpack.c.bf16 %v3003_v8, %v3002_v49  ;;  %v2898_v54 = vrot.slane %v2811_v56, 2 }
 0x3ff   : > { %v1357_v42 = vadd.f32 %v9716_v60, %v1133_v10  ;;  %v2559_v63 = vadd.f32 %v2455_v7, %v2336_v24  ;;  %v9719_v60 = vld [vmem:[#allocation113_spill] sm:$0xff]  ;;  %v9722_v7 = vld [vmem:[#allocation99_spill] sm:$0xff] }
 0x400   : > { %3240 = vmatpush.bf16.msrb.mxu2 %v3029_v41  ;;  %v3024_v43 = vpack.c.bf16 %v2995_v5, %v2994_v29  ;;  %v2901_v56 = vsel %vm1163_vm5, %v2898_v54, %v2900_v3  ;;  %v1162_v3 = vadd.f32 %v9719_v60, %v9718_v23 }
 0x401   : > { %v1511_v39 = vadd.f32 %v9717_v28, %v1357_v42  ;;  %v2599_v33 = vadd.f32 %v7744_v53, %v2559_v63 }
 0x402   : > { %v7983_v59 = vpop.permute.xlu0 %1851  ;;  %3188 = vmatpush.bf16.msra.mxu1 %v3024_v43  ;;  %v1386_v43 = vadd.f32 %v9720_v20, %v1162_v3 }
 0x403   : > { %v1735_v15 = vadd.f32 %v7568_v55, %v1511_v39  ;;  %v2636_v12 = vmax.f32 %v2599_v33, 0.0  ;;  %v7991_v36 = vpop.permute.xlu1 %1395 }
 0x404   : > { %3241 = vmatpush.bf16.msrb.mxu2 %v3028_v14  ;;  %v2457_v48 = vpop.permute.xlu2 %2456  ;;  %v9721_v14 = vld [vmem:[#allocation32_spill] sm:$0xff]  ;;  %v1540_v39 = vadd.f32 %v7589_v32, %v1386_v43 }
 0x405   : > { %v1959_v34 = vadd.f32 %v7672_v18, %v1735_v15  ;;  %v7996_v57 = vrot.slane %v2636_v12, 1  ;;  %v2896_v18 = vrot.slane %v7965_v50, 2  ;;  %v1130_v28 = vadd.f32 %v9721_v14, %v9450_v25 }
 0x407   : > { %v2113_v40 = vadd.f32 %v7726_v13, %v1959_v34  ;;  %v2899_v46 = vsel %vm1163_vm5, %v2896_v18, %v2898_v54  ;;  %v1354_v15 = vadd.f32 %v9722_v7, %v1130_v28  ;;  %v1764_v34 = vadd.f32 %v7891_v4, %v1540_v39  ;;  %v9729_v28 = vld [vmem:[#allocation120_spill] sm:$0xff]  ;;  %v9730_v39 = vld [vmem:[#allocation17_spill] sm:$0xff]  ;;  %v9731_v7 = vld [vmem:[#allocation46_spill] sm:$0xff] }
 0x40a   : > { %v2234_v47 = vpop.permute.xlu0 %2233 }
 0x40b   : > { %v2337_v17 = vadd.f32 %v2234_v47, %v2113_v40  ;;  %v2228_v61 = vpop.permute.xlu1 %2227  ;;  %v9723_v40 = vld [vmem:[#allocation40_spill] sm:$0xff] }
 0x40c   : > { %v7999_v58 = vpop.permute.xlu2 %1845  ;;  %v1508_v47 = vadd.f32 %v9723_v40, %v1354_v15  ;;  %v1128_v15 = vadd.f32 %v9731_v7, %v9730_v39 }
 0x40d   : > { %v2560_v0 = vadd.f32 %v2457_v48, %v2337_v17  ;;  %v1988_v48 = vadd.f32 %v7870_v30, %v1764_v34  ;;  %v9724_v17 = vld [vmem:[#allocation128_spill] sm:$0xff]  ;;  %v9732_v34 = vld [vmem:[#allocation126_spill] sm:$0xff] }
 0x40e   : > { %v9733_v40 = vmax.f32 %v9732_v34, 0.0  ;;  %v4919_v34 = vld [vmem:[%s8951_s7 + $0x8] sm:$0xf] }
 0x40f   : > { %v2600_v51 = vadd.f32 %v7744_v53, %v2560_v0  ;;  %v1732_v0 = vadd.f32 %v9724_v17, %v1508_v47 }
 0x411   : > { %v2637_v26 = vmax.f32 %v2600_v51, 0.0 }
 0x412   : > { %v7994_v55 = vpop.permute.xlu0 %1239 }
 0x413   : > { %v2714_v13 = vrot.slane %v2637_v26, 1  ;;  %v8019_v2 = vpop.permute.xlu1 %1617 }
 0x414   : > { %v2230_v19 = vpop.permute.xlu2 %2229 }
 0x415   : > { %v2715_v21 = vsel %vm939_vm7, %v7996_v57, %v2714_v13  ;;  %v2717_v1 = vsel %vm939_vm7, %v2714_v13, %v7939_v31 }
 0x416   : > { %v8005_v41 = vmax.f32 %v2636_v12, %v2715_v21  ;;  %v8007_v62 = vmax.f32 %v2637_v26, %v2717_v1  ;;  %v9725_v12 = vld [vmem:[#allocation87_spill] sm:$0xff]  ;;  %v9726_v26 = vld [vmem:[#allocation21_spill] sm:$0xff]  ;;  %v1956_v21 = vadd.f32 %v7830_v45, %v1732_v0  ;;  %v9727_v1 = vld [vmem:[#allocation94_spill] sm:$0xff] }
 0x417   : > { %v1131_v25 = vadd.f32 %v9725_v12, %v9408_v52  ;;  %v9736_v12 = vld [vmem:[#allocation51_spill] sm:$0xff] }
 0x418   : > { %v2992_v35 = vmax.f32 %v8005_v41, %v2899_v46  ;;  %v2993_v29 = vmax.f32 %v8007_v62, %v2901_v56  ;;  %v2110_v30 = vadd.f32 %v7951_v27, %v1956_v21  ;;  %v9740_v21 = vld [vmem:[#allocation107_spill] sm:$0xff]  ;;  %v2894_v7 = vrot.slane %v8007_v62, 2 }
 0x419   : > { %v1355_v54 = vadd.f32 %v9726_v26, %v1131_v25 }
 0x41a   : > { %v8017_v49 = vpop.permute.xlu0 %1623  ;;  %v3023_v31 = vpack.c.bf16 %v2993_v29, %v2992_v35  ;;  %v5176_v35 = vld [vmem:[%s5483_s19 + $0xa8] sm:$0xff]  ;;  %v2334_v52 = vadd.f32 %v2228_v61, %v2110_v30 }
 0x41b   : > { %v8027_v42 = vpop.permute.xlu1 %2001  ;;  %v1509_v4 = vadd.f32 %v9727_v1, %v1355_v54  ;;  %v9728_v29 = vld [vmem:[#allocation93_spill] sm:$0xff]  ;;  %4908 = vmatmul.msk.bf16.vlgmr.msra.gmra.mxu3 %vm710_vm2, %v5176_v35  ;;  %vm4645_vm2 = vcmask 523264  }
 0x41c   : > { %3189 = vmatpush.bf16.msra.mxu1 %v3023_v31  ;;  %v8021_v10 = vpop.permute.xlu2 %1619  ;;  %v9742_v30 = vld [vmem:[#allocation89_spill] sm:$0xff] }
 0x41d   : > { %v1733_v31 = vadd.f32 %v9728_v29, %v1509_v4 }
 0x422   : > { %v2068_v8 = vpop.permute.xlu0 %2067 }
 0x423   : > { %v2515_v33 = vpop.permute.xlu1 %2514  ;;  %v2142_v51 = vadd.f32 %v2068_v8, %v1988_v48  ;;  %v1957_v8 = vadd.f32 %v7983_v59, %v1733_v31  ;;  %v9734_v59 = vld [vmem:[#allocation37_spill] sm:$0xff] }
 0x424   : > { %v2451_v63 = vpop.permute.xlu2 %2450  ;;  %v1352_v48 = vadd.f32 %v9734_v59, %v1128_v15 }
 0x425   : > { %v2557_v43 = vadd.f32 %v2451_v63, %v2334_v52  ;;  %v2111_v14 = vadd.f32 %v7981_v22, %v1957_v8  ;;  %v9735_v63 = vld [vmem:[#allocation15_spill] sm:$0xff] }
 0x426   : > { %v1127_v22 = vadd.f32 %v9736_v12, %v9735_v63  ;;  %v1506_v25 = vadd.f32 %v7953_v38, %v1352_v48 }
 0x427   : > { %v2335_v0 = vadd.f32 %v2230_v19, %v2111_v14 }
 0x428   : > { %v1351_v19 = vadd.f32 %v7920_v37, %v1127_v22  ;;  %v1730_v38 = vadd.f32 %v7941_v9, %v1506_v25  ;;  %v4913_v37 = vld [vmem:[%s8951_s7 + $0xc] sm:$0xf0]  ;;  %v2892_v9 = vrot.slane %v8005_v41, 2  ;;  %v5139_v41 = vld [vmem:[%s8951_s7 + $0x40] sm:$0xf0] }
 0x42a   : > { %v8023_v5 = vpop.permute.xlu0 %1393  ;;  %v1505_v8 = vadd.f32 %v7991_v36, %v1351_v19 }
 0x42b   : > { %v8053_v60 = vpop.permute.xlu1 %2223 }
 0x42c   : > { %v8045_v46 = vpop.permute.xlu2 %1841  ;;  %v1729_v48 = vadd.f32 %v8021_v10, %v1505_v8  ;;  %v2895_v10 = vsel %vm1163_vm5, %v2892_v9, %v2894_v7 }
 0x432   : > { %v8034_v24 = vpop.permute.xlu0 %1847 }
 0x434   : > { %v8062_v61 = vpop.permute.xlu2 %2225 }
 0x43a   : > { %v2292_v32 = vpop.permute.xlu0 %2291 }
 0x43b   : > { %v2366_v13 = vadd.f32 %v2292_v32, %v2142_v51  ;;  %v9737_v32 = vld [vmem:[#allocation109_spill] sm:$0xff] }
 0x43c   : > { %v9738_v26 = vrot.slane %v9737_v32, 2 }
 0x43d   : > { %v2589_v56 = vadd.f32 %v2515_v33, %v2366_v13  ;;  %v2597_v33 = vadd.f32 %v7744_v53, %v2557_v43  ;;  %v9739_v13 = vld [vmem:[#allocation75_spill] sm:$0xff] }
 0x43e   : > { %v9741_v1 = vmax.f32 %v9739_v13, %v9740_v21 }
 0x43f   : > { %v2629_v23 = vadd.f32 %v7744_v53, %v2589_v56  ;;  %v1998_v56 = vpop.permute.xlu1 %1997  ;;  %v2634_v31 = vmax.f32 %v2597_v33, 0.0 }
 0x441   : > { %v2666_v45 = vmax.f32 %v2629_v23, 0.0 }
 0x442   : > { %v2000_v3 = vpop.permute.xlu0 %1999 }
 0x443   : > { %v2843_v20 = vrot.slane %v2666_v45, 1  ;;  %v9743_v45 = vld [vmem:[#allocation92_spill] sm:$0xff] }
 0x445   : > { %v2844_v27 = vsel %vm939_vm7, %v9729_v28, %v2843_v20  ;;  %v1129_v20 = vadd.f32 %v9743_v45, %v9541_v44  ;;  %v5131_v28 = vld [vmem:[%s8951_s7 + $0x4] sm:$0xf]  ;;  %v2447_v44 = vpop.permute.xlu2 %2446 }
 0x446   : > { %v2850_v47 = vmax.f32 %v9733_v40, %v2844_v27  ;;  %v8089_v27 = vrot.slane %v2634_v31, 1  ;;  %v4916_v36 = vor.u32 %v5131_v28, %v4913_v37  ;;  %v5133_v40 = vld [vmem:[%s8951_s7 + $0x10] sm:$0xf0] }
 0x447   : > { %v1353_v39 = vadd.f32 %v7863_v6, %v1129_v20  ;;  %v4920_v33 = vor.u32 %v5133_v40, %v4919_v34  ;;  %v2220_v22 = vpop.permute.xlu1 %2219 }
 0x448   : > { %v2950_v17 = vrot.slane %v2850_v47, 2  ;;  %v1954_v47 = vadd.f32 %v7999_v58, %v1730_v38  ;;  %3242 = vmatmul.bf16.vlgmr.msrb.gmra.mxu2 %v4916_v36 }
 0x449   : > { %v1507_v58 = vadd.f32 %v7848_v16, %v1353_v39 }
 0x44a   : > { %v2453_v51 = vpop.permute.xlu0 %2452  ;;  %v2951_v54 = vsel %vm1163_vm5, %v9738_v26, %v2950_v17  ;;  %v3019_v4 = vmax.f32 %v9741_v1, %v2950_v17  ;;  %v2108_v17 = vadd.f32 %v2000_v3, %v1954_v47 }
 0x44b   : > { %v2558_v35 = vadd.f32 %v2453_v51, %v2335_v0  ;;  %v3018_v29 = vmax.f32 %v9742_v30, %v2951_v54  ;;  %v9744_v51 = vld [vmem:[#allocation13_spill] sm:$0xff]  ;;  %v1731_v26 = vadd.f32 %v8017_v49, %v1507_v58 }
 0x44c   : > { %v1126_v32 = vadd.f32 %v7832_v11, %v9744_v51  ;;  %v2332_v54 = vadd.f32 %v8053_v60, %v2108_v17  ;;  %v5134_v11 = vld [vmem:[%s8951_s7 + $0x1c] sm:$0xf]  ;;  %v4925_v49 = vld [vmem:[%s8951_s7 + $0x24] sm:$0xf0]  ;;  %v4943_v17 = vld [vmem:[%s8951_s7 + $0x38] sm:$0xf] }
 0x44d   : > { %v2598_v23 = vadd.f32 %v7744_v53, %v2558_v35  ;;  %v3036_v52 = vpack.c.bf16 %v3019_v4, %v3018_v29  ;;  %v1955_v1 = vadd.f32 %v8034_v24, %v1731_v26  ;;  %v2222_v50 = vpop.permute.xlu2 %2221  ;;  %v4931_v24 = vld [vmem:[%s8951_s7 + $0x20] sm:$0xf] }
 0x44e   : > { %v1350_v21 = vadd.f32 %v7994_v55, %v1126_v32  ;;  %v2555_v35 = vadd.f32 %v2447_v44, %v2332_v54  ;;  %v4928_v55 = vor.u32 %v5134_v11, %v4925_v49  ;;  %v5142_v11 = vld [vmem:[%s8951_s7 + $0x58] sm:$0xf0] }
 0x44f   : > { %v2635_v43 = vmax.f32 %v2598_v23, 0.0  ;;  %v3183_v14 = vsel %vm939_vm7, %v3036_v52, 0  ;;  %v2109_v29 = vadd.f32 %v8027_v42, %v1955_v1  ;;  %v2445_v42 = vpop.permute.xlu1 %2444  ;;  %v5132_v1 = vld [vmem:[%s8951_s7 + $0x8] sm:$0xf0] }
 0x450   : > { %3290 = vmatpush.bf16.msrb.mxu3 %v3183_v14 }
 0x451   : > { %v2710_v15 = vrot.slane %v2635_v43, 1  ;;  %v2333_v23 = vadd.f32 %v8062_v61, %v2109_v29 }
 0x452   : > { %v1844_v59 = vpop.permute.xlu0 %1843 }
 0x453   : > { %v2713_v6 = vsel %vm939_vm7, %v2710_v15, %v7996_v57  ;;  %v2711_v62 = vsel %vm939_vm7, %v8089_v27, %v2710_v15  ;;  %v1953_v63 = vadd.f32 %v1844_v59, %v1729_v48  ;;  %5005 = vmatmul.msk.bf16.vlgmr.msrb.gmra.mxu3 %vm3157_vm8, %v4920_v33  ;;  %v2897_v57 = vsel %vm1163_vm5, %v2894_v7, %v2896_v18 }
 0x454   : > { %v2807_v0 = vmax.f32 %v2635_v43, %v2713_v6  ;;  %v8106_v12 = vmax.f32 %v2634_v31, %v2711_v62  ;;  %v1504_v18 = vadd.f32 %v8023_v5, %v1350_v21  ;;  %v5136_v5 = vld [vmem:[%s8951_s7 + $0x28] sm:$0xf0]  ;;  %v5137_v62 = vld [vmem:[%s8951_s7 + $0x34] sm:$0xf]  ;;  %v4911_v21 = vld [vmem:[%s8951_s7] sm:$0xf] }
 0x455   : > { %v2107_v16 = vadd.f32 %v1998_v56, %v1953_v63  ;;  %v2595_v56 = vadd.f32 %v7744_v53, %v2555_v35  ;;  %v4932_v31 = vor.u32 %v5136_v5, %v4931_v24  ;;  %v4949_v35 = vld [vmem:[%s8951_s7 + $0x54] sm:$0xf0]  ;;  %v5135_v24 = vld [vmem:[%s8951_s7 + $0x20] sm:$0xf0] }
 0x456   : > { %v2990_v25 = vmax.f32 %v8106_v12, %v2895_v10  ;;  %v2991_v3 = vmax.f32 %v2807_v0, %v2897_v57  ;;  %v1728_v60 = vadd.f32 %v8019_v2, %v1504_v18  ;;  %v2890_v36 = vrot.slane %v2807_v0, 2  ;;  %v5140_v18 = vld [vmem:[%s8951_s7 + $0x4c] sm:$0xf] }
 0x457   : > { %v2331_v30 = vadd.f32 %v2222_v50, %v2107_v16  ;;  %v2632_v45 = vmax.f32 %v2595_v56, 0.0  ;;  %v2888_v39 = vrot.slane %v8106_v12, 2  ;;  %v4912_v50 = vor.u32 %v5132_v1, %v4911_v21  ;;  %v4967_v56 = vld [vmem:[%s8951_s7 + $0x68] sm:$0xf] }
 0x458   : > { %v3022_v13 = vpack.c.bf16 %v2991_v3, %v2990_v25  ;;  %3247 = vmatmul.bf16.gmra.mxu2 %v4928_v55  ;;  %v1952_v38 = vadd.f32 %v8045_v46, %v1728_v60  ;;  %v2893_v6 = vsel %vm1163_vm5, %v2890_v36, %v2892_v9  ;;  %v4952_v29 = vor.u32 %v5140_v18, %v4949_v35  ;;  %v4923_v55 = vld [vmem:[%s8951_s7 + $0x18] sm:$0xf]  ;;  %v5143_v60 = vld [vmem:[%s8951_s7 + $0x64] sm:$0xf] }
 0x459   : > { %v2554_v19 = vadd.f32 %v2445_v42, %v2331_v30  ;;  %v2704_v28 = vrot.slane %v2632_v45, 1  ;;  %v2891_v33 = vsel %vm1163_vm5, %v2888_v39, %v2890_v36  ;;  %v4955_v30 = vld [vmem:[%s8951_s7 + $0x50] sm:$0xf]  ;;  %v4924_v5 = vor.u32 %v5135_v24, %v4923_v55  ;;  %v5141_v36 = vld [vmem:[%s8951_s7 + $0x50] sm:$0xf0] }
 0x45a   : > { %v1996_v4 = vpop.permute.xlu0 %1995  ;;  %3190 = vmatpush.bf16.msra.mxu1 %v3022_v13  ;;  %v4956_v49 = vor.u32 %v5142_v11, %v4955_v30  ;;  %v4961_v42 = vld [vmem:[%s8951_s7 + $0x6c] sm:$0xf0] }
 0x45b   : > { %v2594_v20 = vadd.f32 %v7744_v53, %v2554_v19  ;;  %v2106_v43 = vadd.f32 %v1996_v4, %v1952_v38  ;;  %v4964_v19 = vor.u32 %v5143_v60, %v4961_v42  ;;  %v5138_v38 = vld [vmem:[%s8951_s7 + $0x38] sm:$0xf0] }
 0x45d   : > { %v2631_v37 = vmax.f32 %v2594_v20, 0.0  ;;  %v2330_v44 = vadd.f32 %v2220_v22, %v2106_v43  ;;  %v4944_v22 = vor.u32 %v5139_v41, %v4943_v17  ;;  %v4973_v20 = vld [vmem:[%s8951_s7 + $0x84] sm:$0xf0]  ;;  %v4979_v43 = vld [vmem:[%s8951_s7 + $0x80] sm:$0xf] }
 0x45e   : > { %v5147_v41 = vld [vmem:[%s8951_s7 + $0x80] sm:$0xf0] }
 0x45f   : > { %v2702_v47 = vrot.slane %v2631_v37, 1 }
 0x461   : > { %v2705_v25 = vsel %vm939_vm7, %v2702_v47, %v2704_v28 }
 0x462   : > { %v2449_v52 = vpop.permute.xlu0 %2448  ;;  %v2803_v26 = vmax.f32 %v2631_v37, %v2705_v25  ;;  %v4947_v37 = vld [vmem:[%s8951_s7 + $0x48] sm:$0xf]  ;;  %v3365_v25 = vld [vmem:[%s8946_s2] sm:$0x3] }
 0x463   : > { %v2556_v8 = vadd.f32 %v2449_v52, %v2333_v23  ;;  %5006 = vmatmul.msk.bf16.gmra.mxu3 %vm3157_vm8, %v4932_v31  ;;  %v5145_v31 = vld [vmem:[%s8951_s7 + $0x70] sm:$0xf0]  ;;  %v4935_v52 = vld [vmem:[%s8951_s7 + $0x30] sm:$0xf] }
 0x464   : > { %v4968_v23 = vor.u32 %v5145_v31, %v4967_v56 }
 0x465   : > { %v2596_v2 = vadd.f32 %v7744_v53, %v2556_v8  ;;  %v4936_v8 = vor.u32 %v5138_v38, %v4935_v52 }
 0x467   : > { %v2633_v14 = vmax.f32 %v2596_v2, 0.0 }
 0x469   : > { %v2706_v61 = vrot.slane %v2633_v14, 1 }
 0x46a   : > { %v2443_v7 = vpop.permute.xlu0 %2442 }
 0x46b   : > { %v2709_v46 = vsel %vm939_vm7, %v2706_v61, %v8089_v27  ;;  %v2553_v15 = vadd.f32 %v2443_v7, %v2330_v44  ;;  %v2707_v34 = vsel %vm939_vm7, %v2704_v28, %v2706_v61  ;;  %v4937_v27 = vld [vmem:[%s8951_s7 + $0x3c] sm:$0xf0]  ;;  %v5149_v61 = vld [vmem:[%s8951_s7 + $0x94] sm:$0xf]  ;;  %v4991_v7 = vld [vmem:[%s8951_s7 + $0x98] sm:$0xf] }
 0x46c   : > { %v2805_v40 = vmax.f32 %v2633_v14, %v2709_v46  ;;  %v2804_v59 = vmax.f32 %v2632_v45, %v2707_v34  ;;  %v4940_v12 = vor.u32 %v5137_v62, %v4937_v27  ;;  %v5146_v45 = vld [vmem:[%s8951_s7 + $0x7c] sm:$0xf]  ;;  %v5148_v14 = vld [vmem:[%s8951_s7 + $0x88] sm:$0xf0]  ;;  %v4985_v44 = vld [vmem:[%s8951_s7 + $0x9c] sm:$0xf0] }
 0x46d   : > { %v2593_v48 = vadd.f32 %v7744_v53, %v2553_v15  ;;  %v4976_v2 = vor.u32 %v5146_v45, %v4973_v20  ;;  %v4980_v28 = vor.u32 %v5148_v14, %v4979_v43  ;;  %v4988_v46 = vor.u32 %v5149_v61, %v4985_v44  ;;  %v5151_v15 = vld [vmem:[%s8951_s7 + $0xa0] sm:$0xf0]  ;;  %v5154_v27 = vld [vmem:[%s8951_s7 + $0xb8] sm:$0xf0] }
 0x46e   : > { %v2988_v0 = vmax.f32 %v2804_v59, %v2891_v33  ;;  %v2989_v53 = vmax.f32 %v2805_v40, %v2893_v6  ;;  %v2886_v63 = vrot.slane %v2805_v40, 2  ;;  %v2885_v57 = vrot.slane %v2804_v59, 2  ;;  %3252 = vmatmul.bf16.gmra.mxu2 %v4940_v12  ;;  %v4959_v40 = vld [vmem:[%s8951_s7 + $0x60] sm:$0xf]  ;;  %v4997_v33 = vld [vmem:[%s8951_s7 + $0xb4] sm:$0xf0] }
 0x46f   : > { %v2630_v9 = vmax.f32 %v2593_v48, 0.0  ;;  %v4992_v34 = vor.u32 %v5151_v15, %v4991_v7  ;;  %v5152_v48 = vld [vmem:[%s8951_s7 + $0xac] sm:$0xf]  ;;  %v5003_v6 = vld [vmem:[%s8951_s7 + $0xb0] sm:$0xf] }
 0x470   : > { %v3021_v58 = vpack.c.bf16 %v2989_v53, %v2988_v0  ;;  %v2889_v51 = vsel %vm1163_vm5, %v2886_v63, %v2888_v39  ;;  %v2887_v54 = vsel %vm1163_vm5, %v2885_v57, %v2886_v63  ;;  %v4948_v39 = vor.u32 %v5141_v36, %v4947_v37  ;;  %v4971_v53 = vld [vmem:[%s8951_s7 + $0x78] sm:$0xf]  ;;  %v4983_v12 = vld [vmem:[%s8951_s7 + $0x90] sm:$0xf] }
 0x471   : > { %v2701_v10 = vrot.slane %v2630_v9, 1  ;;  %v2987_v13 = vmax.f32 %v2803_v26, %v2889_v51  ;;  %v5000_v62 = vor.u32 %v5152_v48, %v4997_v33  ;;  %v5004_v17 = vor.u32 %v5154_v27, %v5003_v6  ;;  %v4995_v51 = vld [vmem:[%s8951_s7 + $0xa8] sm:$0xf] }
 0x472   : > { %3191 = vmatpush.bf16.msra.mxu1 %v3021_v58  ;;  %v4972_v63 = vor.u32 %v5147_v41, %v4971_v53  ;;  %v5150_v58 = vld [vmem:[%s8951_s7 + $0x98] sm:$0xf0] }
 0x473   : > { %v2703_v3 = vsel %vm939_vm7, %v2701_v10, %v2702_v47  ;;  %5007 = vmatmul.msk.bf16.gmra.mxu3 %vm3157_vm8, %v4944_v22  ;;  %v5144_v47 = vld [vmem:[%s8951_s7 + $0x68] sm:$0xf0]  ;;  %v4984_v22 = vor.u32 %v5150_v58, %v4983_v12 }
 0x474   : > { %v2802_v32 = vmax.f32 %v2630_v9, %v2703_v3  ;;  %v4960_v59 = vor.u32 %v5144_v47, %v4959_v40  ;;  %v3457_v3 = vsel %vm778_vm1, %v3365_v25, 0 }
 0x475   : > { %3466 = vmatpush.bf16.msra.mxu3 %v3457_v3 }
 0x476   : > { %v2986_v16 = vmax.f32 %v2802_v32, %v2887_v54  ;;  %v5153_v32 = vld [vmem:[%s8951_s7 + $0xb0] sm:$0xf0] }
 0x477   : > { %v4996_v54 = vor.u32 %v5153_v32, %v4995_v51 }
 0x478   : > { %v3020_v4 = vpack.c.bf16 %v2987_v13, %v2986_v16 }
 0x47a   : > { %3192 = vmatpush.bf16.msra.mxu1 %v3020_v4 }
 0x47d   : > { %3193 = vmatmul.bf16.vlgmr.msra.gmra.mxu1 %v4912_v50 }
 0x47e   : > { %3257 = vmatmul.bf16.gmra.mxu2 %v4952_v29 }
 0x483   : > { %5008 = vmatmul.msk.bf16.gmra.mxu3 %vm3157_vm8, %v4956_v49 }
 0x48d   : > { %3198 = vmatmul.bf16.gmra.mxu1 %v4924_v5 }
 0x48e   : > { %3262 = vmatmul.bf16.gmra.mxu2 %v4964_v19 }
 0x493   : > { %5009 = vmatmul.msk.bf16.gmra.mxu3 %vm3157_vm8, %v4968_v23 }
 0x49d   : > { %3203 = vmatmul.bf16.gmra.mxu1 %v4936_v8 }
 0x49e   : > { %3267 = vmatmul.bf16.gmra.mxu2 %v4976_v2  ;;  %v898_v0 = vpop.f32.mrf.mxu3 }
 0x4a3   : > { %5010 = vmatmul.msk.bf16.gmra.mxu3 %vm3157_vm8, %v4980_v28 }
 0x4a6   : > { %v899_v9 = vpop.f32.mrf.mxu3 }
 0x4ad   : > { %3208 = vmatmul.bf16.gmra.mxu1 %v4948_v39 }
 0x4ae   : > { %3272 = vmatmul.bf16.gmra.mxu2 %v4988_v46 }
 0x4b3   : > { %5011 = vmatmul.msk.bf16.gmra.mxu3 %vm3157_vm8, %v4992_v34 }
 0x4bd   : > { %3213 = vmatmul.bf16.gmra.mxu1 %v4960_v59 }
 0x4be   : > { %3277 = vmatmul.bf16.gmra.mxu2 %v5000_v62 }
 0x4c3   : > { %5012 = vmatmul.msk.bf16.gmra.mxu3 %vm3157_vm8, %v5004_v17 }
 0x4cb   : > { %v3243_v10 = vpop.f32.mrf.mxu2 }
 0x4cd   : > { %3218 = vmatmul.bf16.gmra.mxu1 %v4972_v63 }
 0x4d3   : > { %v3245_v26 = vpop.f32.mrf.mxu2 }
 0x4d6   : > { %v3292_v57 = vpop.f32.mrf.mxu3 }
 0x4db   : > { %v3248_v13 = vpop.f32.mrf.mxu2 }
 0x4dd   : > { %3223 = vmatmul.bf16.gmra.mxu1 %v4984_v22 }
 0x4de   : > { %v3294_v16 = vpop.f32.mrf.mxu3 }
 0x4e3   : > { %v3250_v50 = vpop.f32.mrf.mxu2 }
 0x4e6   : > { %v3297_v21 = vpop.f32.mrf.mxu3 }
 0x4ed   : > { %3228 = vmatmul.bf16.gmra.mxu1 %v4996_v54 }
 0x4ee   : > { %v3299_v35 = vpop.f32.mrf.mxu3 }
 0x4f1   : > { %v3253_v55 = vpop.f32.mrf.mxu2 }
 0x4f6   : > { %v3302_v5 = vpop.f32.mrf.mxu3 }
 0x4f9   : > { %v3255_v23 = vpop.f32.mrf.mxu2 }
 0x4fa   : > { %v3194_v1 = vpop.f32.mrf.mxu1 }
 0x4fb   : > { %v3244_v4 = vadd.f32 %v3243_v10, %v3194_v1 }
 0x4fd   : > { %v3293_v18 = vadd.f32 %v3292_v57, %v3244_v4 }
 0x4fe   : > { %v3304_v38 = vpop.f32.mrf.mxu3 }
 0x4ff   : > { %v3332_v30 = vpack.c.bf16 %v3293_v18, %v3293_v18 }
 0x501   : > { %3349 = vst.msk [vmem:[#allocation2] sm:$0xf] %vm3348_vm9, %v3332_v30  ;;  %v3258_v43 = vpop.f32.mrf.mxu2 }
 0x502   : > { %v3196_v29 = vpop.f32.mrf.mxu1 }
 0x503   : > { %v3246_v11 = vadd.f32 %v3245_v26, %v3196_v29 }
 0x505   : > { %v3295_v49 = vadd.f32 %v3294_v16, %v3246_v11 }
 0x506   : > { %v3307_v14 = vpop.f32.mrf.mxu3 }
 0x507   : > { %v3333_v24 = vpack.c.bf16 %v3295_v49, %v3295_v49 }
 0x509   : > { %3350 = vst.msk [vmem:[#allocation2 + $0x4] sm:$0xf] %vm3348_vm9, %v3333_v24  ;;  %v3260_v44 = vpop.f32.mrf.mxu2 }
 0x50a   : > { %v3199_v60 = vpop.f32.mrf.mxu1 }
 0x50b   : > { %v3249_v42 = vadd.f32 %v3248_v13, %v3199_v60 }
 0x50d   : > { %v3298_v56 = vadd.f32 %v3297_v21, %v3249_v42 }
 0x50e   : > { %v3309_v46 = vpop.f32.mrf.mxu3 }
 0x50f   : > { %v3334_v19 = vpack.c.bf16 %v3298_v56, %v3298_v56 }
 0x510   : > { %v5181_v31 = vld [vmem:[#allocation2] sm:$0xff] }
 0x511   : > { %3351 = vst.msk [vmem:[#allocation2 + $0x8] sm:$0xf] %vm3348_vm9, %v3334_v19  ;;  %5045 = vmatmul.msk.bf16.vlgmr.msra.gmra.mxu3 %vm3431_vm10, %v5181_v31  ;;  %v3263_v59 = vpop.f32.mrf.mxu2 }
 0x512   : > { %v3201_v52 = vpop.f32.mrf.mxu1 }
 0x513   : > { %v3251_v8 = vadd.f32 %v3250_v50, %v3201_v52 }
 0x515   : > { %v3300_v45 = vadd.f32 %v3299_v35, %v3251_v8 }
 0x516   : > { %v3312_v33 = vpop.f32.mrf.mxu3 }
 0x517   : > { %v3335_v20 = vpack.c.bf16 %v3300_v45, %v3300_v45 }
 0x519   : > { %3352 = vst.msk [vmem:[#allocation2 + $0xc] sm:$0xf] %vm3348_vm9, %v3335_v20  ;;  %v3265_v53 = vpop.f32.mrf.mxu2 }
 0x51a   : > { %v3204_v2 = vpop.f32.mrf.mxu1 }
 0x51b   : > { %v3254_v28 = vadd.f32 %v3253_v55, %v3204_v2 }
 0x51d   : > { %v3303_v37 = vadd.f32 %v3302_v5, %v3254_v28 }
 0x51e   : > { %v3314_v63 = vpop.f32.mrf.mxu3 }
 0x51f   : > { %v3336_v36 = vpack.c.bf16 %v3303_v37, %v3303_v37 }
 0x520   : > { %v5182_v39 = vld [vmem:[#allocation2 + $0x8] sm:$0xff] }
 0x521   : > { %3353 = vst.msk [vmem:[#allocation2 + $0x10] sm:$0xf] %vm3348_vm9, %v3336_v36  ;;  %5046 = vmatmul.msk.bf16.gmra.mxu3 %vm3431_vm10, %v5182_v39  ;;  %v3268_v57 = vpop.f32.mrf.mxu2 }
 0x522   : > { %v3206_v61 = vpop.f32.mrf.mxu1 }
 0x523   : > { %v3256_v7 = vadd.f32 %v3255_v23, %v3206_v61 }
 0x525   : > { %v3305_v15 = vadd.f32 %v3304_v38, %v3256_v7 }
 0x526   : > { %v3317_v3 = vpop.f32.mrf.mxu3 }
 0x527   : > { %v3337_v34 = vpack.c.bf16 %v3305_v15, %v3305_v15 }
 0x529   : > { %3354 = vst.msk [vmem:[#allocation2 + $0x14] sm:$0xf] %vm3348_vm9, %v3337_v34  ;;  %v3270_v16 = vpop.f32.mrf.mxu2 }
 0x52a   : > { %v3209_v40 = vpop.f32.mrf.mxu1 }
 0x52b   : > { %v3259_v47 = vadd.f32 %v3258_v43, %v3209_v40 }
 0x52d   : > { %v3308_v48 = vadd.f32 %v3307_v14, %v3259_v47 }
 0x52e   : > { %v3319_v21 = vpop.f32.mrf.mxu3 }
 0x52f   : > { %v3338_v6 = vpack.c.bf16 %v3308_v48, %v3308_v48 }
 0x530   : > { %v5183_v62 = vld [vmem:[#allocation2 + $0x10] sm:$0xff] }
 0x531   : > { %3355 = vst.msk [vmem:[#allocation2 + $0x18] sm:$0xf] %vm3348_vm9, %v3338_v6  ;;  %5047 = vmatmul.msk.bf16.gmra.mxu3 %vm3431_vm10, %v5183_v62  ;;  %v3273_v30 = vpop.f32.mrf.mxu2 }
 0x532   : > { %v3211_v27 = vpop.f32.mrf.mxu1 }
 0x533   : > { %v3261_v17 = vadd.f32 %v3260_v44, %v3211_v27 }
 0x535   : > { %v3310_v0 = vadd.f32 %v3309_v46, %v3261_v17 }
 0x536   : > { %v3322_v11 = vpop.f32.mrf.mxu3 }
 0x537   : > { %v3339_v41 = vpack.c.bf16 %v3310_v0, %v3310_v0 }
 0x539   : > { %3356 = vst.msk [vmem:[#allocation2 + $0x1c] sm:$0xf] %vm3348_vm9, %v3339_v41  ;;  %v3275_v60 = vpop.f32.mrf.mxu2 }
 0x53a   : > { %v3214_v9 = vpop.f32.mrf.mxu1 }
 0x53b   : > { %v3264_v12 = vadd.f32 %v3263_v59, %v3214_v9 }
 0x53d   : > { %v3313_v58 = vadd.f32 %v3312_v33, %v3264_v12 }
 0x53e   : > { %v3324_v19 = vpop.f32.mrf.mxu3 }
 0x53f   : > { %v3340_v22 = vpack.c.bf16 %v3313_v58, %v3313_v58 }
 0x540   : > { %v5184_v10 = vld [vmem:[#allocation2 + $0x18] sm:$0xff] }
 0x541   : > { %3357 = vst.msk [vmem:[#allocation2 + $0x20] sm:$0xf] %vm3348_vm9, %v3340_v22  ;;  %5048 = vmatmul.msk.bf16.gmra.mxu3 %vm3431_vm10, %v5184_v10  ;;  %v3278_v38 = vpop.f32.mrf.mxu2 }
 0x542   : > { %v3216_v25 = vpop.f32.mrf.mxu1 }
 0x543   : > { %v3266_v51 = vadd.f32 %v3265_v53, %v3216_v25 }
 0x545   : > { %v3315_v32 = vadd.f32 %v3314_v63, %v3266_v51 }
 0x546   : > { %v3327_v45 = vpop.f32.mrf.mxu3 }
 0x547   : > { %v3341_v26 = vpack.c.bf16 %v3315_v32, %v3315_v32 }
 0x549   : > { %3358 = vst.msk [vmem:[#allocation2 + $0x24] sm:$0xf] %vm3348_vm9, %v3341_v26  ;;  %v3280_v37 = vpop.f32.mrf.mxu2 }
 0x54a   : > { %v3219_v54 = vpop.f32.mrf.mxu1 }
 0x54b   : > { %v3269_v13 = vadd.f32 %v3268_v57, %v3219_v54 }
 0x54d   : > { %v3318_v1 = vadd.f32 %v3317_v3, %v3269_v13 }
 0x54e   : > { %v3329_v39 = vpop.f32.mrf.mxu3 }
 0x54f   : > { %v3342_v4 = vpack.c.bf16 %v3318_v1, %v3318_v1 }
 0x550   : > { %v5185_v50 = vld [vmem:[#allocation2 + $0x20] sm:$0xff] }
 0x551   : > { %3359 = vst.msk [vmem:[#allocation2 + $0x28] sm:$0xf] %vm3348_vm9, %v3342_v4  ;;  %5049 = vmatmul.msk.bf16.gmra.mxu3 %vm3431_vm10, %v5185_v50 }
 0x552   : > { %v3221_v18 = vpop.f32.mrf.mxu1 }
 0x553   : > { %v3271_v35 = vadd.f32 %v3270_v16, %v3221_v18 }
 0x555   : > { %v3320_v29 = vadd.f32 %v3319_v21, %v3271_v35 }
 0x557   : > { %v3343_v49 = vpack.c.bf16 %v3320_v29, %v3320_v29 }
 0x559   : > { %3360 = vst.msk [vmem:[#allocation2 + $0x2c] sm:$0xf] %vm3348_vm9, %v3343_v49 }
 0x55a   : > { %v3224_v55 = vpop.f32.mrf.mxu1 }
 0x55b   : > { %v3274_v24 = vadd.f32 %v3273_v30, %v3224_v55 }
 0x55d   : > { %v3323_v5 = vadd.f32 %v3322_v11, %v3274_v24 }
 0x55f   : > { %v3344_v42 = vpack.c.bf16 %v3323_v5, %v3323_v5 }
 0x560   : > { %v5186_v56 = vld [vmem:[#allocation2 + $0x28] sm:$0xff] }
 0x561   : > { %3361 = vst.msk [vmem:[#allocation2 + $0x30] sm:$0xf] %vm3348_vm9, %v3344_v42  ;;  %5050 = vmatmul.msk.bf16.gmra.mxu3 %vm3431_vm10, %v5186_v56 }
 0x562   : > { %v3226_v31 = vpop.f32.mrf.mxu1 }
 0x563   : > { %v3276_v23 = vadd.f32 %v3275_v60, %v3226_v31 }
 0x565   : > { %v3325_v52 = vadd.f32 %v3324_v19, %v3276_v23 }
 0x567   : > { %v3345_v8 = vpack.c.bf16 %v3325_v52, %v3325_v52 }
 0x569   : > { %3362 = vst.msk [vmem:[#allocation2 + $0x34] sm:$0xf] %vm3348_vm9, %v3345_v8 }
 0x56a   : > { %v3229_v20 = vpop.f32.mrf.mxu1 }
 0x56b   : > { %v3279_v43 = vadd.f32 %v3278_v38, %v3229_v20 }
 0x56d   : > { %v3328_v2 = vadd.f32 %v3327_v45, %v3279_v43 }
 0x56f   : > { %v3346_v14 = vpack.c.bf16 %v3328_v2, %v3328_v2 }
 0x570   : > { %v5187_v28 = vld [vmem:[#allocation2 + $0x30] sm:$0xff] }
 0x571   : > { %3363 = vst.msk [vmem:[#allocation2 + $0x38] sm:$0xf] %vm3348_vm9, %v3346_v14  ;;  %5051 = vmatmul.msk.bf16.gmra.mxu3 %vm3431_vm10, %v5187_v28 }
 0x572   : > { %v3231_v36 = vpop.f32.mrf.mxu1 }
 0x573   : > { %v3281_v61 = vadd.f32 %v3280_v37, %v3231_v36 }
 0x575   : > { %v3330_v44 = vadd.f32 %v3329_v39, %v3281_v61 }
 0x577   : > { %v3347_v7 = vpack.c.bf16 %v3330_v44, %v3330_v44 }
 0x579   : > { %3364 = vst.msk [vmem:[#allocation2 + $0x3c] sm:$0xf] %vm3348_vm9, %v3347_v7 }
 0x580   : > { %v5188_v46 = vld [vmem:[#allocation2 + $0x38] sm:$0xff] }
 0x581   : > { %5052 = vmatmul.msk.bf16.gmra.mxu3 %vm3431_vm10, %v5188_v46 }
 0x594   : > { %v8311_v15 = vpop.f32.mrf.mxu3 }
 0x595   : > { %v3518_v40 = vrot.slane %v8311_v15, 1  ;;  %v3585_v47 = vrot.slane %v8311_v15, 2 }
 0x59c   : > { %v8313_v34 = vpop.f32.mrf.mxu3 }
 0x59d   : > { %v3586_v59 = vrot.slane %v8313_v34, 2  ;;  %v3519_v48 = vrot.slane %v8313_v34, 1  ;;  %v3699_v27 = vrot.slane %v8313_v34, 3 }
 0x59f   : > { %v3587_v33 = vsel %vm1163_vm5, %v3585_v47, %v3586_v59  ;;  %v3520_v6 = vsel %vm939_vm7, %v3518_v40, %v3519_v48 }
 0x5a0   : > { %3608 = vrot.lane.b32.xlu2 %v3587_v33, %s9211_s28  ;;  %3541 = vrot.lane.b32.xlu1 %v3520_v6, %s9254_s1 }
 0x5a4   : > { %v8323_v62 = vpop.f32.mrf.mxu3 }
 0x5a5   : > { %v3700_v17 = vrot.slane %v8323_v62, 3  ;;  %v3588_v0 = vrot.slane %v8323_v62, 2  ;;  %v3521_v53 = vrot.slane %v8323_v62, 1  ;;  %v3767_v35 = vrot.slane %v8323_v62, 4 }
 0x5a7   : > { %v3701_v41 = vsel %vm1541_vm3, %v3699_v27, %v3700_v17  ;;  %v3589_v63 = vsel %vm1163_vm5, %v3586_v59, %v3588_v0  ;;  %v3522_v9 = vsel %vm939_vm7, %v3519_v48, %v3521_v53 }
 0x5a8   : > { %3722 = vrot.lane.b32.xlu2 %v3701_v41, %s9259_s30  ;;  %3610 = vrot.lane.b32.xlu0 %v3589_v63, %s9211_s28 }
 0x5a9   : > { %3543 = vrot.lane.b32.xlu1 %v3522_v9, %s9254_s1 }
 0x5ac   : > { %v8335_v12 = vpop.f32.mrf.mxu3 }
 0x5ad   : > { %v3590_v58 = vrot.slane %v8335_v12, 2  ;;  %v3523_v10 = vrot.slane %v8335_v12, 1  ;;  %v3702_v32 = vrot.slane %v8335_v12, 3  ;;  %v3769_v13 = vrot.slane %v8335_v12, 4 }
 0x5af   : > { %v3591_v22 = vsel %vm1163_vm5, %v3588_v0, %v3590_v58  ;;  %v3524_v3 = vsel %vm939_vm7, %v3521_v53, %v3523_v10  ;;  %v3703_v21 = vsel %vm1541_vm3, %v3700_v17, %v3702_v32  ;;  %v8369_v30 = vsel %vm1765_vm6, %v3767_v35, %v3769_v13 }
 0x5b0   : > { %3655 = vrot.lane.b32.xlu0 %v3589_v63, %s9228_s26  ;;  %3612 = vrot.lane.b32.xlu2 %v3591_v22, %s9211_s28 }
 0x5b4   : > { %v8342_v57 = vpop.f32.mrf.mxu3 }
 0x5b5   : > { %v3592_v25 = vrot.slane %v8342_v57, 2  ;;  %v3525_v26 = vrot.slane %v8342_v57, 1  ;;  %v3771_v16 = vrot.slane %v8342_v57, 4  ;;  %v3704_v11 = vrot.slane %v8342_v57, 3 }
 0x5b7   : > { %v3593_v51 = vsel %vm1163_vm5, %v3590_v58, %v3592_v25  ;;  %v3526_v1 = vsel %vm939_vm7, %v3523_v10, %v3525_v26  ;;  %v3772_v4 = vsel %vm1765_vm6, %v3769_v13, %v3771_v16  ;;  %v3705_v24 = vsel %vm1541_vm3, %v3702_v32, %v3704_v11 }
 0x5b8   : > { %3657 = vrot.lane.b32.xlu2 %v3591_v22, %s9228_s26  ;;  %3545 = vrot.lane.b32.xlu0 %v3524_v3, %s9254_s1 }
 0x5b9   : > { %3614 = vrot.lane.b32.xlu1 %v3593_v51, %s9211_s28 }
 0x5bc   : > { %v8352_v54 = vpop.f32.mrf.mxu3 }
 0x5bd   : > { %v3594_v18 = vrot.slane %v8352_v54, 2  ;;  %v3706_v55 = vrot.slane %v8352_v54, 3  ;;  %v3773_v60 = vrot.slane %v8352_v54, 4  ;;  %v3527_v42 = vrot.slane %v8352_v54, 1 }
 0x5be   : > { %v3885_v41 = vrot.slane %v8352_v54, 5 }
 0x5bf   : > { %v3595_v29 = vsel %vm1163_vm5, %v3592_v25, %v3594_v18  ;;  %v3707_v5 = vsel %vm1541_vm3, %v3704_v11, %v3706_v55  ;;  %v3774_v31 = vsel %vm1765_vm6, %v3771_v16, %v3773_v60  ;;  %v3528_v23 = vsel %vm939_vm7, %v3525_v26, %v3527_v42 }
 0x5c0   : > { %3724 = vrot.lane.b32.xlu0 %v3703_v21, %s9259_s30  ;;  %3547 = vrot.lane.b32.xlu2 %v3526_v1, %s9254_s1 }
 0x5c1   : > { %3793 = vrot.lane.b32.xlu1 %v3772_v4, %s5334_s18 }
 0x5c4   : > { %v8362_v50 = vpop.f32.mrf.mxu3 }
 0x5c5   : > { %v3529_v19 = vrot.slane %v8362_v50, 1  ;;  %v3596_v8 = vrot.slane %v8362_v50, 2  ;;  %v3708_v20 = vrot.slane %v8362_v50, 3  ;;  %v3775_v37 = vrot.slane %v8362_v50, 4 }
 0x5c6   : > { %v3887_v33 = vrot.slane %v8362_v50, 5 }
 0x5c7   : > { %v3530_v52 = vsel %vm939_vm7, %v3527_v42, %v3529_v19  ;;  %v3597_v45 = vsel %vm1163_vm5, %v3594_v18, %v3596_v8  ;;  %v3709_v14 = vsel %vm1541_vm3, %v3706_v55, %v3708_v20  ;;  %v3776_v61 = vsel %vm1765_vm6, %v3773_v60, %v3775_v37 }
 0x5c8   : > { %3791 = vrot.lane.b32.xlu0 %v8369_v30, %s5334_s18  ;;  %3659 = vrot.lane.b32.xlu2 %v3593_v51, %s9228_s26  ;;  %v3888_v3 = vsel %vm2143_vm4, %v3885_v41, %v3887_v33 }
 0x5c9   : > { %3616 = vrot.lane.b32.xlu1 %v3595_v29, %s9211_s28 }
 0x5cc   : > { %v8377_v49 = vpop.f32.mrf.mxu3 }
 0x5cd   : > { %v3531_v43 = vrot.slane %v8377_v49, 1  ;;  %v3598_v36 = vrot.slane %v8377_v49, 2  ;;  %v3710_v7 = vrot.slane %v8377_v49, 3  ;;  %v3777_v26 = vrot.slane %v8377_v49, 4 }
 0x5ce   : > { %v3889_v16 = vrot.slane %v8377_v49, 5  ;;  %v3956_v42 = vrot.slane %v8377_v49, 6 }
 0x5cf   : > { %v3532_v28 = vsel %vm939_vm7, %v3529_v19, %v3531_v43  ;;  %v3599_v44 = vsel %vm1163_vm5, %v3596_v8, %v3598_v36  ;;  %v3711_v63 = vsel %vm1541_vm3, %v3708_v20, %v3710_v7  ;;  %v3778_v18 = vsel %vm1765_vm6, %v3775_v37, %v3777_v26 }
 0x5d0   : > { %3726 = vrot.lane.b32.xlu0 %v3705_v24, %s9259_s30  ;;  %3838 = vrot.lane.b32.xlu2 %v3772_v4, %s5335_s27 }
 0x5d1   : > { %3728 = vrot.lane.b32.xlu1 %v3707_v5, %s9259_s30 }
 0x5d4   : > { %v8387_v56 = vpop.f32.mrf.mxu3 }
 0x5d5   : > { %v3600_v60 = vrot.slane %v8387_v56, 2 }
 0x5d8   : > { %3795 = vrot.lane.b32.xlu0 %v3774_v31, %s5334_s18  ;;  %3549 = vrot.lane.b32.xlu2 %v3528_v23, %s9254_s1  ;;  %v3601_v23 = vsel %vm1163_vm5, %v3598_v36, %v3600_v60 }
 0x5d9   : > { %3551 = vrot.lane.b32.xlu1 %v3530_v52, %s9254_s1 }
 0x5dc   : > { %v8396_v38 = vpop.f32.mrf.mxu3 }
 0x5dd   : > { %v3535_v20 = vrot.slane %v8396_v38, 1 }
 0x5e0   : > { %3840 = vrot.lane.b32.xlu0 %v3774_v31, %s5335_s27  ;;  %3661 = vrot.lane.b32.xlu2 %v3595_v29, %s9228_s26  ;;  %v3890_v29 = vsel %vm2143_vm4, %v3887_v33, %v3889_v16  ;;  %v3954_v31 = vrot.slane %v8362_v50, 6 }
 0x5e1   : > { %3618 = vrot.lane.b32.xlu1 %v3597_v45, %s9211_s28 }
 0x5e2   : > { %v3957_v52 = vsel %vm778_vm1, %v3954_v31, %v3956_v42 }
 0x5e4   : > { %v8405_v2 = vpop.f32.mrf.mxu3 }
 0x5e8   : > { %3730 = vrot.lane.b32.xlu0 %v3709_v14, %s9259_s30  ;;  %3553 = vrot.lane.b32.xlu2 %v3532_v28, %s9254_s1  ;;  %v3533_v14 = vrot.slane %v8387_v56, 1 }
 0x5e9   : > { %3663 = vrot.lane.b32.xlu1 %v3597_v45, %s9228_s26  ;;  %v3712_v45 = vrot.slane %v8387_v56, 3 }
 0x5ea   : > { %v3536_v36 = vsel %vm939_vm7, %v3533_v14, %v3535_v20 }
 0x5eb   : > { %v3713_v37 = vsel %vm1541_vm3, %v3710_v7, %v3712_v45  ;;  %v3779_v7 = vrot.slane %v8387_v56, 4 }
 0x5ec   : > { %v8416_v39 = vpop.f32.mrf.mxu3 }
 0x5ed   : > { %v3718_v46 = vrot.slane %v8416_v39, 3  ;;  %v3785_v40 = vrot.slane %v8416_v39, 4  ;;  %v3606_v47 = vrot.slane %v8416_v39, 2  ;;  %v3897_v59 = vrot.slane %v8416_v39, 5 }
 0x5ee   : > { %v3964_v6 = vrot.slane %v8416_v39, 6 }
 0x5f0   : > { %3797 = vrot.lane.b32.xlu0 %v3776_v61, %s5334_s18  ;;  %3620 = vrot.lane.b32.xlu2 %v3599_v44, %s9211_s28 }
 0x5f1   : > { %3842 = vrot.lane.b32.xlu1 %v3776_v61, %s5335_s27  ;;  %v3534_v61 = vsel %vm939_vm7, %v3531_v43, %v3533_v14  ;;  %v3781_v14 = vrot.slane %v8396_v38, 4 }
 0x5f4   : > { %v3498_v48 = vpop.f32.mrf.mxu3 }
 0x5f5   : > { %v3720_v27 = vrot.slane %v3498_v48, 3  ;;  %v3787_v17 = vrot.slane %v3498_v48, 4  ;;  %v3653_v0 = vrot.slane %v3498_v48, 2  ;;  %v3899_v53 = vrot.slane %v3498_v48, 5 }
 0x5f6   : > { %v3966_v9 = vrot.slane %v3498_v48, 6 }
 0x5f7   : > { %v8435_v58 = vsel %vm1541_vm3, %v3718_v46, %v3720_v27  ;;  %v8440_v22 = vsel %vm1765_vm6, %v3785_v40, %v3787_v17  ;;  %v8445_v10 = vsel %vm1163_vm5, %v3606_v47, %v3653_v0  ;;  %v8450_v25 = vsel %vm2143_vm4, %v3897_v59, %v3899_v53 }
 0x5f8   : > { %3665 = vrot.lane.b32.xlu0 %v3599_v44, %s9228_s26  ;;  %3732 = vrot.lane.b32.xlu2 %v3711_v63, %s9259_s30  ;;  %v8460_v51 = vsel %vm778_vm1, %v3964_v6, %v3966_v9  ;;  %v3602_v27 = vrot.slane %v8396_v38, 2  ;;  %v3891_v0 = vrot.slane %v8387_v56, 5  ;;  %v3780_v63 = vsel %vm1765_vm6, %v3777_v26, %v3779_v7 }
 0x5f9   : > { %3909 = vrot.lane.b32.xlu1 %v3888_v3, %s5336_s21  ;;  %v3716_v26 = vrot.slane %v8405_v2, 3 }
 0x5fa   : > { %v3609_v32 = vpop.permute.xlu2 %3608 }
 0x5fc   : > { %v3500_v13 = vpop.f32.mrf.mxu3 }
 0x5fd   : > { %v3834_v21 = vrot.slane %v3500_v13, 4  ;;  %v3901_v1 = vrot.slane %v3500_v13, 5  ;;  %v3968_v4 = vrot.slane %v3500_v13, 6 }
 0x5ff   : > { %v8468_v11 = vsel %vm778_vm1, %v3966_v9, %v3968_v4  ;;  %v8471_v55 = vsel %vm2143_vm4, %v3899_v53, %v3901_v1  ;;  %v8474_v24 = vsel %vm1765_vm6, %v3787_v17, %v3834_v21  ;;  %v3604_v17 = vrot.slane %v8405_v2, 2 }
 0x600   : > { %3799 = vrot.lane.b32.xlu0 %v3778_v18, %s5334_s18  ;;  %3911 = vrot.lane.b32.xlu2 %v3890_v29, %s5336_s21 }
 0x601   : > { %3844 = vrot.lane.b32.xlu1 %v3778_v18, %s5335_s27  ;;  %v8513_v43 = vsel %vm1163_vm5, %v3602_v27, %v3604_v17 }
 0x602   : > { %v3723_v5 = vpop.permute.xlu2 %3722 }
 0x604   : > { %v3503_v19 = vpop.f32.mrf.mxu3 }
 0x608   : > { %3667 = vrot.lane.b32.xlu0 %v3601_v23, %s9228_s26  ;;  %3622 = vrot.lane.b32.xlu2 %v3601_v23, %s9211_s28 }
 0x609   : > { %3978 = vrot.lane.b32.xlu1 %v3957_v52, %s5337_s24  ;;  %v3958_v52 = vrot.slane %v8387_v56, 6 }
 0x60a   : > { %v3613_v8 = vpop.permute.xlu2 %3612 }
 0x60c   : > { %v3504_v28 = vpop.f32.mrf.mxu3 }
 0x60d   : > { %v3783_v28 = vrot.slane %v8405_v2, 4 }
 0x610   : > { %3734 = vrot.lane.b32.xlu2 %v3713_v37, %s9259_s30  ;;  %3557 = vrot.lane.b32.xlu0 %v3536_v36, %s9254_s1  ;;  %v3959_v36 = vsel %vm778_vm1, %v3956_v42, %v3958_v52  ;;  %v3962_v42 = vrot.slane %v8405_v2, 6 }
 0x611   : > { %3555 = vrot.lane.b32.xlu1 %v3534_v61, %s9254_s1  ;;  %v3782_v61 = vsel %vm1765_vm6, %v3779_v7, %v3781_v14 }
 0x612   : > { %v3542_v44 = vpop.permute.xlu1 %3541  ;;  %v3658_v48 = vpop.permute.xlu2 %3657 }
 0x613   : > { %v3574_v33 = vadd.f32 %v3542_v44, %v8311_v15  ;;  %v3892_v15 = vsel %vm2143_vm4, %v3889_v16, %v3891_v0  ;;  %v3603_v16 = vsel %vm1163_vm5, %v3600_v60, %v3602_v27  ;;  %v3784_v60 = vsel %vm1765_vm6, %v3781_v14, %v3783_v28 }
 0x615   : > { %v3641_v53 = vadd.f32 %v3609_v32, %v3574_v33  ;;  %v3714_v32 = vrot.slane %v8396_v38, 3 }
 0x617   : > { %v3717_v4 = vsel %vm1541_vm3, %v3714_v32, %v3716_v26 }
 0x618   : > { %3801 = vrot.lane.b32.xlu2 %v3780_v63, %s5334_s18  ;;  %3671 = vrot.lane.b32.xlu0 %v8513_v43, %s9228_s26 }
 0x619   : > { %3913 = vrot.lane.b32.xlu1 %v3892_v15, %s5336_s21 }
 0x61a   : > { %v3611_v9 = vpop.permute.xlu0 %3610  ;;  %v3548_v3 = vpop.permute.xlu2 %3547 }
 0x61b   : > { %v3544_v13 = vpop.permute.xlu1 %3543  ;;  %v3577_v44 = vadd.f32 %v3548_v3, %v8335_v12 }
 0x61c   : > { %v3575_v21 = vadd.f32 %v3544_v13, %v8313_v34 }
 0x61e   : > { %v3642_v1 = vadd.f32 %v3611_v9, %v3575_v21 }
 0x620   : > { %3846 = vrot.lane.b32.xlu2 %v3780_v63, %s5335_s27  ;;  %3738 = vrot.lane.b32.xlu0 %v3717_v4, %s9259_s30  ;;  %v3689_v18 = vadd.f32 %v3658_v48, %v3642_v1  ;;  %v3539_v4 = vrot.slane %v8416_v39, 1 }
 0x621   : > { %3624 = vrot.lane.b32.xlu1 %v3603_v16, %s9211_s28 }
 0x622   : > { %v3656_v29 = vpop.permute.xlu0 %3655  ;;  %v3660_v19 = vpop.permute.xlu2 %3659 }
 0x623   : > { %v3688_v23 = vadd.f32 %v3656_v29, %v3641_v53  ;;  %v3960_v53 = vrot.slane %v8396_v38, 6  ;;  %v3893_v29 = vrot.slane %v8396_v38, 5 }
 0x625   : > { %v8531_v37 = vadd.f32 %v3723_v5, %v3688_v23  ;;  %v3963_v7 = vsel %vm778_vm1, %v3960_v53, %v3962_v42  ;;  %v3894_v23 = vsel %vm2143_vm4, %v3891_v0, %v3893_v29  ;;  %v3719_v0 = vsel %vm1541_vm3, %v3716_v26, %v3718_v46 }
 0x626   : > { %v3786_v46 = vsel %vm1765_vm6, %v3783_v28, %v3785_v40  ;;  %v3607_v40 = vsel %vm1163_vm5, %v3604_v17, %v3606_v47 }
 0x628   : > { %3980 = vrot.lane.b32.xlu2 %v3959_v36, %s5337_s24  ;;  %3850 = vrot.lane.b32.xlu0 %v3784_v60, %s5335_s27 }
 0x629   : > { %3803 = vrot.lane.b32.xlu1 %v3782_v61, %s5334_s18 }
 0x62a   : > { %v3546_v48 = vpop.permute.xlu0 %3545  ;;  %v3839_v33 = vpop.permute.xlu2 %3838 }
 0x62b   : > { %v3576_v27 = vadd.f32 %v3546_v48, %v8323_v62  ;;  %v3615_v5 = vpop.permute.xlu1 %3614 }
 0x62c   : > { %v3644_v63 = vadd.f32 %v3615_v5, %v3577_v44 }
 0x62d   : > { %v3643_v15 = vadd.f32 %v3613_v8, %v3576_v27  ;;  %v3537_v8 = vrot.slane %v8405_v2, 1 }
 0x62f   : > { %v3690_v9 = vadd.f32 %v3660_v19, %v3643_v15  ;;  %v3715_v19 = vsel %vm1541_vm3, %v3712_v45, %v3714_v32  ;;  %v3961_v45 = vsel %vm778_vm1, %v3958_v52, %v3960_v53  ;;  %v3538_v52 = vsel %vm939_vm7, %v3535_v20, %v3537_v8 }
 0x630   : > { %3669 = vrot.lane.b32.xlu2 %v3603_v16, %s9228_s26  ;;  %3984 = vrot.lane.b32.xlu0 %v3963_v7, %s5337_s24  ;;  %v3540_v16 = vsel %vm939_vm7, %v3537_v8, %v3539_v4  ;;  %vm4724_vm3 = vcmask 73728  }
 0x631   : > { %3848 = vrot.lane.b32.xlu1 %v3782_v61, %s5335_s27 }
 0x632   : > { %v3725_v3 = vpop.permute.xlu0 %3724  ;;  %v3550_v13 = vpop.permute.xlu2 %3549 }
 0x633   : > { %v3756_v21 = vadd.f32 %v3725_v3, %v3689_v18  ;;  %v3794_v1 = vpop.permute.xlu1 %3793  ;;  %v3578_v18 = vadd.f32 %v3550_v13, %v8342_v57 }
 0x638   : > { %3736 = vrot.lane.b32.xlu2 %v3715_v19, %s9259_s30  ;;  %3561 = vrot.lane.b32.xlu0 %v3540_v16, %s9254_s1 }
 0x639   : > { %3915 = vrot.lane.b32.xlu1 %v3894_v23, %s5336_s21 }
 0x63a   : > { %v3792_v14 = vpop.permute.xlu0 %3791  ;;  %v3662_v36 = vpop.permute.xlu2 %3661 }
 0x63b   : > { %v3823_v61 = vadd.f32 %v3792_v14, %v3756_v21  ;;  %v3617_v44 = vpop.permute.xlu1 %3616  ;;  %v3691_v48 = vadd.f32 %v3662_v36, %v3644_v63  ;;  %v3965_v36 = vsel %vm778_vm1, %v3962_v42, %v3964_v6 }
 0x63c   : > { %v3645_v27 = vadd.f32 %v3617_v44, %v3578_v18 }
 0x63d   : > { %v8561_v5 = vadd.f32 %v3839_v33, %v3823_v61 }
 0x640   : > { %3982 = vrot.lane.b32.xlu2 %v3961_v45, %s5337_s24  ;;  %3740 = vrot.lane.b32.xlu0 %v3719_v0, %s9259_s30 }
 0x641   : > { %3626 = vrot.lane.b32.xlu1 %v8513_v43, %s9211_s28 }
 0x642   : > { %v3727_v32 = vpop.permute.xlu0 %3726  ;;  %v3554_v15 = vpop.permute.xlu2 %3553 }
 0x643   : > { %v3757_v7 = vadd.f32 %v3727_v32, %v3690_v9  ;;  %v3729_v63 = vpop.permute.xlu1 %3728  ;;  %v3580_v43 = vadd.f32 %v3554_v15, %v8362_v50  ;;  %v3883_v15 = vrot.slane %v8342_v57, 5  ;;  %v3950_v50 = vrot.slane %v8342_v57, 6 }
 0x644   : > { %v3758_v3 = vadd.f32 %v3729_v63, %v3691_v48  ;;  %v3766_v63 = vrot.slane %v8313_v34, 4 }
 0x645   : > { %v3824_v33 = vadd.f32 %v3794_v1, %v3757_v7  ;;  %v3895_v1 = vrot.slane %v8405_v2, 5  ;;  %v3952_v7 = vrot.slane %v8352_v54, 6 }
 0x647   : > { %v3896_v20 = vsel %vm2143_vm4, %v3893_v29, %v3895_v1  ;;  %v3898_v47 = vsel %vm2143_vm4, %v3895_v1, %v3897_v59  ;;  %v3948_v1 = vrot.slane %v8335_v12, 6 }
 0x648   : > { %3559 = vrot.lane.b32.xlu2 %v3538_v52, %s9254_s1  ;;  %3807 = vrot.lane.b32.xlu0 %v3786_v46, %s5334_s18 }
 0x649   : > { %3805 = vrot.lane.b32.xlu1 %v3784_v60, %s5334_s18 }
 0x64a   : > { %v3796_v26 = vpop.permute.xlu0 %3795  ;;  %v3621_v53 = vpop.permute.xlu2 %3620 }
 0x64b   : > { %v3825_v9 = vadd.f32 %v3796_v26, %v3758_v3  ;;  %v3552_v13 = vpop.permute.xlu1 %3551  ;;  %v3647_v21 = vadd.f32 %v3621_v53, %v3580_v43  ;;  %v3953_v26 = vsel %vm778_vm1, %v3950_v50, %v3952_v7 }
 0x64c   : > { %v3579_v28 = vadd.f32 %v3552_v13, %v8352_v54 }
 0x650   : > { %3628 = vrot.lane.b32.xlu2 %v3607_v40, %s9211_s28  ;;  %3852 = vrot.lane.b32.xlu0 %v3786_v46, %s5335_s27 }
 0x651   : > { %3917 = vrot.lane.b32.xlu1 %v3896_v20, %s5336_s21  ;;  %v3880_v20 = vrot.slane %v8323_v62, 5 }
 0x652   : > { %v3841_v60 = vpop.permute.xlu0 %3840  ;;  %v3733_v4 = vpop.permute.xlu2 %3732 }
 0x653   : > { %v8592_v8 = vadd.f32 %v3841_v60, %v3824_v33  ;;  %v3619_v19 = vpop.permute.xlu1 %3618 }
 0x654   : > { %v3646_v16 = vadd.f32 %v3619_v19, %v3579_v28 }
 0x658   : > { %3673 = vrot.lane.b32.xlu2 %v3607_v40, %s9228_s26  ;;  %3919 = vrot.lane.b32.xlu0 %v3898_v47, %s5336_s21  ;;  %v3947_v40 = vrot.slane %v8323_v62, 6 }
 0x659   : > { %3742 = vrot.lane.b32.xlu1 %v8435_v58, %s9259_s30 }
 0x65a   : > { %v3731_v17 = vpop.permute.xlu0 %3730  ;;  %v3912_v29 = vpop.permute.xlu2 %3911  ;;  %v3949_v60 = vsel %vm778_vm1, %v3947_v40, %v3948_v1 }
 0x65b   : > { %v3664_v23 = vpop.permute.xlu1 %3663 }
 0x65c   : > { %v3692_v18 = vadd.f32 %v3664_v23, %v3645_v27 }
 0x65e   : > { %v3759_v14 = vadd.f32 %v3731_v17, %v3692_v18 }
 0x660   : > { %3986 = vrot.lane.b32.xlu2 %v3965_v36, %s5337_s24  ;;  %3675 = vrot.lane.b32.xlu0 %v8445_v10, %s9228_s26 }
 0x661   : > { %3809 = vrot.lane.b32.xlu1 %v8440_v22, %s5334_s18 }
 0x662   : > { %v3798_v59 = vpop.permute.xlu0 %3797  ;;  %v3623_v58 = vpop.permute.xlu2 %3622 }
 0x663   : > { %v3826_v61 = vadd.f32 %v3798_v59, %v3759_v14  ;;  %v3843_v44 = vpop.permute.xlu1 %3842 }
 0x664   : > { %v3872_v48 = vadd.f32 %v3843_v44, %v3825_v9 }
 0x668   : > { %3921 = vrot.lane.b32.xlu2 %v8450_v25, %s5336_s21  ;;  %3854 = vrot.lane.b32.xlu0 %v8440_v22, %s5335_s27 }
 0x669   : > { %3988 = vrot.lane.b32.xlu1 %v8460_v51, %s5337_s24 }
 0x66a   : > { %v3666_v39 = vpop.permute.xlu0 %3665  ;;  %v3735_v6 = vpop.permute.xlu2 %3734 }
 0x66b   : > { %v3910_v10 = vpop.permute.xlu1 %3909  ;;  %v3693_v42 = vadd.f32 %v3666_v39, %v3646_v16 }
 0x66c   : > { %v8617_v27 = vadd.f32 %v3910_v10, %v3872_v48 }
 0x66d   : > { %v3760_v45 = vadd.f32 %v3733_v4, %v3693_v42  ;;  %v3951_v4 = vsel %vm778_vm1, %v3948_v1, %v3950_v50 }
 0x670   : > { %3990 = vrot.lane.b32.xlu2 %v8468_v11, %s5337_s24  ;;  %3923 = vrot.lane.b32.xlu0 %v8471_v55, %s5336_s21  ;;  %v3886_v11 = vsel %vm2143_vm4, %v3883_v15, %v3885_v41  ;;  %v3955_v55 = vsel %vm778_vm1, %v3952_v7, %v3954_v31  ;;  %v3881_v31 = vrot.slane %v8335_v12, 5 }
 0x671   : > { %3856 = vrot.lane.b32.xlu1 %v8474_v24, %s5335_s27  ;;  %v3768_v24 = vsel %vm1765_vm6, %v3766_v63, %v3767_v35 }
 0x672   : > { %v3800_v22 = vpop.permute.xlu0 %3799  ;;  %v3802_v25 = vpop.permute.xlu2 %3801  ;;  %v3884_v53 = vsel %vm2143_vm4, %v3881_v31, %v3883_v15  ;;  %v3882_v12 = vsel %vm2143_vm4, %v3880_v20, %v3881_v31 }
 0x673   : > { %v3845_v0 = vpop.permute.xlu1 %3844  ;;  %v3827_v51 = vadd.f32 %v3800_v22, %v3760_v45 }
 0x674   : > { %v3873_v32 = vadd.f32 %v3845_v0, %v3826_v61 }
 0x676   : > { %v3940_v3 = vadd.f32 %v3912_v29, %v3873_v32 }
 0x678   : > { %3907 = vrot.lane.b32.xlu2 %v3886_v11, %s5336_s21  ;;  %3976 = vrot.lane.b32.xlu0 %v3955_v55, %s5337_s24 }
 0x679   : > { %3789 = vrot.lane.b32.xlu1 %v3768_v24, %s5334_s18  ;;  %s5281_s18 = scalar_lea.hbm %s8960_s16, 2 }
 0x67a   : > { %v3668_v34 = vpop.permute.xlu0 %3667  ;;  %v3847_v33 = vpop.permute.xlu2 %3846 }
 0x67b   : > { %v3979_v52 = vpop.permute.xlu1 %3978  ;;  %v3694_v54 = vadd.f32 %v3668_v34, %v3647_v21  ;;  %v3874_v46 = vadd.f32 %v3847_v33, %v3827_v51 }
 0x67c   : > { %v4007_v41 = vadd.f32 %v3979_v52, %v3940_v3 }
 0x67d   : > { %v3761_v43 = vadd.f32 %v3735_v6, %v3694_v54 }
 0x67f   : > { %v3828_v9 = vadd.f32 %v3802_v25, %v3761_v43 }
 0x680   : > { %3974 = vrot.lane.b32.xlu2 %v3953_v26, %s5337_s24  ;;  %3905 = vrot.lane.b32.xlu0 %v3884_v53, %s5336_s21 }
 0x681   : > { %3836 = vrot.lane.b32.xlu1 %v8369_v30, %s5335_s27  ;;  %v8657_v30 = vld [vmem:[%s8949_s5] ss:$0 sm:$0xff] }
 0x682   : > { %v3981_v35 = vpop.permute.xlu2 %3980  ;;  %v3558_v13 = vpop.permute.xlu0 %3557  ;;  %v4021_v16 = vadd.f32 %v8657_v30, %v4007_v41 }
 0x683   : > { %v3556_v21 = vpop.permute.xlu1 %3555  ;;  %v3582_v18 = vadd.f32 %v3558_v13, %v8387_v56 }
 0x684   : > { %v3581_v57 = vadd.f32 %v3556_v21, %v8377_v49  ;;  %v4032_v29 = vmax.f32 %v4021_v16, 0.0 }
 0x686   : > { %v3648_v28 = vadd.f32 %v3623_v58, %v3581_v57  ;;  %v8666_v61 = vrot.slane %v4032_v29, 1 }
 0x688   : > { %3970 = vrot.lane.b32.xlu2 %v3949_v60, %s5337_s24  ;;  %3972 = vrot.lane.b32.xlu0 %v3951_v4, %s5337_s24 }
 0x689   : > { %3903 = vrot.lane.b32.xlu1 %v3882_v12, %s5336_s21  ;;  %s513_s21 = sand.u32 1, %s5315_s22  }
 0x68a   : > { %v3670_v49 = vpop.permute.xlu2 %3669  ;;  %v3672_v62 = vpop.permute.xlu0 %3671  ;;  %s4727_s4 = scalar_lea.sflag [#allocation5], %s513_s21 }
 0x68b   : > { %v3914_v19 = vpop.permute.xlu1 %3913  ;;  %v3695_v42 = vadd.f32 %v3670_v49, %v3648_v28 }
 0x68c   : > { %v3941_v47 = vadd.f32 %v3914_v19, %v3874_v46 }
 0x68e   : > { %v4008_v17 = vadd.f32 %v3981_v35, %v3941_v47 }
 0x690   : > { %v4022_v23 = vadd.f32 %v8657_v30, %v4008_v17 }
 0x692   : > { %v4033_v14 = vmax.f32 %v4022_v23, 0.0  ;;  %v3737_v36 = vpop.permute.xlu2 %3736  ;;  %v3739_v59 = vpop.permute.xlu0 %3738 }
 0x693   : > { %v3625_v58 = vpop.permute.xlu1 %3624  ;;  %v3762_v22 = vadd.f32 %v3737_v36, %v3695_v42 }
 0x694   : > { %v4057_v44 = vrot.slane %v4033_v14, 1  ;;  %v3649_v48 = vadd.f32 %v3625_v58, %v3582_v18 }
 0x696   : > { %v3696_v39 = vadd.f32 %v3672_v62, %v3649_v48  ;;  %v4058_v6 = vsel %vm939_vm7, %v8666_v61, %v4057_v44 }
 0x697   : > { %v8670_v10 = vmax.f32 %v4032_v29, %v4058_v6 }
 0x698   : > { %v3763_v45 = vadd.f32 %v3739_v59, %v3696_v39 }
 0x699   : > { %v4107_v53 = vrot.slane %v8670_v10, 2 }
 0x69a   : > { %v3983_v25 = vpop.permute.xlu2 %3982  ;;  %v3851_v0 = vpop.permute.xlu0 %3850 }
 0x69b   : > { %v3804_v56 = vpop.permute.xlu1 %3803 }
 0x69c   : > { %v3829_v51 = vadd.f32 %v3804_v56, %v3762_v22 }
 0x69e   : > { %v3876_v32 = vadd.f32 %v3851_v0, %v3829_v51 }
 0x6a2   : > { %v3985_v15 = vpop.permute.xlu0 %3984  ;;  %v3560_v7 = vpop.permute.xlu2 %3559 }
 0x6a3   : > { %v3849_v63 = vpop.permute.xlu1 %3848  ;;  %v3583_v29 = vadd.f32 %v3560_v7, %v8396_v38 }
 0x6a4   : > { %v3875_v3 = vadd.f32 %v3849_v63, %v3828_v9 }
 0x6aa   : > { %v3629_v11 = vpop.permute.xlu2 %3628  ;;  %v3562_v55 = vpop.permute.xlu0 %3561 }
 0x6ab   : > { %v3916_v24 = vpop.permute.xlu1 %3915  ;;  %v3584_v22 = vadd.f32 %v3562_v55, %v8405_v2 }
 0x6ac   : > { %v3942_v34 = vadd.f32 %v3916_v24, %v3875_v3 }
 0x6ae   : > { %v4009_v33 = vadd.f32 %v3983_v25, %v3942_v34 }
 0x6b0   : > { %v4023_v52 = vadd.f32 %v8657_v30, %v4009_v33 }
 0x6b2   : > { %v4034_v54 = vmax.f32 %v4023_v52, 0.0  ;;  %v3674_v46 = vpop.permute.xlu2 %3673  ;;  %v3741_v41 = vpop.permute.xlu0 %3740 }
 0x6b3   : > { %v3627_v43 = vpop.permute.xlu1 %3626 }
 0x6b4   : > { %v4059_v50 = vrot.slane %v4034_v54, 1  ;;  %v3650_v36 = vadd.f32 %v3627_v43, %v3583_v29 }
 0x6b6   : > { %v4060_v31 = vsel %vm939_vm7, %v4057_v44, %v4059_v50  ;;  %v3697_v6 = vadd.f32 %v3674_v46, %v3650_v36 }
 0x6b7   : > { %v4079_v26 = vmax.f32 %v4033_v14, %v4060_v31 }
 0x6b8   : > { %v3764_v51 = vadd.f32 %v3741_v41, %v3697_v6 }
 0x6b9   : > { %v4109_v35 = vrot.slane %v4079_v26, 2 }
 0x6ba   : > { %v3987_v13 = vpop.permute.xlu2 %3986  ;;  %v3808_v9 = vpop.permute.xlu0 %3807 }
 0x6bb   : > { %v3806_v21 = vpop.permute.xlu1 %3805  ;;  %v8678_v1 = vsel %vm1163_vm5, %v4107_v53, %v4109_v35  ;;  %v3831_v63 = vadd.f32 %v3808_v9, %v3764_v51 }
 0x6bc   : > { %v3830_v4 = vadd.f32 %v3806_v21, %v3763_v45 }
 0x6c2   : > { %v3853_v57 = vpop.permute.xlu0 %3852  ;;  %v3922_v28 = vpop.permute.xlu2 %3921 }
 0x6c3   : > { %v3918_v40 = vpop.permute.xlu1 %3917  ;;  %v3877_v49 = vadd.f32 %v3853_v57, %v3830_v4 }
 0x6c4   : > { %v3943_v20 = vadd.f32 %v3918_v40, %v3876_v32  ;;  %v3651_v32 = vadd.f32 %v3629_v11, %v3584_v22 }
 0x6c6   : > { %v4010_v60 = vadd.f32 %v3985_v15, %v3943_v20 }
 0x6c8   : > { %v4024_v12 = vadd.f32 %v8657_v30, %v4010_v60 }
 0x6ca   : > { %v4035_v62 = vmax.f32 %v4024_v12, 0.0  ;;  %v3920_v19 = vpop.permute.xlu0 %3919  ;;  %v3991_v18 = vpop.permute.xlu2 %3990 }
 0x6cb   : > { %v3944_v16 = vadd.f32 %v3920_v19, %v3877_v49  ;;  %v3743_v47 = vpop.permute.xlu1 %3742 }
 0x6cc   : > { %v4061_v17 = vrot.slane %v4035_v62, 1 }
 0x6cd   : > { %v4011_v23 = vadd.f32 %v3987_v13, %v3944_v16 }
 0x6ce   : > { %v4062_v14 = vsel %vm939_vm7, %v4059_v50, %v4061_v17 }
 0x6cf   : > { %v4025_v59 = vadd.f32 %v8657_v30, %v4011_v23  ;;  %v8684_v58 = vmax.f32 %v4034_v54, %v4062_v14 }
 0x6d1   : > { %v8686_v44 = vmax.f32 %v4025_v59, 0.0  ;;  %v4111_v48 = vrot.slane %v8684_v58, 2 }
 0x6d2   : > { %v3676_v39 = vpop.permute.xlu0 %3675  ;;  %v3908_v15 = vpop.permute.xlu2 %3907 }
 0x6d3   : > { %v3810_v42 = vpop.permute.xlu1 %3809  ;;  %v4063_v45 = vrot.slane %v8686_v44, 1  ;;  %v4112_v38 = vsel %vm1163_vm5, %v4109_v35, %v4111_v48  ;;  %v3698_v3 = vadd.f32 %v3676_v39, %v3651_v32  ;;  %v3938_v35 = vadd.f32 %v3908_v15, %v8592_v8 }
 0x6d4   : > { %v4132_v25 = vmax.f32 %v8670_v10, %v4112_v38 }
 0x6d5   : > { %v4064_v0 = vsel %vm939_vm7, %v4061_v17, %v4063_v45  ;;  %v3765_v46 = vadd.f32 %v3743_v47, %v3698_v3  ;;  %v4082_v38 = vmax.f32 %v8686_v44, %v4063_v45 }
 0x6d6   : > { %v8694_v56 = vmax.f32 %v4035_v62, %v4064_v0 }
 0x6d7   : > { %v3832_v31 = vadd.f32 %v3810_v42, %v3765_v46 }
 0x6d8   : > { %v4113_v7 = vrot.slane %v8694_v56, 2 }
 0x6da   : > { %v3855_v24 = vpop.permute.xlu0 %3854  ;;  %v4114_v34 = vsel %vm1163_vm5, %v4111_v48, %v4113_v7  ;;  %v3975_v41 = vpop.permute.xlu2 %3974 }
 0x6db   : > { %v3989_v33 = vpop.permute.xlu1 %3988  ;;  %v3878_v52 = vadd.f32 %v3855_v24, %v3831_v63  ;;  %v4133_v54 = vmax.f32 %v4079_v26, %v4114_v34  ;;  %v4005_v40 = vadd.f32 %v3975_v41, %v3938_v35 }
 0x6dd   : > { %v3945_v2 = vadd.f32 %v3922_v28, %v3878_v52  ;;  %v8698_v55 = vpack.c.bf16 %v4133_v54, %v4132_v25  ;;  %v4019_v4 = vadd.f32 %v8657_v30, %v4005_v40 }
 0x6df   : > { %v4012_v43 = vadd.f32 %v3989_v33, %v3945_v2  ;;  %v4030_v17 = vmax.f32 %v4019_v4, 0.0 }
 0x6e1   : > { %v4026_v50 = vadd.f32 %v8657_v30, %v4012_v43  ;;  %v4051_v59 = vrot.slane %v4030_v17, 1 }
 0x6e2   : > { %v3924_v11 = vpop.permute.xlu0 %3923 }
 0x6e3   : > { %v4037_v13 = vmax.f32 %v4026_v50, 0.0  ;;  %v3857_v9 = vpop.permute.xlu1 %3856 }
 0x6e4   : > { %v3879_v21 = vadd.f32 %v3857_v9, %v3832_v31 }
 0x6e5   : > { %v4085_v57 = vrot.slane %v4037_v13, 1 }
 0x6e6   : > { %v3946_v20 = vadd.f32 %v3924_v11, %v3879_v21 }
 0x6e7   : > { %v4086_v26 = vsel %vm939_vm7, %v4063_v45, %v4085_v57 }
 0x6e8   : > { %v4013_v28 = vadd.f32 %v3991_v18, %v3946_v20  ;;  %v4091_v60 = vmax.f32 %v8686_v44, %v4086_v26 }
 0x6ea   : > { %v4027_v12 = vadd.f32 %v8657_v30, %v4013_v28  ;;  %v3977_v49 = vpop.permute.xlu0 %3976  ;;  %v4115_v62 = vrot.slane %v4091_v60, 2 }
 0x6eb   : > { %v4006_v19 = vadd.f32 %v3977_v49, %v8617_v27  ;;  %v3790_v8 = vpop.permute.xlu1 %3789 }
 0x6ec   : > { %v4038_v16 = vmax.f32 %v4027_v12, 0.0  ;;  %v4116_v47 = vsel %vm1163_vm5, %v4113_v7, %v4115_v62 }
 0x6ed   : > { %v4020_v29 = vadd.f32 %v8657_v30, %v4006_v19  ;;  %v4134_v23 = vmax.f32 %v8684_v58, %v4116_v47  ;;  %v5179_v19 = vld [vmem:[%s8952_s8 + $0x10] sm:$0xff] }
 0x6ee   : > { %v4087_v18 = vrot.slane %v4038_v16, 1 }
 0x6ef   : > { %v4031_v14 = vmax.f32 %v4020_v29, 0.0 }
 0x6f0   : > { %v4088_v36 = vsel %vm939_vm7, %v4085_v57, %v4087_v18 }
 0x6f1   : > { %v4053_v48 = vrot.slane %v4031_v14, 1  ;;  %v4092_v39 = vmax.f32 %v4037_v13, %v4088_v36 }
 0x6f2   : > { %v3906_v6 = vpop.permute.xlu0 %3905 }
 0x6f3   : > { %v4056_v27 = vsel %vm939_vm7, %v4053_v48, %v8666_v61  ;;  %v3837_v42 = vpop.permute.xlu1 %3836  ;;  %v4117_v22 = vrot.slane %v4092_v39, 2  ;;  %v4054_v25 = vsel %vm939_vm7, %v4051_v59, %v4053_v48  ;;  %v3822_v61 = vadd.f32 %v3790_v8, %v8531_v37  ;;  %v3971_v37 = vpop.permute.xlu2 %3970  ;;  %v5180_v8 = vld [vmem:[%s8952_s8 + $0x18] sm:$0xff] }
 0x6f4   : > { %v4077_v0 = vmax.f32 %v4031_v14, %v4056_v27  ;;  %v4076_v51 = vmax.f32 %v4030_v17, %v4054_v25  ;;  %v3937_v33 = vadd.f32 %v3906_v6, %v8561_v5 }
 0x6f5   : > { %v4136_v58 = vmax.f32 %v4082_v38, %v4117_v22  ;;  %v4118_v32 = vsel %vm1163_vm5, %v4115_v62, %v4117_v22  ;;  %v3869_v2 = vadd.f32 %v3837_v42, %v3822_v61  ;;  %v5178_v62 = vld [vmem:[%s8952_s8 + $0x8] sm:$0xff] }
 0x6f6   : > { %v4105_v15 = vrot.slane %v4077_v0, 2  ;;  %v4135_v7 = vmax.f32 %v8694_v56, %v4118_v32  ;;  %v4103_v63 = vrot.slane %v4076_v51, 2  ;;  %v4131_v3 = vmax.f32 %v4077_v0, %v8678_v1 }
 0x6f7   : > { %v4141_v24 = vpack.c.bf16 %v4136_v58, %v4136_v58 }
 0x6f8   : > { %v4140_v34 = vpack.c.bf16 %v4135_v7, %v4134_v23  ;;  %v4108_v44 = vsel %vm1163_vm5, %v4105_v15, %v4107_v53  ;;  %v4106_v45 = vsel %vm1163_vm5, %v4103_v63, %v4105_v15 }
 0x6f9   : > { %v4176_v52 = vsel %vm2143_vm4, %v4141_v24, 0  ;;  %v4130_v54 = vmax.f32 %v4076_v51, %v4108_v44 }
 0x6fa   : > { %4181 = vmatpush.bf16.msrb.mxu1 %v4176_v52  ;;  %v3973_v56 = vpop.permute.xlu0 %3972 }
 0x6fb   : > { %v4004_v46 = vadd.f32 %v3973_v56, %v3937_v33  ;;  %v3904_v1 = vpop.permute.xlu1 %3903  ;;  %v4138_v43 = vpack.c.bf16 %v4131_v3, %v4130_v54 }
 0x6fc   : > { %v3936_v50 = vadd.f32 %v3904_v1, %v3869_v2 }
 0x6fd   : > { %v4018_v41 = vadd.f32 %v8657_v30, %v4004_v46 }
 0x6fe   : > { %v4003_v10 = vadd.f32 %v3971_v37, %v3936_v50  ;;  %4182 = vmatpush.bf16.msrb.mxu1 %v4140_v34 }
 0x6ff   : > { %v4029_v53 = vmax.f32 %v4018_v41, 0.0 }
 0x700   : > { %v4017_v11 = vadd.f32 %v8657_v30, %v4003_v10  ;;  %v5177_v30 = vld [vmem:[%s8952_s8] sm:$0xff] }
 0x701   : > { %v4049_v31 = vrot.slane %v4029_v53, 1 }
 0x702   : > { %v4028_v5 = vmax.f32 %v4017_v11, 0.0  ;;  %4183 = vmatpush.bf16.msrb.mxu1 %v8698_v55  ;;  %v4224_v55 = vld [vmem:[%s8947_s3] sm:$0xff] }
 0x703   : > { %v4052_v35 = vsel %vm939_vm7, %v4049_v31, %v4051_v59  ;;  %v4256_v4 = vunpack.c.l.b16 %v4224_v55  ;;  %v4257_v16 = vunpack.c.h.b16 %v4224_v55 }
 0x704   : > { %v4075_v13 = vmax.f32 %v4029_v53, %v4052_v35  ;;  %v4048_v9 = vrot.slane %v4028_v5, 1 }
 0x705   : > { %v4258_v12 = vpack.c.b16 %v4256_v4, %v4256_v4  ;;  %v4259_v47 = vpack.c.b16 %v4257_v16, %v4257_v16 }
 0x706   : > { %v4102_v21 = vrot.slane %v4075_v13, 2  ;;  %4184 = vmatpush.bf16.msrb.mxu1 %v4138_v43  ;;  %v4050_v57 = vsel %vm939_vm7, %v4048_v9, %v4049_v31  ;;  %v4129_v40 = vmax.f32 %v4075_v13, %v4106_v45 }
 0x707   : > { %v4074_v20 = vmax.f32 %v4028_v5, %v4050_v57  ;;  %v4274_v49 = vsel %vm1765_vm6, %v4258_v12, 0  ;;  %v4277_v17 = vsel %vm1765_vm6, %v4259_v47, 0 }
 0x708   : > { %v4104_v26 = vsel %vm1163_vm5, %v4102_v21, %v4103_v63  ;;  %4286 = vmatpush.bf16.msra.mxu2 %v4274_v49 }
 0x709   : > { %v4128_v28 = vmax.f32 %v4074_v20, %v4104_v26 }
 0x70b   : > { %v4137_v60 = vpack.c.bf16 %v4129_v40, %v4128_v28 }
 0x70d   : > { %4185 = vmatpush.bf16.msrb.mxu1 %v4137_v60 }
 0x710   : > { %5069 = vmatmul.msk.bf16.vlgmr.msrb.gmra.mxu1 %vm4162_vm11, %v5177_v30 }
 0x711   : > { %4313 = vmatpush.bf16.msra.mxu1 %v4277_v17 }
 0x720   : > { %5070 = vmatmul.msk.bf16.gmra.mxu1 %vm4162_vm11, %v5178_v62 }
 0x730   : > { %5071 = vmatmul.msk.bf16.gmra.mxu1 %vm4162_vm11, %v5179_v19 }
 0x740   : > { %5072 = vmatmul.msk.bf16.gmra.mxu1 %vm4162_vm11, %v5180_v8 }
 0x78d   : > { %v4187_v29 = vpop.f32.mrf.mxu1 }
 0x78e   : > { %v4207_v23 = vpack.c.bf16 %v4187_v29, %v4187_v29 }
 0x790   : > { %4216 = vst.msk [vmem:[#allocation3] sm:$0xf] %vm4215_vm12, %v4207_v23 }
 0x795   : > { %v4189_v18 = vpop.f32.mrf.mxu1 }
 0x796   : > { %v4208_v14 = vpack.c.bf16 %v4189_v18, %v4189_v18 }
 0x798   : > { %4217 = vst.msk [vmem:[#allocation3 + $0x4] sm:$0xf] %vm4215_vm12, %v4208_v14 }
 0x79d   : > { %v4192_v36 = vpop.f32.mrf.mxu1 }
 0x79e   : > { %v4209_v59 = vpack.c.bf16 %v4192_v36, %v4192_v36 }
 0x79f   : > { %v5189_v48 = vld [vmem:[#allocation3] sm:$0xff] }
 0x7a0   : > { %4218 = vst.msk [vmem:[#allocation3 + $0x8] sm:$0xf] %vm4215_vm12, %v4209_v59  ;;  %5089 = vmatmul.msk.bf16.vlgmr.msra.gmra.mxu2 %vm4260_vm13, %v5189_v48  ;;  %5093 = vmatmul.msk.bf16.vlgmr.msra.gmra.mxu1 %vm4260_vm13, %v5189_v48 }
 0x7a5   : > { %v4194_v39 = vpop.f32.mrf.mxu1 }
 0x7a6   : > { %v4210_v6 = vpack.c.bf16 %v4194_v39, %v4194_v39 }
 0x7a8   : > { %4219 = vst.msk [vmem:[#allocation3 + $0xc] sm:$0xf] %vm4215_vm12, %v4210_v6 }
 0x7ad   : > { %v4197_v27 = vpop.f32.mrf.mxu1 }
 0x7ae   : > { %v4211_v42 = vpack.c.bf16 %v4197_v27, %v4197_v27 }
 0x7af   : > { %v5190_v38 = vld [vmem:[#allocation3 + $0x8] sm:$0xff] }
 0x7b0   : > { %4220 = vst.msk [vmem:[#allocation3 + $0x10] sm:$0xf] %vm4215_vm12, %v4211_v42  ;;  %5090 = vmatmul.msk.bf16.gmra.mxu2 %vm4260_vm13, %v5190_v38  ;;  %5094 = vmatmul.msk.bf16.gmra.mxu1 %vm4260_vm13, %v5190_v38 }
 0x7b5   : > { %v4199_v22 = vpop.f32.mrf.mxu1 }
 0x7b6   : > { %v4212_v25 = vpack.c.bf16 %v4199_v22, %v4199_v22 }
 0x7b8   : > { %4221 = vst.msk [vmem:[#allocation3 + $0x14] sm:$0xf] %vm4215_vm12, %v4212_v25 }
 0x7bd   : > { %v4202_v51 = vpop.f32.mrf.mxu1 }
 0x7be   : > { %v4213_v58 = vpack.c.bf16 %v4202_v51, %v4202_v51 }
 0x7bf   : > { %v5191_v0 = vld [vmem:[#allocation3 + $0x10] sm:$0xff] }
 0x7c0   : > { %5091 = vmatmul.msk.bf16.gmra.mxu2 %vm4260_vm13, %v5191_v0  ;;  %5095 = vmatmul.msk.bf16.gmra.mxu1 %vm4260_vm13, %v5191_v0  ;;  %4222 = vst.msk [vmem:[#allocation3 + $0x18] sm:$0xf] %vm4215_vm12, %v4213_v58 }
 0x7c5   : > { %v4204_v32 = vpop.f32.mrf.mxu1 }
 0x7c6   : > { %v4214_v15 = vpack.c.bf16 %v4204_v32, %v4204_v32 }
 0x7c8   : > { %4223 = vst.msk [vmem:[#allocation3 + $0x1c] sm:$0xf] %vm4215_vm12, %v4214_v15 }
 0x7cf   : > { %v5192_v32 = vld [vmem:[#allocation3 + $0x18] sm:$0xff] }
 0x7d0   : > { %5092 = vmatmul.msk.bf16.gmra.mxu2 %vm4260_vm13, %v5192_v32  ;;  %5096 = vmatmul.msk.bf16.gmra.mxu1 %vm4260_vm13, %v5192_v32 }
 0x81d   : > { %v4315_v7 = vpop.f32.mrf.mxu1 }
 0x823   : > { %v8762_v63 = vpop.f32.mrf.mxu2 }
 0x824   : > { %v4387_v24 = vrot.slane %v8762_v63, 6  ;;  %v4337_v34 = vrot.slane %v8762_v63, 1  ;;  %v4362_v54 = vrot.slane %v8762_v63, 2  ;;  %v4412_v1 = vrot.slane %v8762_v63, 7 }
 0x82b   : > { %v8764_v3 = vpop.f32.mrf.mxu2 }
 0x82c   : > { %4437 = vrot.lane.b32.xlu2 %v8764_v3, %s5338_s17  ;;  %v4388_v61 = vrot.slane %v8764_v3, 6  ;;  %v4338_v44 = vrot.slane %v8764_v3, 1  ;;  %v4363_v52 = vrot.slane %v8764_v3, 2  ;;  %v4413_v2 = vrot.slane %v8764_v3, 7 }
 0x82d   : > { %v4454_v21 = vrot.slane %v8764_v3, 4  ;;  %v4479_v42 = vrot.slane %v8764_v3, 5 }
 0x82e   : > { %v4389_v45 = vsel %vm778_vm1, %v4387_v24, %v4388_v61  ;;  %v4339_v33 = vsel %vm939_vm7, %v4337_v34, %v4338_v44  ;;  %v4364_v56 = vsel %vm1163_vm5, %v4362_v54, %v4363_v52  ;;  %v4414_v43 = vsel %vm777_vm0, %v4412_v1, %v4413_v2  ;;  %v4316_v54 = vpop.f32.mrf.mxu1 }
 0x82f   : > { %4396 = vrot.lane.b32.xlu0 %v4389_v45, %s5335_s27  ;;  %4346 = vrot.lane.b32.xlu1 %v4339_v33, %s9211_s28 }
 0x833   : > { %v8780_v46 = vpop.f32.mrf.mxu2 }
 0x834   : > { %4371 = vrot.lane.b32.xlu2 %v4364_v56, %s9259_s30  ;;  %v4340_v50 = vrot.slane %v8780_v46, 1  ;;  %v4390_v37 = vrot.slane %v8780_v46, 6  ;;  %v4365_v41 = vrot.slane %v8780_v46, 2  ;;  %v4415_v5 = vrot.slane %v8780_v46, 7 }
 0x835   : > { %v4455_v35 = vrot.slane %v8780_v46, 4  ;;  %v4480_v27 = vrot.slane %v8780_v46, 5 }
 0x836   : > { %v4341_v10 = vsel %vm939_vm7, %v4338_v44, %v4340_v50  ;;  %v4391_v11 = vsel %vm778_vm1, %v4388_v61, %v4390_v37  ;;  %v4366_v31 = vsel %vm1163_vm5, %v4363_v52, %v4365_v41  ;;  %v4416_v9 = vsel %vm777_vm0, %v4413_v2, %v4415_v5 }
 0x837   : > { %4421 = vrot.lane.b32.xlu1 %v4414_v43, %s5337_s24  ;;  %4439 = vrot.lane.b32.xlu0 %v8780_v46, %s5338_s17  ;;  %v4456_v57 = vsel %vm1765_vm6, %v4454_v21, %v4455_v35  ;;  %v4481_v22 = vsel %vm2143_vm4, %v4479_v42, %v4480_v27  ;;  %v8851_v43 = vpop.f32.mrf.mxu1  ;;  %v4509_v42 = vrot.slane %v4316_v54, 6 }
 0x83b   : > { %v8793_v53 = vpop.f32.mrf.mxu2 }
 0x83c   : > { %4348 = vrot.lane.b32.xlu2 %v4341_v10, %s9211_s28  ;;  %v4417_v13 = vrot.slane %v8793_v53, 7  ;;  %v4342_v26 = vrot.slane %v8793_v53, 1  ;;  %v4367_v55 = vrot.slane %v8793_v53, 2  ;;  %v4392_v4 = vrot.slane %v8793_v53, 6 }
 0x83d   : > { %v4482_v17 = vrot.slane %v8793_v53, 5  ;;  %v4457_v38 = vrot.slane %v8793_v53, 4 }
 0x83e   : > { %v4418_v40 = vsel %vm777_vm0, %v4415_v5, %v4417_v13  ;;  %v4343_v60 = vsel %vm939_vm7, %v4340_v50, %v4342_v26  ;;  %v4368_v49 = vsel %vm1163_vm5, %v4365_v41, %v4367_v55  ;;  %v4393_v62 = vsel %vm778_vm1, %v4390_v37, %v4392_v4 }
 0x83f   : > { %4398 = vrot.lane.b32.xlu1 %v4391_v11, %s5335_s27  ;;  %4373 = vrot.lane.b32.xlu0 %v4366_v31, %s9259_s30  ;;  %v4458_v0 = vsel %vm1765_vm6, %v4455_v35, %v4457_v38  ;;  %v4483_v51 = vsel %vm2143_vm4, %v4480_v27, %v4482_v17  ;;  %v4321_v31 = vpop.f32.mrf.mxu1 }
 0x843   : > { %v4298_v20 = vpop.f32.mrf.mxu2 }
 0x844   : > { %4423 = vrot.lane.b32.xlu2 %v4416_v9, %s5337_s24  ;;  %v4344_v28 = vrot.slane %v4298_v20, 1  ;;  %v4394_v12 = vrot.slane %v4298_v20, 6  ;;  %v4419_v8 = vrot.slane %v4298_v20, 7  ;;  %v4484_v16 = vrot.slane %v4298_v20, 5 }
 0x845   : > { %v4369_v36 = vrot.slane %v4298_v20, 2  ;;  %v4459_v48 = vrot.slane %v4298_v20, 4 }
 0x846   : > { %v4345_v30 = vsel %vm939_vm7, %v4342_v26, %v4344_v28  ;;  %v4395_v19 = vsel %vm778_vm1, %v4392_v4, %v4394_v12  ;;  %v4420_v47 = vsel %vm777_vm0, %v4417_v13, %v4419_v8  ;;  %v4485_v23 = vsel %vm2143_vm4, %v4482_v17, %v4484_v16 }
 0x847   : > { %4463 = vrot.lane.b32.xlu0 %v4456_v57, %s5339_s23  ;;  %4425 = vrot.lane.b32.xlu1 %v4418_v40, %s5337_s24  ;;  %v4370_v39 = vsel %vm1163_vm5, %v4367_v55, %v4369_v36  ;;  %v4460_v25 = vsel %vm1765_vm6, %v4457_v38, %v4459_v48  ;;  %v4324_v57 = vpop.f32.mrf.mxu1  ;;  %v4512_v38 = vrot.slane %v4321_v31, 6 }
 0x848   : > { %v4514_v36 = vrot.slane %v4324_v57, 6 }
 0x84b   : > { %v4300_v29 = vpop.f32.mrf.mxu2 }
 0x84c   : > { %4441 = vrot.lane.b32.xlu2 %v8793_v53, %s5338_s17  ;;  %v4486_v18 = vrot.slane %v4300_v29, 5  ;;  %v4461_v14 = vrot.slane %v4300_v29, 4 }
 0x84e   : > { %v4487_v59 = vsel %vm2143_vm4, %v4484_v16, %v4486_v18  ;;  %v4462_v6 = vsel %vm1765_vm6, %v4459_v48, %v4461_v14 }
 0x84f   : > { %4350 = vrot.lane.b32.xlu0 %v4343_v60, %s9211_s28  ;;  %4352 = vrot.lane.b32.xlu1 %v4345_v30, %s9211_s28  ;;  %s5340_s28 = smov 16   ;;  %v4326_v16 = vpop.f32.mrf.mxu1 }
 0x854   : > { %4375 = vrot.lane.b32.xlu2 %v4368_v49, %s9259_s30 }
 0x857   : > { %4400 = vrot.lane.b32.xlu0 %v4393_v62, %s5335_s27  ;;  %4402 = vrot.lane.b32.xlu1 %v4395_v19, %s5335_s27 }
 0x85c   : > { %4427 = vrot.lane.b32.xlu2 %v4420_v47, %s5337_s24 }
 0x85f   : > { %4443 = vrot.lane.b32.xlu0 %v4298_v20, %s5338_s17  ;;  %4492 = vrot.lane.b32.xlu1 %v4485_v23, %s5340_s28 }
 0x864   : > { %4494 = vrot.lane.b32.xlu2 %v4487_v59, %s5340_s28 }
 0x867   : > { %4377 = vrot.lane.b32.xlu0 %v4370_v39, %s9259_s30  ;;  %4469 = vrot.lane.b32.xlu1 %v4462_v6, %s5339_s23  ;;  %s4735_s30 = scalar_lea.hbm %s8960_s16, %s5447_s25 }
 0x868   : > { %s4739_s24 = sshll.u32 %s4735_s30, 4  ;;  %s4740_s24 = int_to_ptr.hbm [resolvable:$true] %s4739_s24 }
 0x869   : > { %s5275_s19 = sshra.s32 %s4740_s24, 4  ;;  %s5276_s19 = int_to_ptr.hbm [resolvable:$true] %s5275_s19 }
 0x86a   : > { %s5277_s20 = scalar_lea.hbm %s5276_s19, 1  ;;  %p5282_p0 = scmp.lt.s32.totalorder %s5276_s19, %s8960_s16 }
 0x86b   : > { %p5278_p11 = scmp.ne.s32.totalorder %s5276_s19, %s5277_s20  ;;  %p5283_p1 = scmp.lt.s32.totalorder %s5281_s18, %s5277_s20 }
 0x86c   : > { %4488 = vrot.lane.b32.xlu2 %v4481_v22, %s5340_s28 }
 0x86d   : > { %p5279_p12 = pnand %p5278_p11, %p5464_p5  ;;  %p5284_p2 = por %p5283_p1, %p5282_p0 }
 0x86f   : > { %4467 = vrot.lane.b32.xlu0 %v4460_v25, %s5339_s23  ;;  %4465 = vrot.lane.b32.xlu1 %v4458_v0, %s5339_s23  ;;  %v4515_v0 = vsel %vm778_vm1, %v4512_v38, %v4514_v36  ;;  %p5280_p13 = pneg %p5279_p12 }
 0x871   : > { %p5285_p3 = pnand %p5284_p2, %p5280_p13 }
 0x877   : > { %4490 = vrot.lane.b32.xlu0 %v4483_v51, %s5340_s28 }
 0x886   : > { %v4438_v58 = vpop.permute.xlu2 %4437 }
 0x88e   : > { %v4372_v15 = vpop.permute.xlu2 %4371 }
 0x896   : > { %v4349_v61 = vpop.permute.xlu2 %4348 }
 0x897   : > { %v4359_v28 = vadd.f32 %v4349_v61, %v8764_v3  ;;  %v4510_v3 = vrot.slane %v8851_v43, 6 }
 0x89e   : > { %v4424_v45 = vpop.permute.xlu2 %4423 }
 0x8a1   : > { %v4397_v7 = vpop.permute.xlu0 %4396  ;;  %v4347_v24 = vpop.permute.xlu1 %4346 }
 0x8a2   : > { %v4358_v35 = vadd.f32 %v4347_v24, %v8762_v63 }
 0x8a4   : > { %v4383_v40 = vadd.f32 %v4372_v15, %v4358_v35  ;;  %v5259_v15 = vld [vmem:[%s8950_s6] ss:$0 sm:$0xff] }
 0x8a6   : > { %v4442_v2 = vpop.permute.xlu2 %4441  ;;  %v4408_v60 = vadd.f32 %v4397_v7, %v4383_v40 }
 0x8a9   : > { %v4422_v34 = vpop.permute.xlu1 %4421  ;;  %v8849_v44 = vpop.permute.xlu0 %4439 }
 0x8aa   : > { %v4433_v12 = vadd.f32 %v4422_v34, %v4408_v60 }
 0x8ae   : > { %v4376_v50 = vpop.permute.xlu2 %4375 }
 0x8b1   : > { %v4399_v33 = vpop.permute.xlu1 %4398  ;;  %v4374_v52 = vpop.permute.xlu0 %4373 }
 0x8b2   : > { %v4384_v49 = vadd.f32 %v4374_v52, %v4359_v28 }
 0x8b4   : > { %v4409_v47 = vadd.f32 %v4399_v33, %v4384_v49 }
 0x8b6   : > { %v4428_v5 = vpop.permute.xlu2 %4427  ;;  %v4434_v27 = vadd.f32 %v4424_v45, %v4409_v47  ;;  %v4329_v47 = vpop.f32.mrf.mxu1 }
 0x8b8   : > { %v4450_v34 = vadd.f32 %v8849_v44, %v4434_v27 }
 0x8b9   : > { %v4464_v56 = vpop.permute.xlu0 %4463  ;;  %v4426_v1 = vpop.permute.xlu1 %4425 }
 0x8be   : > { %v4495_v20 = vpop.permute.xlu2 %4494 }
 0x8c1   : > { %v4351_v37 = vpop.permute.xlu0 %4350  ;;  %v4353_v41 = vpop.permute.xlu1 %4352 }
 0x8c2   : > { %v4360_v21 = vadd.f32 %v4351_v37, %v8780_v46  ;;  %v4361_v30 = vadd.f32 %v4353_v41, %v8793_v53  ;;  %v4449_v46 = vadd.f32 %v4438_v58, %v4433_v12  ;;  %v4516_v53 = vrot.slane %v4326_v16, 6  ;;  %v4226_v16 = vld [vmem:[%s8953_s9] sm:$0x3] }
 0x8c3   : > { %v4511_v58 = vsel %vm778_vm1, %v4509_v42, %v4510_v3 }
 0x8c4   : > { %v4385_v26 = vadd.f32 %v4376_v50, %v4360_v21  ;;  %v4475_v23 = vadd.f32 %v4464_v56, %v4449_v46  ;;  %v4517_v51 = vsel %vm778_vm1, %v4514_v36, %v4516_v53  ;;  %v4513_v50 = vsel %vm778_vm1, %v4510_v3, %v4512_v38  ;;  %v4303_v46 = vpop.f32.mrf.mxu2 }
 0x8c6   : > { %v4489_v29 = vpop.permute.xlu2 %4488 }
 0x8c7   : > { %v4500_v48 = vadd.f32 %v4489_v29, %v4475_v23  ;;  %v5196_v23 = vld [vmem:[%s8954_s10 + $0x18] sm:$0xff] }
 0x8c9   : > { %v4401_v10 = vpop.permute.xlu0 %4400  ;;  %v4403_v11 = vpop.permute.xlu1 %4402  ;;  %v4522_v7 = vadd.f32 %v4511_v58, %v4500_v48  ;;  %v5197_v58 = vld [vmem:[%s8956_s12] sm:$0xff] }
 0x8ca   : > { %v4410_v55 = vadd.f32 %v4401_v10, %v4385_v26 }
 0x8cc   : > { %v4435_v63 = vadd.f32 %v4426_v1, %v4410_v55  ;;  %v4304_v29 = vpop.f32.mrf.mxu2 }
 0x8ce   : > { %v4451_v14 = vadd.f32 %v4442_v2, %v4435_v63  ;;  %v4529_v2 = vadd.f32 %v5259_v15, %v4522_v7 }
 0x8d1   : > { %v4444_v13 = vpop.permute.xlu0 %4443  ;;  %v4493_v9 = vpop.permute.xlu1 %4492 }
 0x8d9   : > { %v4378_v4 = vpop.permute.xlu0 %4377  ;;  %v4470_v19 = vpop.permute.xlu1 %4469 }
 0x8da   : > { %v4386_v62 = vadd.f32 %v4378_v4, %v4361_v30 }
 0x8dc   : > { %v4411_v8 = vadd.f32 %v4403_v11, %v4386_v62  ;;  %v4533_v11 = vmax.f32 %v4529_v2, 0.0 }
 0x8de   : > { %v4436_v17 = vadd.f32 %v4428_v5, %v4411_v8  ;;  %v4540_v21 = vrot.slane %v4533_v11, 1 }
 0x8e0   : > { %v4452_v18 = vadd.f32 %v4444_v13, %v4436_v17  ;;  %v4330_v17 = vpop.f32.mrf.mxu1 }
 0x8e1   : > { %v4468_v59 = vpop.permute.xlu0 %4467  ;;  %v4466_v32 = vpop.permute.xlu1 %4465 }
 0x8e2   : > { %v4478_v39 = vadd.f32 %v4470_v19, %v4452_v18  ;;  %v4477_v6 = vadd.f32 %v4468_v59, %v4451_v14  ;;  %v4476_v52 = vadd.f32 %v4466_v32, %v4450_v34  ;;  %v5195_v18 = vld [vmem:[%s8954_s10 + $0x10] sm:$0xff]  ;;  %v5194_v14 = vld [vmem:[%s8954_s10 + $0x8] sm:$0xff]  ;;  %v5199_v32 = vld [vmem:[%s8958_s14] sm:$0xff] }
 0x8e3   : > { %4718 = vmatpush.bf16.msrb.mxu3 %v5199_v32 }
 0x8e4   : > { %v4503_v22 = vadd.f32 %v4495_v20, %v4478_v39  ;;  %v4502_v25 = vadd.f32 %v4493_v9, %v4477_v6  ;;  %v5193_v39 = vld [vmem:[%s8954_s10] sm:$0xff] }
 0x8e6   : > { %v4525_v24 = vadd.f32 %v4517_v51, %v4503_v22  ;;  %v4524_v61 = vadd.f32 %v4515_v0, %v4502_v25  ;;  %v5198_v51 = vld [vmem:[%s8956_s12 + $0x8] sm:$0xff] }
 0x8e8   : > { %v4532_v45 = vadd.f32 %v5259_v15, %v4525_v24  ;;  %v4531_v33 = vadd.f32 %v5259_v15, %v4524_v61 }
 0x8e9   : > { %v4491_v54 = vpop.permute.xlu0 %4490 }
 0x8ea   : > { %v4536_v56 = vmax.f32 %v4532_v45, 0.0  ;;  %v4535_v1 = vmax.f32 %v4531_v33, 0.0  ;;  %v4501_v43 = vadd.f32 %v4491_v54, %v4476_v52  ;;  %v4668_v33 = vld [vmem:[%s8957_s13] sm:$0x1] }
 0x8ec   : > { %v4552_v37 = vrot.slane %v4536_v56, 1  ;;  %v4543_v41 = vrot.slane %v4535_v1, 1  ;;  %v4523_v10 = vadd.f32 %v4513_v50, %v4501_v43  ;;  %v4701_v43 = vld [vmem:[%s8959_s15] sm:$0x1] }
 0x8ee   : > { %v4530_v31 = vadd.f32 %v5259_v15, %v4523_v10  ;;  %v4553_v5 = vsel %vm939_vm7, %v4543_v41, %v4552_v37  ;;  %v4550_v44 = vmax.f32 %v4535_v1, %v4543_v41  ;;  %v4620_v15 = vld [vmem:[%s8955_s11] sm:$0x1] }
 0x8ef   : > { %v4555_v35 = vmax.f32 %v4535_v1, %v4553_v5 }
 0x8f0   : > { %v4534_v13 = vmax.f32 %v4530_v31, 0.0 }
 0x8f1   : > { %v4562_v9 = vrot.slane %v4555_v35, 6 }
 0x8f2   : > { %v4541_v57 = vrot.slane %v4534_v13, 1 }
 0x8f3   : > { %v4569_v40 = vmax.f32 %v4550_v44, %v4562_v9 }
 0x8f4   : > { %v4544_v20 = vsel %vm939_vm7, %v4541_v57, %v4543_v41  ;;  %v4542_v26 = vsel %vm939_vm7, %v4540_v21, %v4541_v57 }
 0x8f5   : > { %v4549_v28 = vmax.f32 %v4534_v13, %v4544_v20  ;;  %v4571_v60 = vpack.c.bf16 %v4569_v40, %v4569_v40  ;;  %v4548_v30 = vmax.f32 %v4533_v11, %v4542_v26 }
 0x8f7   : > { %v4560_v55 = vrot.slane %v4549_v28, 6  ;;  %v4577_v4 = vsel %vm777_vm0, %v4571_v60, 0  ;;  %v4559_v12 = vrot.slane %v4548_v30, 6  ;;  %vm4607_vm0 = vcmask 261120  }
 0x8f8   : > { %4585 = vmatpush.bf16.msrb.mxu2 %v4577_v4 }
 0x8f9   : > { %v4561_v49 = vsel %vm778_vm1, %v4559_v12, %v4560_v55  ;;  %v4563_v62 = vsel %vm778_vm1, %v4560_v55, %v4562_v9  ;;  %vm4609_vm1 = vcmask 392192  }
 0x8fa   : > { %v4567_v19 = vmax.f32 %v4548_v30, %v4561_v49  ;;  %v4568_v63 = vmax.f32 %v4549_v28, %v4563_v62 }
 0x8fc   : > { %v4570_v8 = vpack.c.bf16 %v4568_v63, %v4567_v19 }
 0x8fe   : > { %4586 = vmatpush.bf16.msrb.mxu2 %v4570_v8 }
 0x901   : > { %5097 = vmatmul.msk.bf16.vlgmr.msrb.gmra.mxu2 %vm4572_vm14, %v4226_v16 }
 0x902   : > { %4653 = vmatpush.bf16.msra.mxu2 %v5196_v23 }
 0x906   : > { %4654 = vmatpush.bf16.msra.mxu2 %v5195_v18 }
 0x90a   : > { %4655 = vmatpush.bf16.msra.mxu2 %v5194_v14 }
 0x90e   : > { %4656 = vmatpush.bf16.msra.mxu2 %v5193_v39 }
 0x912   : > { %4690 = vmatpush.bf16.msrb.mxu2 %v5198_v51 }
 0x916   : > { %4691 = vmatpush.bf16.msrb.mxu2 %v5197_v58 }
 0x984   : > { %v4588_v3 = vpop.f32.mrf.mxu2 }
 0x985   : > { %v4593_v36 = vrot.slane %v4588_v3, 1  ;;  %v4597_v53 = vrot.slane %v4588_v3, 2  ;;  %v4601_v59 = vrot.slane %v4588_v3, 3 }
 0x987   : > { %4594 = vrot.lane.b32.xlu1 %v4593_v36, %s5340_s28  ;;  %4602 = vrot.lane.b32.xlu0 %v4601_v59, %s5338_s17  ;;  %s514_s28 = scalar_lea.vmem [#allocation4], %s513_s21 }
 0x988   : > { %4598 = vrot.lane.b32.xlu2 %v4597_v53, %s5339_s23  ;;  %s4737_s27 = sshll.u32 %s514_s28, 4  ;;  %s4738_s27 = int_to_ptr.vmem [resolvable:$true] %s4737_s27 }
 0x98c   : > { %v4590_v48 = vpop.f32.mrf.mxu2 }
 0x9e2   : > { %v4599_v42 = vpop.permute.xlu2 %4598 }
 0x9f9   : > { %v4595_v6 = vpop.permute.xlu1 %4594  ;;  %v4603_v22 = vpop.permute.xlu0 %4602 }
 0x9fa   : > { %v4606_v27 = vsel %vm4605_vm15, %v4588_v3, %v4595_v6 }
 0x9fb   : > { %v4608_v38 = vsel %vm4607_vm0, %v4606_v27, %v4599_v42 }
 0x9fc   : > { %v4610_v25 = vsel %vm4609_vm1, %v4608_v38, %v4603_v22 }
 0x9fd   : > { %v4611_v0 = vpack.c.bf16 %v4610_v25, %v4610_v25 }
 0x9ff   : > { %5114 = vmatmul.msk.bf16.vlgmr.msra.gmra.mxu2 %vm4645_vm2, %v4611_v0 }
 0xa82   : > { %v4658_v7 = vpop.f32.mrf.mxu2 }
 0xa83   : > { %v4659_v24 = vadd.f32 %v4658_v7, %v4620_v15 }
 0xa85   : > { %v4662_v61 = vmax.f32 %v4659_v24, 0.0 }
 0xa87   : > { %v4663_v34 = vpack.c.bf16 %v4662_v61, %v4662_v61 }
 0xa89   : > { %5123 = vmatmul.msk.bf16.vlgmr.msrb.gmra.mxu2 %vm4607_vm0, %v4663_v34 }
 0xa8a   : > { %v4660_v45 = vpop.f32.mrf.mxu2 }
 0xb0c   : > { %v4693_v52 = vpop.f32.mrf.mxu2 }
 0xb0d   : > { %v4694_v54 = vadd.f32 %v4693_v52, %v4668_v33 }
 0xb0f   : > { %v4697_v2 = vmax.f32 %v4694_v54, 0.0 }
 0xb11   : > { %v4698_v56 = vpack.c.bf16 %v4697_v2, %v4697_v2 }
 0xb13   : > { %5128 = vmatmul.msk.bf16.vlgmr.msrb.gmra.mxu3 %vm4605_vm15, %v4698_v56 }
 0xb14   : > { %v4695_v1 = vpop.f32.mrf.mxu2 }
 0xb96   : > { %v4720_v50 = vpop.f32.mrf.mxu3 }
 0xb97   : > { %v4721_v37 = vadd.f32 %v4720_v50, %v4701_v43 }
 0xb99   : > { %4725 = vst.msk [vmem:[%s514_s28] sm:$0x1] %vm4724_vm3, %v4721_v37 }
 0xb9a   : > { %5288 = shalt.err (!%p5285_p3)
}
 0xb9b   : > { %5202 = dma.vmem_to_hbm [thread:$0]  (%p5464_p5), %s4738_s27, 16, %s4740_s24, %s4727_s4  }
 0xb9e   : > { %v4722_v41 = vpop.f32.mrf.mxu3 }
 0xb9f PF: > { %s9745_s21 = sld [smem:[#allocation9_spill]] }
 0xba0   : > { %s9746_s30 = sld [smem:[#allocation7_spill]] }
 0xba5   : > { %p5208_p4 = scmp.ge.s32.totalorder %s9745_s21, 2 }
 0xba6   : > { %s4751_s23 = sand.u32 1, %s9746_s30  }
 0xba7   : > { %p5205_p7 = pnand %p5208_p4, %p5468_p6  ;;  %s4752_s28 = scalar_lea.sflag [#allocation5], %s4751_s23 }
 0xba9   : > { %p5206_p8 = pneg %p5205_p7 }
 0xbab   : > { %5306 = dma.done.wait (%p5206_p8), %s4752_s28, 16  }
 0xbac   : > { %5308 = vsyncadd (%p5206_p8), %s4752_s28, 4294967280  ;;  %s9748_s24 = sld [smem:[#allocation10_spill]]  ;;  %s9751_s21 = smov %s5315_s22 }
 0xbad   : > { %s9749_s19 = sld [smem:[#allocation8_spill]] }
 0xbae   : > { %s9750_s23 = sld [smem:[#allocation11_spill]] }
 0xbb2   : > { %p26_p9 = scmp.ge.s32.totalorder %s9748_s24, 4  }
 0xbb3   : > { %s9752_s22 = smov %s9749_s19 }
 0xbb4   :  { %28 = sbr.rel (!%p26_p9) target bundleno = 7 (0x7), region = 119 }
 0xbb9   :  { %4757 = vsyncpa [#allocation5], 1 }
 0xbba   :  { %4759 = vsyncpa [#allocation5 + $0x1], 1 }

</bundles_post_ra>
